<compile_context>
chip_gen: v5e
topology: v5e:2x2
jax: 0.10.0
libtpu: 0.0.40
codegen_flags: <defaults>
</compile_context>

<pallas_src>
import functools

import jax
import jax.numpy as jnp
from jax.experimental import pallas as pl
from jax.experimental.pallas import tpu as pltpu

# ------------------------- module hyper-parameters --------------------------
nc = 1
ngf = 64
nz = 100
BN_EPS = 1e-5
CIN_PAD = 128                      # latent channels padded 100 -> 128 (lane alignment)
_VMEM_LIMIT = 32 * 1024 * 1024     # explicit scoped-VMEM limit (v5e default is only 16 MiB)

# (Cin, Cout, kernel, stride, padding, has_batchnorm_relu)
LAYER_CFG = [
    (nz,      ngf * 4, 3, 1, 0, True),   # 1x1   -> 3x3
    (ngf * 4, ngf * 2, 3, 2, 0, True),   # 3x3   -> 7x7
    (ngf * 2, ngf,     4, 2, 1, True),   # 7x7   -> 14x14
    (ngf,     nc,      4, 2, 1, False),  # 14x14 -> 28x28, Tanh
]


# ------------------------------- small helpers ------------------------------
def _round_up(x, m):
    return (x + m - 1) // m * m


def _choose_tile(m_true, align, cap=512):
    """Pick (tile_m, padded_m): tile_m is `align`-aligned; padded_m = n_tiles * tile_m."""
    m_aligned = _round_up(max(m_true, 1), align)
    if m_aligned <= cap:
        return m_aligned, m_aligned
    return cap, _round_up(m_true, cap)


def _residues(s):
    return [(rh, rw) for rh in range(s) for rw in range(s)]


# ------------------------------ Pallas kernels ------------------------------
def _fused_gemm_bn_relu_kernel(p_ref, w_ref, g_ref, b_ref, o_ref, sum_ref, ssq_ref,
                               *, rows_valid):
    """Tiled GEMM + train-mode BatchNorm (batch stats, biased var) + ReLU.

    grid = (G, nM); both axes 'arbitrary' (stats + output stay resident in VMEM).
      p_ref   (tm, K)     bf16  patches tile for (group g, M-tile m)
      w_ref   (1, K, C)   bf16  per-group matmul weight
      g_ref   (1, C)      f32   BN gamma
      b_ref   (1, C)      f32   BN beta
      o_ref   (G*Mp, C)   f32   resident output (raw y; normalized at the last step)
      sum/ssq (1, C)      f32   per-channel running sum / sum-of-squares
    Zero-padded patch rows produce exactly-zero y rows, so dividing by the true
    row count `rows_valid` gives the correct batch statistics.
    """
    g = pl.program_id(0)
    m = pl.program_id(1)
    n_g = pl.num_programs(0)
    n_m = pl.num_programs(1)

    @pl.when((g == 0) & (m == 0))
    def _init():
        sum_ref[...] = jnp.zeros_like(sum_ref)
        ssq_ref[...] = jnp.zeros_like(ssq_ref)

    y = jnp.dot(p_ref[...], w_ref[0], preferred_element_type=jnp.float32)   # (tm, C) f32
    sum_ref[...] += jnp.sum(y, axis=0, keepdims=True)
    ssq_ref[...] += jnp.sum(y * y, axis=0, keepdims=True)

    tm = p_ref.shape[0]
    row0 = pl.multiple_of((g * n_m + m) * tm, 8)
    o_ref[pl.ds(row0, tm), :] = y

    @pl.when((g == n_g - 1) & (m == n_m - 1))
    def _finalize():
        inv_n = 1.0 / float(rows_valid)
        mean = sum_ref[...] * inv_n
        var = ssq_ref[...] * inv_n - mean * mean
        scale = g_ref[...] * jax.lax.rsqrt(var + BN_EPS)
        shift = b_ref[...] - mean * scale
        o_ref[...] = jnp.maximum(o_ref[...] * scale + shift, 0.0)


def _gemm_tanh_kernel(pT_ref, wT_ref, o_ref):
    """Final generator layer, lane-dense form: out (1, tm) = tanh(w^T @ patches^T).

      pT_ref (1, K, tm) bf16,  wT_ref (1, 1, K) bf16,  o_ref (1, 1, tm) f32
    """
    y = jnp.dot(wT_ref[0], pT_ref[0], preferred_element_type=jnp.float32)   # (1, tm)
    o_ref[...] = jnp.tanh(y)[None]


# ---------------------------- pallas_call wrappers ---------------------------
def fused_convt_bn_relu(patch_groups, w_groups, gamma, beta):
    """patch_groups: list of G equally-shaped (M_true, K) bf16 arrays.
    w_groups: (G, K, C) bf16.  gamma/beta: (1, C) f32.
    Returns (y, m_pad) where y is (G * m_pad, C) f32 (rows >= M_true per group are junk)."""
    g_count = len(patch_groups)
    m_true, k_dim = patch_groups[0].shape
    c_dim = w_groups.shape[-1]
    tm, m_pad = _choose_tile(m_true, align=8, cap=512)
    n_m = m_pad // tm

    padded = [jnp.pad(p, ((0, m_pad - m_true), (0, 0))) for p in patch_groups]
    p_all = jnp.concatenate(padded, axis=0)                                  # (G*Mp, K)

    kernel = functools.partial(_fused_gemm_bn_relu_kernel,
                               rows_valid=g_count * m_true)
    out = pl.pallas_call(
        kernel,
        out_shape=jax.ShapeDtypeStruct((g_count * m_pad, c_dim), jnp.float32),
        grid=(g_count, n_m),
        in_specs=[
            pl.BlockSpec((tm, k_dim), lambda g, m: (g * n_m + m, 0)),
            pl.BlockSpec((1, k_dim, c_dim), lambda g, m: (g, 0, 0)),
            pl.BlockSpec((1, c_dim), lambda g, m: (0, 0)),
            pl.BlockSpec((1, c_dim), lambda g, m: (0, 0)),
        ],
        out_specs=pl.BlockSpec((g_count * m_pad, c_dim), lambda g, m: (0, 0)),
        scratch_shapes=[pltpu.VMEM((1, c_dim), jnp.float32),
                        pltpu.VMEM((1, c_dim), jnp.float32)],
        compiler_params=pltpu.CompilerParams(
            # Both axes must be 'arbitrary': BN stats + resident output form a reduction.
            dimension_semantics=("arbitrary", "arbitrary"),
            vmem_limit_bytes=_VMEM_LIMIT),
    )(p_all, w_groups, gamma, beta)
    return out, m_pad


def convt_tanh_lane_dense(patchT_groups, wT_groups):
    """patchT_groups: list of G equally-shaped (K, M_true) bf16 arrays (transposed patches).
    wT_groups: (G, 1, K) bf16.  Returns (G, M_true) f32 tanh outputs (nc==1 folded away)."""
    g_count = len(patchT_groups)
    k_dim, m_true = patchT_groups[0].shape
    tm, m_pad = _choose_tile(m_true, align=128, cap=512)
    n_m = m_pad // tm

    padded = [jnp.pad(p, ((0, 0), (0, m_pad - m_true))) for p in patchT_groups]
    pT = jnp.stack(padded, axis=0)                                           # (G, K, Mp)

    out = pl.pallas_call(
        _gemm_tanh_kernel,
        out_shape=jax.ShapeDtypeStruct((g_count, 1, m_pad), jnp.float32),
        grid=(g_count, n_m),
        in_specs=[
            pl.BlockSpec((1, k_dim, tm), lambda g, m: (g, 0, m)),
            pl.BlockSpec((1, 1, k_dim), lambda g, m: (g, 0, 0)),
        ],
        out_specs=pl.BlockSpec((1, 1, tm), lambda g, m: (g, 0, m)),
        compiler_params=pltpu.CompilerParams(
            dimension_semantics=("parallel", "parallel"),   # v7x: shard tiles on 2 TCs
            vmem_limit_bytes=_VMEM_LIMIT),
    )(pT, wT_groups)
    return out[:, 0, :m_true]


# ------------------------------- JAX glue -----------------------------------
def _dilate_and_pad(x, stride, pad):
    """Zero-insert by `stride` and zero-pad spatially by `pad` (NHWC)."""
    n, h, w, c = x.shape
    if stride > 1:
        y = jnp.zeros((n, (h - 1) * stride + 1, (w - 1) * stride + 1, c), x.dtype)
        y = y.at[:, ::stride, ::stride, :].set(x)
    else:
        y = x
    return jnp.pad(y, ((0, 0), (pad, pad), (pad, pad), (0, 0)))


def _im2col(x, kh, kw):
    """x: (N,H,W,C) -> patches (N*Ho*Wo, kh*kw*C), valid convolution windows."""
    n, h, w, c = x.shape
    ho, wo = h - kh + 1, w - kw + 1
    cols = []
    for i in range(kh):
        for j in range(kw):
            cols.append(x[:, i:i + ho, j:j + wo, :])
    p = jnp.stack(cols, axis=3)                    # (N, Ho, Wo, kh*kw, C)
    return p.reshape(n * ho * wo, kh * kw * c)


def _residue_taps(k, s, pad_full):
    """taps[r] = kernel offsets i (of the flipped-kernel conv over the dilated input)
    that hit non-zero columns for output rows with oh % s == r."""
    return [[i for i in range(k) if (r + i - pad_full) % s == 0] for r in range(s)]


def _subpixel_patches(xd, rh, rw, taps_i, taps_j, s, ho_r, wo_r):
    """Reduced im2col for one output residue class (rh, rw): drops the structurally
    zero columns introduced by stride-s dilation (sub-kernel decomposition)."""
    n, _, _, c = xd.shape
    cols = []
    for i in taps_i:
        for j in taps_j:
            cols.append(xd[:, rh + i: rh + i + s * (ho_r - 1) + 1: s,
                              rw + j: rw + j + s * (wo_r - 1) + 1: s, :])
    p = jnp.stack(cols, axis=3)                    # (N, ho_r, wo_r, T, C)
    return p.reshape(n * ho_r * wo_r, len(cols) * c)


def _convT_weight_to_conv(w):
    """PyTorch ConvTranspose2d weight (Cin,Cout,kH,kW) -> flipped conv weight (kH,kW,Cin,Cout)."""
    return jnp.transpose(w[:, :, ::-1, ::-1], (2, 3, 0, 1))


def _convT_weight_to_matmul(w):
    wc = _convT_weight_to_conv(w)
    kh, kw, cin, cout = wc.shape
    return wc.reshape(kh * kw * cin, cout)


# ------------------------------- parameters ---------------------------------
def init_params(key):
    """Deterministic DCGAN-style init, PyTorch layouts: conv w ~ N(0,0.02), gamma ~ N(1,0.02)."""
    params = []
    for (cin, cout, k, _s, _p, has_bn) in LAYER_CFG:
        key, wk, gk = jax.random.split(key, 3)
        w = 0.02 * jax.random.normal(wk, (cin, cout, k, k), jnp.float32)
        if has_bn:
            gamma = 1.0 + 0.02 * jax.random.normal(gk, (cout,), jnp.float32)
            beta = jnp.zeros((cout,), jnp.float32)
        else:
            gamma = beta = None
        params.append((w, gamma, beta))
    return params


def prepare_params(params):
    """Hoisted weight preprocessing (flip / transpose / sub-kernel split / bf16 cast)."""
    res = _residues(2)
    prep = {}

    # Layer 1: 1x1 -> 3x3, stride 1.  Pad Cin 100 -> 128 so K = 9*128 is lane aligned.
    w1, g1, b1 = params[0]
    w1p = jnp.pad(w1, ((0, CIN_PAD - nz), (0, 0), (0, 0), (0, 0)))
    prep["w1"] = _convT_weight_to_matmul(w1p).astype(jnp.bfloat16)[None]     # (1,1152,256)
    prep["g1"], prep["b1"] = g1.reshape(1, -1), b1.reshape(1, -1)

    # Layer 2: 3x3 -> 7x7, stride 2 (full dilated im2col; see TODO in generator_forward).
    w2, g2, b2 = params[1]
    prep["w2"] = _convT_weight_to_matmul(w2).astype(jnp.bfloat16)[None]      # (1,2304,128)
    prep["g2"], prep["b2"] = g2.reshape(1, -1), b2.reshape(1, -1)

    # Layer 3: 7x7 -> 14x14, stride 2, sub-kernel decomposition (2x2 taps per residue).
    w3, g3, b3 = params[2]
    w3c = _convT_weight_to_conv(w3)                                          # (4,4,128,64)
    taps = _residue_taps(4, 2, 4 - 1 - 1)
    subs = []
    for rh, rw in res:
        ws = w3c[jnp.array(taps[rh])][:, jnp.array(taps[rw])]                # (2,2,128,64)
        subs.append(ws.reshape(-1, ws.shape[-1]))
    prep["w3"] = jnp.stack(subs, axis=0).astype(jnp.bfloat16)                # (4,512,64)
    prep["g3"], prep["b3"] = g3.reshape(1, -1), b3.reshape(1, -1)

    # Layer 4: 14x14 -> 28x28, stride 2, sub-kernel + transposed (lane-dense) GEMM.
    w4, _, _ = params[3]
    w4c = _convT_weight_to_conv(w4)                                          # (4,4,64,1)
    subs = []
    for rh, rw in res:
        ws = w4c[jnp.array(taps[rh])][:, jnp.array(taps[rw])]                # (2,2,64,1)
        subs.append(ws.reshape(-1, nc).T)                                    # (1,256)
    prep["w4T"] = jnp.stack(subs, axis=0).astype(jnp.bfloat16)               # (4,1,256)
    return prep


# ------------------------------ forward pass --------------------------------
def generator_forward(x_nchw, prep):
    n = x_nchw.shape[0]
    res = _residues(2)
    taps = _residue_taps(4, 2, 2)
    x = jnp.transpose(x_nchw, (0, 2, 3, 1)).astype(jnp.float32)              # (N,1,1,100)

    # ---- layer 1: ConvT(100->256, k3, s1, p0) + BN + ReLU : 1x1 -> 3x3 ----
    x = jnp.pad(x, ((0, 0), (0, 0), (0, 0), (0, CIN_PAD - nz)))              # lane-align K
    xd = _dilate_and_pad(x, 1, 2)                                            # (N,5,5,128)
    p1 = _im2col(xd, 3, 3).astype(jnp.bfloat16)                              # (9N,1152)
    y, _ = fused_convt_bn_relu([p1], prep["w1"], prep["g1"], prep["b1"])
    x = y[:9 * n].reshape(n, 3, 3, ngf * 4)

    # ---- layer 2: ConvT(256->128, k3, s2, p0) + BN + ReLU : 3x3 -> 7x7 ----
    # TODO(synk): k=3/s=2 sub-kernel split is uneven (2/1 taps per residue); this layer
    # keeps the full dilated im2col and spends ~2x extra MXU work on structural zeros.
    xd = _dilate_and_pad(x, 2, 2)                                            # (N,9,9,256)
    p2 = _im2col(xd, 3, 3).astype(jnp.bfloat16)                              # (49N,2304)
    y, _ = fused_convt_bn_relu([p2], prep["w2"], prep["g2"], prep["b2"])
    x = y[:49 * n].reshape(n, 7, 7, ngf * 2)

    # ---- layer 3: ConvT(128->64, k4, s2, p1) + BN + ReLU : 7x7 -> 14x14 ----
    xd = _dilate_and_pad(x, 2, 2)                                            # (N,17,17,128)
    blocks = [_subpixel_patches(xd, rh, rw, taps[rh], taps[rw], 2, 7, 7)
              .astype(jnp.bfloat16) for rh, rw in res]                       # 4 x (49N,512)
    y, mp = fused_convt_bn_relu(blocks, prep["w3"], prep["g3"], prep["b3"])
    x = jnp.zeros((n, 14, 14, ngf), jnp.float32)
    for idx, (rh, rw) in enumerate(res):
        part = y[idx * mp: idx * mp + 49 * n].reshape(n, 7, 7, ngf)
        x = x.at[:, rh::2, rw::2, :].set(part)

    # ---- layer 4: ConvT(64->1, k4, s2, p1) + Tanh : 14x14 -> 28x28 ----
    xd = _dilate_and_pad(x, 2, 2)                                            # (N,31,31,64)
    blocks = [_subpixel_patches(xd, rh, rw, taps[rh], taps[rw], 2, 14, 14)
              .astype(jnp.bfloat16).T for rh, rw in res]                     # 4 x (256,196N)
    out_rows = convt_tanh_lane_dense(blocks, prep["w4T"])                    # (4, 196N)
    y = jnp.zeros((n, 28, 28), jnp.float32)
    for idx, (rh, rw) in enumerate(res):
        y = y.at[:, rh::2, rw::2].set(out_rows[idx].reshape(n, 14, 14))

    # TODO(synk): BatchNorm running_mean/running_var buffer updates (train-mode side
    # effect) are not materialized and eval-mode BN (running stats) is not provided.
    return y[:, None, :, :]                                                  # (N, nc, 28, 28)


# -------------------------- pure-JAX reference (no Pallas) -------------------
def reference_forward(x_nchw, params):
    """Dilate+pad + full im2col + GEMM per layer, with the same bf16 input casts."""
    x = jnp.transpose(x_nchw, (0, 2, 3, 1)).astype(jnp.float32)
    for (cin, cout, k, s, p, has_bn), (w, gamma, beta) in zip(LAYER_CFG, params):
        xd = _dilate_and_pad(x, s, k - 1 - p)
        n, ho, wo = x.shape[0], xd.shape[1] - k + 1, xd.shape[2] - k + 1
        patches = _im2col(xd, k, k).astype(jnp.bfloat16)
        wm = _convT_weight_to_matmul(w).astype(jnp.bfloat16)
        y = jnp.dot(patches, wm, preferred_element_type=jnp.float32)
        if has_bn:
            mean = jnp.mean(y, axis=0, keepdims=True)
            var = jnp.mean(jnp.square(y - mean), axis=0, keepdims=True)
            y = (y - mean) * jax.lax.rsqrt(var + BN_EPS)
            y = jnp.maximum(y * gamma.reshape(1, -1) + beta.reshape(1, -1), 0.0)
        else:
            y = jnp.tanh(y)
        x = y.reshape(n, ho, wo, cout)
    return jnp.transpose(x, (0, 3, 1, 2))


# ---------------------------------- main -------------------------------------
if __name__ == "__main__":
    key = jax.random.PRNGKey(0)
    pkey, xkey = jax.random.split(key)
    params = init_params(pkey)
    prep = prepare_params(params)

    batch = 2
    x = jax.random.normal(xkey, (batch, nz, 1, 1), jnp.float32)  # latent z

    fwd = jax.jit(generator_forward)
    out = jax.block_until_ready(fwd(x, prep))

    assert out.shape == (batch, nc, 28, 28), out.shape
    assert bool(jnp.all(jnp.isfinite(out)))
    assert bool(jnp.all(jnp.abs(out) <= 1.0 + 1e-5))  # tanh range

    ref = jax.block_until_ready(jax.jit(reference_forward)(x, params))
    max_diff = float(jnp.max(jnp.abs(out - ref)))
    assert max_diff < 5e-2, f"mismatch vs pure-JAX reference: {max_diff}"

    print("KERNEL_OK")
</pallas_src>

<mosaic_0001>
module attributes {stable_mosaic.version = 11 : i64} {
  func.func @_fused_gemm_bn_relu_kernel(%arg0: i32, %arg1: i32, %arg2: memref<24x1152xbf16, #tpu.memory_space<vmem>>, %arg3: memref<1x1152x256xbf16, #tpu.memory_space<vmem>>, %arg4: memref<1x256xf32, #tpu.memory_space<vmem>>, %arg5: memref<1x256xf32, #tpu.memory_space<vmem>>, %arg6: memref<24x256xf32, #tpu.memory_space<vmem>>, %arg7: memref<1x256xf32, #tpu.memory_space<vmem>>, %arg8: memref<1x256xf32, #tpu.memory_space<vmem>>) attributes {dimension_semantics = [#tpu.dimension_semantics<arbitrary>, #tpu.dimension_semantics<arbitrary>], iteration_bounds = array<i64: 1, 1>, scalar_prefetch = 0 : i64, scratch_operands = 2 : i64, tpu.core_type = #tpu.core_type<tc>, window_params = [{transform_indices = @transform_0, window_bounds = array<i64: 24, 1152>}, {transform_indices = @transform_1, window_bounds = array<i64: 1, 1152, 256>}, {pipeline_mode = #tpu.pipeline_mode<synchronous>, transform_indices = @transform_2, window_bounds = array<i64: 1, 256>}, {pipeline_mode = #tpu.pipeline_mode<synchronous>, transform_indices = @transform_3, window_bounds = array<i64: 1, 256>}, {pipeline_mode = #tpu.pipeline_mode<synchronous>, transform_indices = @transform_4, window_bounds = array<i64: 24, 256>}]} {
    %c0_i32 = arith.constant 0 : i32
    %0 = arith.cmpi eq, %arg0, %c0_i32 : i32
    %c0_i32_0 = arith.constant 0 : i32
    %1 = arith.cmpi eq, %arg1, %c0_i32_0 : i32
    %2 = arith.andi %0, %1 : i1
    %3 = arith.extui %2 : i1 to i32
    %c0_i32_1 = arith.constant 0 : i32
    %4 = arith.cmpi ne, %3, %c0_i32_1 : i32
    scf.if %4 {
      %cst_20 = arith.constant 0.000000e+00 : f32
      %31 = vector.broadcast %cst_20 : f32 to vector<1x256xf32>
      %c0_21 = arith.constant 0 : index
      %c0_22 = arith.constant 0 : index
      %32 = vector.load %arg7[%c0_21, %c0_22] : memref<1x256xf32, #tpu.memory_space<vmem>>, vector<1x256xf32>
      tpu.vector_store %arg7[%c0_21, %c0_22], %31 {strides = array<i32>} : memref<1x256xf32, #tpu.memory_space<vmem>>, vector<1x256xf32>,
      %cst_23 = arith.constant 0.000000e+00 : f32
      %33 = vector.broadcast %cst_23 : f32 to vector<1x256xf32>
      %c0_24 = arith.constant 0 : index
      %c0_25 = arith.constant 0 : index
      %34 = vector.load %arg8[%c0_24, %c0_25] : memref<1x256xf32, #tpu.memory_space<vmem>>, vector<1x256xf32>
      tpu.vector_store %arg8[%c0_24, %c0_25], %33 {strides = array<i32>} : memref<1x256xf32, #tpu.memory_space<vmem>>, vector<1x256xf32>,
    } else {
    }
    %c0 = arith.constant 0 : index
    %c0_2 = arith.constant 0 : index
    %5 = vector.load %arg2[%c0, %c0_2] : memref<24x1152xbf16, #tpu.memory_space<vmem>>, vector<24x1152xbf16>
    %c0_3 = arith.constant 0 : index
    %c0_4 = arith.constant 0 : index
    %c0_5 = arith.constant 0 : index
    %6 = vector.load %arg3[%c0_3, %c0_4, %c0_5] : memref<1x1152x256xbf16, #tpu.memory_space<vmem>>, vector<1x1152x256xbf16>
    %7 = vector.shape_cast %6 : vector<1x1152x256xbf16> to vector<1152x256xbf16>
    %cst = arith.constant dense<0.000000e+00> : vector<24x256xf32>
    %8 = tpu.matmul %5, %7, %cst {dimension_numbers = #tpu.dot_dimension_numbers<[1], [0], [0], [1], [0, 0, 1, 1], [], []>} : vector<24x1152xbf16>, vector<1152x256xbf16>, vector<24x256xf32> -> vector<24x256xf32>
    %c0_6 = arith.constant 0 : index
    %c0_7 = arith.constant 0 : index
    %9 = vector.load %arg7[%c0_6, %c0_7] : memref<1x256xf32, #tpu.memory_space<vmem>>, vector<1x256xf32>
    %cst_8 = arith.constant dense<0.000000e+00> : vector<256xf32>
    %10 = vector.multi_reduction <add>, %8, %cst_8 [0] : vector<24x256xf32> to vector<256xf32>
    %11 = vector.shape_cast %10 : vector<256xf32> to vector<1x256xf32>
    %12 = arith.addf %9, %11 : vector<1x256xf32>
    %c0_9 = arith.constant 0 : index
    %c0_10 = arith.constant 0 : index
    %13 = vector.load %arg7[%c0_9, %c0_10] : memref<1x256xf32, #tpu.memory_space<vmem>>, vector<1x256xf32>
    tpu.vector_store %arg7[%c0_9, %c0_10], %12 {strides = array<i32>} : memref<1x256xf32, #tpu.memory_space<vmem>>, vector<1x256xf32>,
    %c0_11 = arith.constant 0 : index
    %c0_12 = arith.constant 0 : index
    %14 = vector.load %arg8[%c0_11, %c0_12] : memref<1x256xf32, #tpu.memory_space<vmem>>, vector<1x256xf32>
    %15 = arith.mulf %8, %8 : vector<24x256xf32>
    %cst_13 = arith.constant dense<0.000000e+00> : vector<256xf32>
    %16 = vector.multi_reduction <add>, %15, %cst_13 [0] : vector<24x256xf32> to vector<256xf32>
    %17 = vector.shape_cast %16 : vector<256xf32> to vector<1x256xf32>
    %18 = arith.addf %14, %17 : vector<1x256xf32>
    %c0_14 = arith.constant 0 : index
    %c0_15 = arith.constant 0 : index
    %19 = vector.load %arg8[%c0_14, %c0_15] : memref<1x256xf32, #tpu.memory_space<vmem>>, vector<1x256xf32>
    tpu.vector_store %arg8[%c0_14, %c0_15], %18 {strides = array<i32>} : memref<1x256xf32, #tpu.memory_space<vmem>>, vector<1x256xf32>,
    %c1_i32 = arith.constant 1 : i32
    %20 = arith.muli %arg0, %c1_i32 : i32
    %21 = arith.addi %20, %arg1 : i32
    %c24_i32 = arith.constant 24 : i32
    %22 = arith.muli %21, %c24_i32 : i32
    %23 = tpu.assume_multiple %22, 8 : i32
    %24 = arith.index_cast %23 : i32 to index
    %c0_16 = arith.constant 0 : index
    %25 = vector.load %arg6[%24, %c0_16] : memref<24x256xf32, #tpu.memory_space<vmem>>, vector<24x256xf32>
    tpu.vector_store %arg6[%24, %c0_16], %8 {strides = array<i32>} : memref<24x256xf32, #tpu.memory_space<vmem>>, vector<24x256xf32>,
    %c0_i32_17 = arith.constant 0 : i32
    %26 = arith.cmpi eq, %arg0, %c0_i32_17 : i32
    %c0_i32_18 = arith.constant 0 : i32
    %27 = arith.cmpi eq, %arg1, %c0_i32_18 : i32
    %28 = arith.andi %26, %27 : i1
    %29 = arith.extui %28 : i1 to i32
    %c0_i32_19 = arith.constant 0 : i32
    %30 = arith.cmpi ne, %29, %c0_i32_19 : i32
    scf.if %30 {
      %c0_20 = arith.constant 0 : index
      %c0_21 = arith.constant 0 : index
      %31 = vector.load %arg7[%c0_20, %c0_21] : memref<1x256xf32, #tpu.memory_space<vmem>>, vector<1x256xf32>
      %cst_22 = arith.constant 0.055555556 : f32
      %32 = vector.broadcast %cst_22 : f32 to vector<1x256xf32>
      %33 = arith.mulf %31, %32 : vector<1x256xf32>
      %c0_23 = arith.constant 0 : index
      %c0_24 = arith.constant 0 : index
      %34 = vector.load %arg8[%c0_23, %c0_24] : memref<1x256xf32, #tpu.memory_space<vmem>>, vector<1x256xf32>
      %cst_25 = arith.constant 0.055555556 : f32
      %35 = vector.broadcast %cst_25 : f32 to vector<1x256xf32>
      %36 = arith.mulf %34, %35 : vector<1x256xf32>
      %37 = arith.mulf %33, %33 : vector<1x256xf32>
      %38 = arith.subf %36, %37 : vector<1x256xf32>
      %c0_26 = arith.constant 0 : index
      %c0_27 = arith.constant 0 : index
      %39 = vector.load %arg4[%c0_26, %c0_27] : memref<1x256xf32, #tpu.memory_space<vmem>>, vector<1x256xf32>
      %cst_28 = arith.constant 9.99999974E-6 : f32
      %40 = vector.broadcast %cst_28 : f32 to vector<1x256xf32>
      %41 = arith.addf %38, %40 : vector<1x256xf32>
      %42 = math.rsqrt %41 : vector<1x256xf32>
      %43 = arith.mulf %39, %42 : vector<1x256xf32>
      %c0_29 = arith.constant 0 : index
      %c0_30 = arith.constant 0 : index
      %44 = vector.load %arg5[%c0_29, %c0_30] : memref<1x256xf32, #tpu.memory_space<vmem>>, vector<1x256xf32>
      %45 = arith.mulf %33, %43 : vector<1x256xf32>
      %46 = arith.subf %44, %45 : vector<1x256xf32>
      %c0_31 = arith.constant 0 : index
      %c0_32 = arith.constant 0 : index
      %47 = vector.load %arg6[%c0_31, %c0_32] : memref<24x256xf32, #tpu.memory_space<vmem>>, vector<24x256xf32>
      %48 = vector.broadcast %43 : vector<1x256xf32> to vector<24x256xf32>
      %49 = arith.mulf %47, %48 : vector<24x256xf32>
      %50 = vector.broadcast %46 : vector<1x256xf32> to vector<24x256xf32>
      %51 = arith.addf %49, %50 : vector<24x256xf32>
      %cst_33 = arith.constant 0.000000e+00 : f32
      %52 = vector.broadcast %cst_33 : f32 to vector<24x256xf32>
      %53 = arith.maximumf %51, %52 : vector<24x256xf32>
      %c0_34 = arith.constant 0 : index
      %c0_35 = arith.constant 0 : index
      %54 = vector.load %arg6[%c0_34, %c0_35] : memref<24x256xf32, #tpu.memory_space<vmem>>, vector<24x256xf32>
      tpu.vector_store %arg6[%c0_34, %c0_35], %53 {strides = array<i32>} : memref<24x256xf32, #tpu.memory_space<vmem>>, vector<24x256xf32>,
    } else {
    }
    return
  }
  func.func @transform_0(%arg0: i32, %arg1: i32) -> (i32, i32) {
    %c1_i32 = arith.constant 1 : i32
    %0 = arith.muli %arg0, %c1_i32 : i32
    %1 = arith.addi %0, %arg1 : i32
    %c0_i32 = arith.constant 0 : i32
    %c0_i32_0 = arith.constant 0 : i32
    return %1, %c0_i32 : i32, i32
  }
  func.func @transform_1(%arg0: i32, %arg1: i32) -> (i32, i32, i32) {
    %c0_i32 = arith.constant 0 : i32
    %c0_i32_0 = arith.constant 0 : i32
    %c0_i32_1 = arith.constant 0 : i32
    return %arg0, %c0_i32, %c0_i32_0 : i32, i32, i32
  }
  func.func @transform_2(%arg0: i32, %arg1: i32) -> (i32, i32) {
    %c0_i32 = arith.constant 0 : i32
    %c0_i32_0 = arith.constant 0 : i32
    %c0_i32_1 = arith.constant 0 : i32
    return %c0_i32, %c0_i32_0 : i32, i32
  }
  func.func @transform_3(%arg0: i32, %arg1: i32) -> (i32, i32) {
    %c0_i32 = arith.constant 0 : i32
    %c0_i32_0 = arith.constant 0 : i32
    %c0_i32_1 = arith.constant 0 : i32
    return %c0_i32, %c0_i32_0 : i32, i32
  }
  func.func @transform_4(%arg0: i32, %arg1: i32) -> (i32, i32) {
    %c0_i32 = arith.constant 0 : i32
    %c0_i32_0 = arith.constant 0 : i32
    %c0_i32_1 = arith.constant 0 : i32
    return %c0_i32, %c0_i32_0 : i32, i32
  }
}

module attributes {stable_mosaic.version = 11 : i64} {
  func.func @_fused_gemm_bn_relu_kernel(%arg0: i32, %arg1: i32, %arg2: memref<104x2304xbf16, #tpu.memory_space<vmem>>, %arg3: memref<1x2304x128xbf16, #tpu.memory_space<vmem>>, %arg4: memref<1x128xf32, #tpu.memory_space<vmem>>, %arg5: memref<1x128xf32, #tpu.memory_space<vmem>>, %arg6: memref<104x128xf32, #tpu.memory_space<vmem>>, %arg7: memref<1x128xf32, #tpu.memory_space<vmem>>, %arg8: memref<1x128xf32, #tpu.memory_space<vmem>>) attributes {dimension_semantics = [#tpu.dimension_semantics<arbitrary>, #tpu.dimension_semantics<arbitrary>], iteration_bounds = array<i64: 1, 1>, scalar_prefetch = 0 : i64, scratch_operands = 2 : i64, tpu.core_type = #tpu.core_type<tc>, window_params = [{transform_indices = @transform_0, window_bounds = array<i64: 104, 2304>}, {transform_indices = @transform_1, window_bounds = array<i64: 1, 2304, 128>}, {pipeline_mode = #tpu.pipeline_mode<synchronous>, transform_indices = @transform_2, window_bounds = array<i64: 1, 128>}, {pipeline_mode = #tpu.pipeline_mode<synchronous>, transform_indices = @transform_3, window_bounds = array<i64: 1, 128>}, {pipeline_mode = #tpu.pipeline_mode<synchronous>, transform_indices = @transform_4, window_bounds = array<i64: 104, 128>}]} {
    %c0_i32 = arith.constant 0 : i32
    %0 = arith.cmpi eq, %arg0, %c0_i32 : i32
    %c0_i32_0 = arith.constant 0 : i32
    %1 = arith.cmpi eq, %arg1, %c0_i32_0 : i32
    %2 = arith.andi %0, %1 : i1
    %3 = arith.extui %2 : i1 to i32
    %c0_i32_1 = arith.constant 0 : i32
    %4 = arith.cmpi ne, %3, %c0_i32_1 : i32
    scf.if %4 {
      %cst_20 = arith.constant 0.000000e+00 : f32
      %31 = vector.broadcast %cst_20 : f32 to vector<1x128xf32>
      %c0_21 = arith.constant 0 : index
      %c0_22 = arith.constant 0 : index
      %32 = vector.load %arg7[%c0_21, %c0_22] : memref<1x128xf32, #tpu.memory_space<vmem>>, vector<1x128xf32>
      tpu.vector_store %arg7[%c0_21, %c0_22], %31 {strides = array<i32>} : memref<1x128xf32, #tpu.memory_space<vmem>>, vector<1x128xf32>,
      %cst_23 = arith.constant 0.000000e+00 : f32
      %33 = vector.broadcast %cst_23 : f32 to vector<1x128xf32>
      %c0_24 = arith.constant 0 : index
      %c0_25 = arith.constant 0 : index
      %34 = vector.load %arg8[%c0_24, %c0_25] : memref<1x128xf32, #tpu.memory_space<vmem>>, vector<1x128xf32>
      tpu.vector_store %arg8[%c0_24, %c0_25], %33 {strides = array<i32>} : memref<1x128xf32, #tpu.memory_space<vmem>>, vector<1x128xf32>,
    } else {
    }
    %c0 = arith.constant 0 : index
    %c0_2 = arith.constant 0 : index
    %5 = vector.load %arg2[%c0, %c0_2] : memref<104x2304xbf16, #tpu.memory_space<vmem>>, vector<104x2304xbf16>
    %c0_3 = arith.constant 0 : index
    %c0_4 = arith.constant 0 : index
    %c0_5 = arith.constant 0 : index
    %6 = vector.load %arg3[%c0_3, %c0_4, %c0_5] : memref<1x2304x128xbf16, #tpu.memory_space<vmem>>, vector<1x2304x128xbf16>
    %7 = vector.shape_cast %6 : vector<1x2304x128xbf16> to vector<2304x128xbf16>
    %cst = arith.constant dense<0.000000e+00> : vector<104x128xf32>
    %8 = tpu.matmul %5, %7, %cst {dimension_numbers = #tpu.dot_dimension_numbers<[1], [0], [0], [1], [0, 0, 1, 1], [], []>} : vector<104x2304xbf16>, vector<2304x128xbf16>, vector<104x128xf32> -> vector<104x128xf32>
    %c0_6 = arith.constant 0 : index
    %c0_7 = arith.constant 0 : index
    %9 = vector.load %arg7[%c0_6, %c0_7] : memref<1x128xf32, #tpu.memory_space<vmem>>, vector<1x128xf32>
    %cst_8 = arith.constant dense<0.000000e+00> : vector<128xf32>
    %10 = vector.multi_reduction <add>, %8, %cst_8 [0] : vector<104x128xf32> to vector<128xf32>
    %11 = vector.shape_cast %10 : vector<128xf32> to vector<1x128xf32>
    %12 = arith.addf %9, %11 : vector<1x128xf32>
    %c0_9 = arith.constant 0 : index
    %c0_10 = arith.constant 0 : index
    %13 = vector.load %arg7[%c0_9, %c0_10] : memref<1x128xf32, #tpu.memory_space<vmem>>, vector<1x128xf32>
    tpu.vector_store %arg7[%c0_9, %c0_10], %12 {strides = array<i32>} : memref<1x128xf32, #tpu.memory_space<vmem>>, vector<1x128xf32>,
    %c0_11 = arith.constant 0 : index
    %c0_12 = arith.constant 0 : index
    %14 = vector.load %arg8[%c0_11, %c0_12] : memref<1x128xf32, #tpu.memory_space<vmem>>, vector<1x128xf32>
    %15 = arith.mulf %8, %8 : vector<104x128xf32>
    %cst_13 = arith.constant dense<0.000000e+00> : vector<128xf32>
    %16 = vector.multi_reduction <add>, %15, %cst_13 [0] : vector<104x128xf32> to vector<128xf32>
    %17 = vector.shape_cast %16 : vector<128xf32> to vector<1x128xf32>
    %18 = arith.addf %14, %17 : vector<1x128xf32>
    %c0_14 = arith.constant 0 : index
    %c0_15 = arith.constant 0 : index
    %19 = vector.load %arg8[%c0_14, %c0_15] : memref<1x128xf32, #tpu.memory_space<vmem>>, vector<1x128xf32>
    tpu.vector_store %arg8[%c0_14, %c0_15], %18 {strides = array<i32>} : memref<1x128xf32, #tpu.memory_space<vmem>>, vector<1x128xf32>,
    %c1_i32 = arith.constant 1 : i32
    %20 = arith.muli %arg0, %c1_i32 : i32
    %21 = arith.addi %20, %arg1 : i32
    %c104_i32 = arith.constant 104 : i32
    %22 = arith.muli %21, %c104_i32 : i32
    %23 = tpu.assume_multiple %22, 8 : i32
    %24 = arith.index_cast %23 : i32 to index
    %c0_16 = arith.constant 0 : index
    %25 = vector.load %arg6[%24, %c0_16] : memref<104x128xf32, #tpu.memory_space<vmem>>, vector<104x128xf32>
    tpu.vector_store %arg6[%24, %c0_16], %8 {strides = array<i32>} : memref<104x128xf32, #tpu.memory_space<vmem>>, vector<104x128xf32>,
    %c0_i32_17 = arith.constant 0 : i32
    %26 = arith.cmpi eq, %arg0, %c0_i32_17 : i32
    %c0_i32_18 = arith.constant 0 : i32
    %27 = arith.cmpi eq, %arg1, %c0_i32_18 : i32
    %28 = arith.andi %26, %27 : i1
    %29 = arith.extui %28 : i1 to i32
    %c0_i32_19 = arith.constant 0 : i32
    %30 = arith.cmpi ne, %29, %c0_i32_19 : i32
    scf.if %30 {
      %c0_20 = arith.constant 0 : index
      %c0_21 = arith.constant 0 : index
      %31 = vector.load %arg7[%c0_20, %c0_21] : memref<1x128xf32, #tpu.memory_space<vmem>>, vector<1x128xf32>
      %cst_22 = arith.constant 0.0102040814 : f32
      %32 = vector.broadcast %cst_22 : f32 to vector<1x128xf32>
      %33 = arith.mulf %31, %32 : vector<1x128xf32>
      %c0_23 = arith.constant 0 : index
      %c0_24 = arith.constant 0 : index
      %34 = vector.load %arg8[%c0_23, %c0_24] : memref<1x128xf32, #tpu.memory_space<vmem>>, vector<1x128xf32>
      %cst_25 = arith.constant 0.0102040814 : f32
      %35 = vector.broadcast %cst_25 : f32 to vector<1x128xf32>
      %36 = arith.mulf %34, %35 : vector<1x128xf32>
      %37 = arith.mulf %33, %33 : vector<1x128xf32>
      %38 = arith.subf %36, %37 : vector<1x128xf32>
      %c0_26 = arith.constant 0 : index
      %c0_27 = arith.constant 0 : index
      %39 = vector.load %arg4[%c0_26, %c0_27] : memref<1x128xf32, #tpu.memory_space<vmem>>, vector<1x128xf32>
      %cst_28 = arith.constant 9.99999974E-6 : f32
      %40 = vector.broadcast %cst_28 : f32 to vector<1x128xf32>
      %41 = arith.addf %38, %40 : vector<1x128xf32>
      %42 = math.rsqrt %41 : vector<1x128xf32>
      %43 = arith.mulf %39, %42 : vector<1x128xf32>
      %c0_29 = arith.constant 0 : index
      %c0_30 = arith.constant 0 : index
      %44 = vector.load %arg5[%c0_29, %c0_30] : memref<1x128xf32, #tpu.memory_space<vmem>>, vector<1x128xf32>
      %45 = arith.mulf %33, %43 : vector<1x128xf32>
      %46 = arith.subf %44, %45 : vector<1x128xf32>
      %c0_31 = arith.constant 0 : index
      %c0_32 = arith.constant 0 : index
      %47 = vector.load %arg6[%c0_31, %c0_32] : memref<104x128xf32, #tpu.memory_space<vmem>>, vector<104x128xf32>
      %48 = vector.broadcast %43 : vector<1x128xf32> to vector<104x128xf32>
      %49 = arith.mulf %47, %48 : vector<104x128xf32>
      %50 = vector.broadcast %46 : vector<1x128xf32> to vector<104x128xf32>
      %51 = arith.addf %49, %50 : vector<104x128xf32>
      %cst_33 = arith.constant 0.000000e+00 : f32
      %52 = vector.broadcast %cst_33 : f32 to vector<104x128xf32>
      %53 = arith.maximumf %51, %52 : vector<104x128xf32>
      %c0_34 = arith.constant 0 : index
      %c0_35 = arith.constant 0 : index
      %54 = vector.load %arg6[%c0_34, %c0_35] : memref<104x128xf32, #tpu.memory_space<vmem>>, vector<104x128xf32>
      tpu.vector_store %arg6[%c0_34, %c0_35], %53 {strides = array<i32>} : memref<104x128xf32, #tpu.memory_space<vmem>>, vector<104x128xf32>,
    } else {
    }
    return
  }
  func.func @transform_0(%arg0: i32, %arg1: i32) -> (i32, i32) {
    %c1_i32 = arith.constant 1 : i32
    %0 = arith.muli %arg0, %c1_i32 : i32
    %1 = arith.addi %0, %arg1 : i32
    %c0_i32 = arith.constant 0 : i32
    %c0_i32_0 = arith.constant 0 : i32
    return %1, %c0_i32 : i32, i32
  }
  func.func @transform_1(%arg0: i32, %arg1: i32) -> (i32, i32, i32) {
    %c0_i32 = arith.constant 0 : i32
    %c0_i32_0 = arith.constant 0 : i32
    %c0_i32_1 = arith.constant 0 : i32
    return %arg0, %c0_i32, %c0_i32_0 : i32, i32, i32
  }
  func.func @transform_2(%arg0: i32, %arg1: i32) -> (i32, i32) {
    %c0_i32 = arith.constant 0 : i32
    %c0_i32_0 = arith.constant 0 : i32
    %c0_i32_1 = arith.constant 0 : i32
    return %c0_i32, %c0_i32_0 : i32, i32
  }
  func.func @transform_3(%arg0: i32, %arg1: i32) -> (i32, i32) {
    %c0_i32 = arith.constant 0 : i32
    %c0_i32_0 = arith.constant 0 : i32
    %c0_i32_1 = arith.constant 0 : i32
    return %c0_i32, %c0_i32_0 : i32, i32
  }
  func.func @transform_4(%arg0: i32, %arg1: i32) -> (i32, i32) {
    %c0_i32 = arith.constant 0 : i32
    %c0_i32_0 = arith.constant 0 : i32
    %c0_i32_1 = arith.constant 0 : i32
    return %c0_i32, %c0_i32_0 : i32, i32
  }
}

module attributes {stable_mosaic.version = 11 : i64} {
  func.func @_fused_gemm_bn_relu_kernel(%arg0: i32, %arg1: i32, %arg2: memref<104x512xbf16, #tpu.memory_space<vmem>>, %arg3: memref<1x512x64xbf16, #tpu.memory_space<vmem>>, %arg4: memref<1x64xf32, #tpu.memory_space<vmem>>, %arg5: memref<1x64xf32, #tpu.memory_space<vmem>>, %arg6: memref<416x64xf32, #tpu.memory_space<vmem>>, %arg7: memref<1x64xf32, #tpu.memory_space<vmem>>, %arg8: memref<1x64xf32, #tpu.memory_space<vmem>>) attributes {dimension_semantics = [#tpu.dimension_semantics<arbitrary>, #tpu.dimension_semantics<arbitrary>], iteration_bounds = array<i64: 4, 1>, scalar_prefetch = 0 : i64, scratch_operands = 2 : i64, tpu.core_type = #tpu.core_type<tc>, window_params = [{transform_indices = @transform_0, window_bounds = array<i64: 104, 512>}, {transform_indices = @transform_1, window_bounds = array<i64: 1, 512, 64>}, {pipeline_mode = #tpu.pipeline_mode<synchronous>, transform_indices = @transform_2, window_bounds = array<i64: 1, 64>}, {pipeline_mode = #tpu.pipeline_mode<synchronous>, transform_indices = @transform_3, window_bounds = array<i64: 1, 64>}, {pipeline_mode = #tpu.pipeline_mode<synchronous>, transform_indices = @transform_4, window_bounds = array<i64: 416, 64>}]} {
    %c0_i32 = arith.constant 0 : i32
    %0 = arith.cmpi eq, %arg0, %c0_i32 : i32
    %c0_i32_0 = arith.constant 0 : i32
    %1 = arith.cmpi eq, %arg1, %c0_i32_0 : i32
    %2 = arith.andi %0, %1 : i1
    %3 = arith.extui %2 : i1 to i32
    %c0_i32_1 = arith.constant 0 : i32
    %4 = arith.cmpi ne, %3, %c0_i32_1 : i32
    scf.if %4 {
      %cst_19 = arith.constant 0.000000e+00 : f32
      %31 = vector.broadcast %cst_19 : f32 to vector<1x64xf32>
      %c0_20 = arith.constant 0 : index
      %c0_21 = arith.constant 0 : index
      %32 = vector.load %arg7[%c0_20, %c0_21] : memref<1x64xf32, #tpu.memory_space<vmem>>, vector<1x64xf32>
      tpu.vector_store %arg7[%c0_20, %c0_21], %31 {strides = array<i32>} : memref<1x64xf32, #tpu.memory_space<vmem>>, vector<1x64xf32>,
      %cst_22 = arith.constant 0.000000e+00 : f32
      %33 = vector.broadcast %cst_22 : f32 to vector<1x64xf32>
      %c0_23 = arith.constant 0 : index
      %c0_24 = arith.constant 0 : index
      %34 = vector.load %arg8[%c0_23, %c0_24] : memref<1x64xf32, #tpu.memory_space<vmem>>, vector<1x64xf32>
      tpu.vector_store %arg8[%c0_23, %c0_24], %33 {strides = array<i32>} : memref<1x64xf32, #tpu.memory_space<vmem>>, vector<1x64xf32>,
    } else {
    }
    %c0 = arith.constant 0 : index
    %c0_2 = arith.constant 0 : index
    %5 = vector.load %arg2[%c0, %c0_2] : memref<104x512xbf16, #tpu.memory_space<vmem>>, vector<104x512xbf16>
    %c0_3 = arith.constant 0 : index
    %c0_4 = arith.constant 0 : index
    %c0_5 = arith.constant 0 : index
    %6 = vector.load %arg3[%c0_3, %c0_4, %c0_5] : memref<1x512x64xbf16, #tpu.memory_space<vmem>>, vector<1x512x64xbf16>
    %7 = vector.shape_cast %6 : vector<1x512x64xbf16> to vector<512x64xbf16>
    %cst = arith.constant dense<0.000000e+00> : vector<104x64xf32>
    %8 = tpu.matmul %5, %7, %cst {dimension_numbers = #tpu.dot_dimension_numbers<[1], [0], [0], [1], [0, 0, 1, 1], [], []>} : vector<104x512xbf16>, vector<512x64xbf16>, vector<104x64xf32> -> vector<104x64xf32>
    %c0_6 = arith.constant 0 : index
    %c0_7 = arith.constant 0 : index
    %9 = vector.load %arg7[%c0_6, %c0_7] : memref<1x64xf32, #tpu.memory_space<vmem>>, vector<1x64xf32>
    %cst_8 = arith.constant dense<0.000000e+00> : vector<64xf32>
    %10 = vector.multi_reduction <add>, %8, %cst_8 [0] : vector<104x64xf32> to vector<64xf32>
    %11 = vector.shape_cast %10 : vector<64xf32> to vector<1x64xf32>
    %12 = arith.addf %9, %11 : vector<1x64xf32>
    %c0_9 = arith.constant 0 : index
    %c0_10 = arith.constant 0 : index
    %13 = vector.load %arg7[%c0_9, %c0_10] : memref<1x64xf32, #tpu.memory_space<vmem>>, vector<1x64xf32>
    tpu.vector_store %arg7[%c0_9, %c0_10], %12 {strides = array<i32>} : memref<1x64xf32, #tpu.memory_space<vmem>>, vector<1x64xf32>,
    %c0_11 = arith.constant 0 : index
    %c0_12 = arith.constant 0 : index
    %14 = vector.load %arg8[%c0_11, %c0_12] : memref<1x64xf32, #tpu.memory_space<vmem>>, vector<1x64xf32>
    %15 = arith.mulf %8, %8 : vector<104x64xf32>
    %cst_13 = arith.constant dense<0.000000e+00> : vector<64xf32>
    %16 = vector.multi_reduction <add>, %15, %cst_13 [0] : vector<104x64xf32> to vector<64xf32>
    %17 = vector.shape_cast %16 : vector<64xf32> to vector<1x64xf32>
    %18 = arith.addf %14, %17 : vector<1x64xf32>
    %c0_14 = arith.constant 0 : index
    %c0_15 = arith.constant 0 : index
    %19 = vector.load %arg8[%c0_14, %c0_15] : memref<1x64xf32, #tpu.memory_space<vmem>>, vector<1x64xf32>
    tpu.vector_store %arg8[%c0_14, %c0_15], %18 {strides = array<i32>} : memref<1x64xf32, #tpu.memory_space<vmem>>, vector<1x64xf32>,
    %c1_i32 = arith.constant 1 : i32
    %20 = arith.muli %arg0, %c1_i32 : i32
    %21 = arith.addi %20, %arg1 : i32
    %c104_i32 = arith.constant 104 : i32
    %22 = arith.muli %21, %c104_i32 : i32
    %23 = tpu.assume_multiple %22, 8 : i32
    %24 = arith.index_cast %23 : i32 to index
    %c0_16 = arith.constant 0 : index
    %25 = vector.load %arg6[%24, %c0_16] : memref<416x64xf32, #tpu.memory_space<vmem>>, vector<104x64xf32>
    tpu.vector_store %arg6[%24, %c0_16], %8 {strides = array<i32>} : memref<416x64xf32, #tpu.memory_space<vmem>>, vector<104x64xf32>,
    %c3_i32 = arith.constant 3 : i32
    %26 = arith.cmpi eq, %arg0, %c3_i32 : i32
    %c0_i32_17 = arith.constant 0 : i32
    %27 = arith.cmpi eq, %arg1, %c0_i32_17 : i32
    %28 = arith.andi %26, %27 : i1
    %29 = arith.extui %28 : i1 to i32
    %c0_i32_18 = arith.constant 0 : i32
    %30 = arith.cmpi ne, %29, %c0_i32_18 : i32
    scf.if %30 {
      %c0_19 = arith.constant 0 : index
      %c0_20 = arith.constant 0 : index
      %31 = vector.load %arg7[%c0_19, %c0_20] : memref<1x64xf32, #tpu.memory_space<vmem>>, vector<1x64xf32>
      %cst_21 = arith.constant 0.00255102036 : f32
      %32 = vector.broadcast %cst_21 : f32 to vector<1x64xf32>
      %33 = arith.mulf %31, %32 : vector<1x64xf32>
      %c0_22 = arith.constant 0 : index
      %c0_23 = arith.constant 0 : index
      %34 = vector.load %arg8[%c0_22, %c0_23] : memref<1x64xf32, #tpu.memory_space<vmem>>, vector<1x64xf32>
      %cst_24 = arith.constant 0.00255102036 : f32
      %35 = vector.broadcast %cst_24 : f32 to vector<1x64xf32>
      %36 = arith.mulf %34, %35 : vector<1x64xf32>
      %37 = arith.mulf %33, %33 : vector<1x64xf32>
      %38 = arith.subf %36, %37 : vector<1x64xf32>
      %c0_25 = arith.constant 0 : index
      %c0_26 = arith.constant 0 : index
      %39 = vector.load %arg4[%c0_25, %c0_26] : memref<1x64xf32, #tpu.memory_space<vmem>>, vector<1x64xf32>
      %cst_27 = arith.constant 9.99999974E-6 : f32
      %40 = vector.broadcast %cst_27 : f32 to vector<1x64xf32>
      %41 = arith.addf %38, %40 : vector<1x64xf32>
      %42 = math.rsqrt %41 : vector<1x64xf32>
      %43 = arith.mulf %39, %42 : vector<1x64xf32>
      %c0_28 = arith.constant 0 : index
      %c0_29 = arith.constant 0 : index
      %44 = vector.load %arg5[%c0_28, %c0_29] : memref<1x64xf32, #tpu.memory_space<vmem>>, vector<1x64xf32>
      %45 = arith.mulf %33, %43 : vector<1x64xf32>
      %46 = arith.subf %44, %45 : vector<1x64xf32>
      %c0_30 = arith.constant 0 : index
      %c0_31 = arith.constant 0 : index
      %47 = vector.load %arg6[%c0_30, %c0_31] : memref<416x64xf32, #tpu.memory_space<vmem>>, vector<416x64xf32>
      %48 = vector.broadcast %43 : vector<1x64xf32> to vector<416x64xf32>
      %49 = arith.mulf %47, %48 : vector<416x64xf32>
      %50 = vector.broadcast %46 : vector<1x64xf32> to vector<416x64xf32>
      %51 = arith.addf %49, %50 : vector<416x64xf32>
      %cst_32 = arith.constant 0.000000e+00 : f32
      %52 = vector.broadcast %cst_32 : f32 to vector<416x64xf32>
      %53 = arith.maximumf %51, %52 : vector<416x64xf32>
      %c0_33 = arith.constant 0 : index
      %c0_34 = arith.constant 0 : index
      %54 = vector.load %arg6[%c0_33, %c0_34] : memref<416x64xf32, #tpu.memory_space<vmem>>, vector<416x64xf32>
      tpu.vector_store %arg6[%c0_33, %c0_34], %53 {strides = array<i32>} : memref<416x64xf32, #tpu.memory_space<vmem>>, vector<416x64xf32>,
    } else {
    }
    return
  }
  func.func @transform_0(%arg0: i32, %arg1: i32) -> (i32, i32) {
    %c1_i32 = arith.constant 1 : i32
    %0 = arith.muli %arg0, %c1_i32 : i32
    %1 = arith.addi %0, %arg1 : i32
    %c0_i32 = arith.constant 0 : i32
    %c0_i32_0 = arith.constant 0 : i32
    return %1, %c0_i32 : i32, i32
  }
  func.func @transform_1(%arg0: i32, %arg1: i32) -> (i32, i32, i32) {
    %c0_i32 = arith.constant 0 : i32
    %c0_i32_0 = arith.constant 0 : i32
    %c0_i32_1 = arith.constant 0 : i32
    return %arg0, %c0_i32, %c0_i32_0 : i32, i32, i32
  }
  func.func @transform_2(%arg0: i32, %arg1: i32) -> (i32, i32) {
    %c0_i32 = arith.constant 0 : i32
    %c0_i32_0 = arith.constant 0 : i32
    %c0_i32_1 = arith.constant 0 : i32
    return %c0_i32, %c0_i32_0 : i32, i32
  }
  func.func @transform_3(%arg0: i32, %arg1: i32) -> (i32, i32) {
    %c0_i32 = arith.constant 0 : i32
    %c0_i32_0 = arith.constant 0 : i32
    %c0_i32_1 = arith.constant 0 : i32
    return %c0_i32, %c0_i32_0 : i32, i32
  }
  func.func @transform_4(%arg0: i32, %arg1: i32) -> (i32, i32) {
    %c0_i32 = arith.constant 0 : i32
    %c0_i32_0 = arith.constant 0 : i32
    %c0_i32_1 = arith.constant 0 : i32
    return %c0_i32, %c0_i32_0 : i32, i32
  }
}

module attributes {stable_mosaic.version = 11 : i64} {
  func.func @_gemm_tanh_kernel(%arg0: i32, %arg1: i32, %arg2: memref<1x256x512xbf16, #tpu.memory_space<vmem>>, %arg3: memref<1x1x256xbf16, #tpu.memory_space<vmem>>, %arg4: memref<1x1x512xf32, #tpu.memory_space<vmem>>) attributes {dimension_semantics = [#tpu.dimension_semantics<parallel>, #tpu.dimension_semantics<parallel>], iteration_bounds = array<i64: 4, 1>, scalar_prefetch = 0 : i64, scratch_operands = 0 : i64, tpu.core_type = #tpu.core_type<tc>, window_params = [{transform_indices = @transform_0, window_bounds = array<i64: 1, 256, 512>}, {transform_indices = @transform_1, window_bounds = array<i64: 1, 1, 256>}, {transform_indices = @transform_2, window_bounds = array<i64: 1, 1, 512>}]} {
    %c0 = arith.constant 0 : index
    %c0_0 = arith.constant 0 : index
    %c0_1 = arith.constant 0 : index
    %0 = vector.load %arg3[%c0, %c0_0, %c0_1] : memref<1x1x256xbf16, #tpu.memory_space<vmem>>, vector<1x1x256xbf16>
    %1 = vector.shape_cast %0 : vector<1x1x256xbf16> to vector<1x256xbf16>
    %c0_2 = arith.constant 0 : index
    %c0_3 = arith.constant 0 : index
    %c0_4 = arith.constant 0 : index
    %2 = vector.load %arg2[%c0_2, %c0_3, %c0_4] : memref<1x256x512xbf16, #tpu.memory_space<vmem>>, vector<1x256x512xbf16>
    %3 = vector.shape_cast %2 : vector<1x256x512xbf16> to vector<256x512xbf16>
    %cst = arith.constant dense<0.000000e+00> : vector<1x512xf32>
    %4 = tpu.matmul %1, %3, %cst {dimension_numbers = #tpu.dot_dimension_numbers<[1], [0], [0], [1], [0, 0, 1, 1], [], []>} : vector<1x256xbf16>, vector<256x512xbf16>, vector<1x512xf32> -> vector<1x512xf32>
    %5 = math.tanh %4 : vector<1x512xf32>
    %6 = vector.shape_cast %5 : vector<1x512xf32> to vector<1x1x512xf32>
    %c0_5 = arith.constant 0 : index
    %c0_6 = arith.constant 0 : index
    %c0_7 = arith.constant 0 : index
    %7 = vector.load %arg4[%c0_5, %c0_6, %c0_7] : memref<1x1x512xf32, #tpu.memory_space<vmem>>, vector<1x1x512xf32>
    tpu.vector_store %arg4[%c0_5, %c0_6, %c0_7], %6 {strides = array<i32>} : memref<1x1x512xf32, #tpu.memory_space<vmem>>, vector<1x1x512xf32>,
    return
  }
  func.func @transform_0(%arg0: i32, %arg1: i32) -> (i32, i32, i32) {
    %c0_i32 = arith.constant 0 : i32
    %c0_i32_0 = arith.constant 0 : i32
    return %arg0, %c0_i32, %arg1 : i32, i32, i32
  }
  func.func @transform_1(%arg0: i32, %arg1: i32) -> (i32, i32, i32) {
    %c0_i32 = arith.constant 0 : i32
    %c0_i32_0 = arith.constant 0 : i32
    %c0_i32_1 = arith.constant 0 : i32
    return %arg0, %c0_i32, %c0_i32_0 : i32, i32, i32
  }
  func.func @transform_2(%arg0: i32, %arg1: i32) -> (i32, i32, i32) {
    %c0_i32 = arith.constant 0 : i32
    %c0_i32_0 = arith.constant 0 : i32
    return %arg0, %c0_i32, %arg1 : i32, i32, i32
  }
}

</mosaic_0001>

<bundles_post_ra>
// kernel: generator_forward.4
= control target key start
LH: loop header
LB: loop body
LE: loop exit
PB: predicated region body
PF: predicated region fallthrough
CT: control target
= control target key end

     0   :  { %vm1355_vm1 = vcmask 1040384   ;;  %s3374_s1 = inlined_call_operand.vmem [shape: bf16[1,1152,256], index: 1, kind: input, shape index: {}]   ;;  %s3375_s0 = inlined_call_operand.vmem [shape: bf16[24,1152], index: 0, kind: input, shape index: {}]   ;;  %s3376_s2 = inlined_call_operand.vmem [shape: f32[1,256], index: 2, kind: input, shape index: {}]   ;;  %s3377_s3 = inlined_call_operand.vmem [shape: f32[1,256], index: 3, kind: input, shape index: {}]   ;;  %s3378_s4 = inlined_call_operand.vmem [shape: f32[24,256], index: 4, kind: output, shape index: {}]  }
   0x1   :  { %v1577_v0 = vld [vmem:[%s3374_s1 + $0x70] sm:$0xf]  ;;  %v2119_v1 = vld [vmem:[%s3374_s1 + $0x74] sm:$0xf0]  ;;  %v1569_v11 = vld [vmem:[%s3374_s1 + $0x60] sm:$0xf] }
   0x2   :  { %v1641_v2 = vld [vmem:[%s3374_s1 + $0xf0] sm:$0xf]  ;;  %v1578_v3 = vor.u32 %v2119_v1, %v1577_v0  ;;  %v2135_v4 = vld [vmem:[%s3374_s1 + $0xf4] sm:$0xf0]  ;;  %v2117_v13 = vld [vmem:[%s3374_s1 + $0x64] sm:$0xf0] }
   0x3   :  { %v1705_v5 = vld [vmem:[%s3374_s1 + $0x170] sm:$0xf]  ;;  %v2151_v6 = vld [vmem:[%s3374_s1 + $0x174] sm:$0xf0]  ;;  %v1642_v7 = vor.u32 %v2135_v4, %v1641_v2  ;;  %v1633_v14 = vld [vmem:[%s3374_s1 + $0xe0] sm:$0xf]  ;;  %v1570_v16 = vor.u32 %v2117_v13, %v1569_v11 }
   0x4   :  { %v1706_v8 = vor.u32 %v2151_v6, %v1705_v5  ;;  %v1769_v9 = vld [vmem:[%s3374_s1 + $0x1f0] sm:$0xf]  ;;  %v2167_v10 = vld [vmem:[%s3374_s1 + $0x1f4] sm:$0xf0]  ;;  %1011 = vmatpush.bf16.msra.mxu0 %v1578_v3  ;;  %v2133_v15 = vld [vmem:[%s3374_s1 + $0xe4] sm:$0xf0] }
   0x5   :  { %v1770_v12 = vor.u32 %v2167_v10, %v1769_v9  ;;  %1029 = vmatpush.bf16.msra.mxu1 %v1642_v7  ;;  %v1634_v17 = vor.u32 %v2133_v15, %v1633_v14  ;;  %v1697_v18 = vld [vmem:[%s3374_s1 + $0x160] sm:$0xf]  ;;  %v2149_v19 = vld [vmem:[%s3374_s1 + $0x164] sm:$0xf0]  ;;  %v1561_v23 = vld [vmem:[%s3374_s1 + $0x50] sm:$0xf] }
   0x6   :  { %1047 = vmatpush.bf16.msra.mxu2 %v1706_v8  ;;  %v1761_v20 = vld [vmem:[%s3374_s1 + $0x1e0] sm:$0xf]  ;;  %v1698_v21 = vor.u32 %v2149_v19, %v1697_v18  ;;  %v2165_v22 = vld [vmem:[%s3374_s1 + $0x1e4] sm:$0xf0]  ;;  %v2115_v24 = vld [vmem:[%s3374_s1 + $0x54] sm:$0xf0] }
   0x7   :  { %1065 = vmatpush.bf16.msra.mxu3 %v1770_v12  ;;  %v1762_v25 = vor.u32 %v2165_v22, %v1761_v20  ;;  %v1625_v26 = vld [vmem:[%s3374_s1 + $0xd0] sm:$0xf]  ;;  %v2131_v27 = vld [vmem:[%s3374_s1 + $0xd4] sm:$0xf0]  ;;  %v1562_v29 = vor.u32 %v2115_v24, %v1561_v23  ;;  %v1553_v35 = vld [vmem:[%s3374_s1 + $0x40] sm:$0xf] }
   0x8   :  { %v1689_v28 = vld [vmem:[%s3374_s1 + $0x150] sm:$0xf]  ;;  %1012 = vmatpush.bf16.msra.mxu0 %v1570_v16  ;;  %v2147_v30 = vld [vmem:[%s3374_s1 + $0x154] sm:$0xf0]  ;;  %v1626_v33 = vor.u32 %v2131_v27, %v1625_v26  ;;  %v2113_v36 = vld [vmem:[%s3374_s1 + $0x44] sm:$0xf0] }
   0x9   :  { %v1753_v31 = vld [vmem:[%s3374_s1 + $0x1d0] sm:$0xf]  ;;  %v2163_v32 = vld [vmem:[%s3374_s1 + $0x1d4] sm:$0xf0]  ;;  %1030 = vmatpush.bf16.msra.mxu1 %v1634_v17  ;;  %v1690_v34 = vor.u32 %v2147_v30, %v1689_v28  ;;  %v1617_v37 = vld [vmem:[%s3374_s1 + $0xc0] sm:$0xf]  ;;  %v1554_v44 = vor.u32 %v2113_v36, %v1553_v35 }
   0xa   :  { %1048 = vmatpush.bf16.msra.mxu2 %v1698_v21  ;;  %v1754_v38 = vor.u32 %v2163_v32, %v1753_v31  ;;  %v2129_v39 = vld [vmem:[%s3374_s1 + $0xc4] sm:$0xf0]  ;;  %v1681_v40 = vld [vmem:[%s3374_s1 + $0x140] sm:$0xf]  ;;  %v1545_v47 = vld [vmem:[%s3374_s1 + $0x30] sm:$0xf] }
   0xb   :  { %1066 = vmatpush.bf16.msra.mxu3 %v1762_v25  ;;  %v2145_v41 = vld [vmem:[%s3374_s1 + $0x144] sm:$0xf0]  ;;  %v1745_v42 = vld [vmem:[%s3374_s1 + $0x1c0] sm:$0xf]  ;;  %v1618_v45 = vor.u32 %v2129_v39, %v1617_v37  ;;  %v2111_v48 = vld [vmem:[%s3374_s1 + $0x34] sm:$0xf0] }
   0xc   :  { %v2161_v43 = vld [vmem:[%s3374_s1 + $0x1c4] sm:$0xf0]  ;;  %1013 = vmatpush.bf16.msra.mxu0 %v1562_v29  ;;  %v1682_v46 = vor.u32 %v2145_v41, %v1681_v40  ;;  %v1609_v49 = vld [vmem:[%s3374_s1 + $0xb0] sm:$0xf]  ;;  %v2127_v51 = vld [vmem:[%s3374_s1 + $0xb4] sm:$0xf0]  ;;  %v1546_v56 = vor.u32 %v2111_v48, %v1545_v47 }
   0xd   :  { %1031 = vmatpush.bf16.msra.mxu1 %v1626_v33  ;;  %v1746_v50 = vor.u32 %v2161_v43, %v1745_v42  ;;  %v1673_v52 = vld [vmem:[%s3374_s1 + $0x130] sm:$0xf]  ;;  %v2143_v53 = vld [vmem:[%s3374_s1 + $0x134] sm:$0xf0]  ;;  %v1610_v57 = vor.u32 %v2127_v51, %v1609_v49  ;;  %v1537_v59 = vld [vmem:[%s3374_s1 + $0x20] sm:$0xf] }
   0xe   :  { %1049 = vmatpush.bf16.msra.mxu2 %v1690_v34  ;;  %v1737_v54 = vld [vmem:[%s3374_s1 + $0x1b0] sm:$0xf]  ;;  %v2159_v55 = vld [vmem:[%s3374_s1 + $0x1b4] sm:$0xf0]  ;;  %v1674_v58 = vor.u32 %v2143_v53, %v1673_v52  ;;  %v2109_v60 = vld [vmem:[%s3374_s1 + $0x24] sm:$0xf0] }
   0xf   :  { %1067 = vmatpush.bf16.msra.mxu3 %v1754_v38  ;;  %v1601_v61 = vld [vmem:[%s3374_s1 + $0xa0] sm:$0xf]  ;;  %v1738_v62 = vor.u32 %v2159_v55, %v1737_v54  ;;  %v2125_v63 = vld [vmem:[%s3374_s1 + $0xa4] sm:$0xf0]  ;;  %v1538_v4 = vor.u32 %v2109_v60, %v1537_v59  ;;  %v1529_v7 = vld [vmem:[%s3374_s1 + $0x10] sm:$0xf] }
  0x10   :  { %1014 = vmatpush.bf16.msra.mxu0 %v1554_v44  ;;  %v1665_v0 = vld [vmem:[%s3374_s1 + $0x120] sm:$0xf]  ;;  %v2141_v1 = vld [vmem:[%s3374_s1 + $0x124] sm:$0xf0]  ;;  %v1602_v5 = vor.u32 %v2125_v63, %v1601_v61  ;;  %v2107_v8 = vld [vmem:[%s3374_s1 + $0x14] sm:$0xf0] }
  0x11   :  { %1032 = vmatpush.bf16.msra.mxu1 %v1618_v45  ;;  %v1729_v2 = vld [vmem:[%s3374_s1 + $0x1a0] sm:$0xf]  ;;  %v2157_v3 = vld [vmem:[%s3374_s1 + $0x1a4] sm:$0xf0]  ;;  %v1666_v6 = vor.u32 %v2141_v1, %v1665_v0  ;;  %v1593_v9 = vld [vmem:[%s3374_s1 + $0x90] sm:$0xf]  ;;  %v1530_v17 = vor.u32 %v2107_v8, %v1529_v7 }
  0x12   :  { %1050 = vmatpush.bf16.msra.mxu2 %v1682_v46  ;;  %v1730_v10 = vor.u32 %v2157_v3, %v1729_v2  ;;  %v2123_v11 = vld [vmem:[%s3374_s1 + $0x94] sm:$0xf0]  ;;  %v1657_v12 = vld [vmem:[%s3374_s1 + $0x110] sm:$0xf]  ;;  %v1521_v16 = vld [vmem:[%s3374_s1] sm:$0xf] }
  0x13   :  { %1068 = vmatpush.bf16.msra.mxu3 %v1746_v50  ;;  %v2139_v13 = vld [vmem:[%s3374_s1 + $0x114] sm:$0xf0]  ;;  %v1721_v14 = vld [vmem:[%s3374_s1 + $0x190] sm:$0xf]  ;;  %v2105_v18 = vld [vmem:[%s3374_s1 + $0x4] sm:$0xf0]  ;;  %v1594_v21 = vor.u32 %v2123_v11, %v1593_v9 }
  0x14   :  { %1015 = vmatpush.bf16.msra.mxu0 %v1546_v56  ;;  %v2155_v15 = vld [vmem:[%s3374_s1 + $0x194] sm:$0xf0]  ;;  %v1585_v19 = vld [vmem:[%s3374_s1 + $0x80] sm:$0xf]  ;;  %v2121_v20 = vld [vmem:[%s3374_s1 + $0x84] sm:$0xf0]  ;;  %v1658_v22 = vor.u32 %v2139_v13, %v1657_v12  ;;  %v1522_v34 = vor.u32 %v2105_v18, %v1521_v16 }
  0x15   :  { %1033 = vmatpush.bf16.msra.mxu1 %v1610_v57  ;;  %v1649_v23 = vld [vmem:[%s3374_s1 + $0x100] sm:$0xf]  ;;  %v2137_v24 = vld [vmem:[%s3374_s1 + $0x104] sm:$0xf0]  ;;  %v1722_v26 = vor.u32 %v2155_v15, %v1721_v14  ;;  %v2099_v29 = vld [vmem:[%s3375_s0 + $0x20] sm:$0xf0]  ;;  %v1586_v38 = vor.u32 %v2121_v20, %v1585_v19 }
  0x16   :  { %1051 = vmatpush.bf16.msra.mxu2 %v1674_v58  ;;  %v1713_v25 = vld [vmem:[%s3374_s1 + $0x180] sm:$0xf]  ;;  %v2153_v27 = vld [vmem:[%s3374_s1 + $0x184] sm:$0xf0]  ;;  %v2095_v30 = vld [vmem:[%s3375_s0 + $0x4] sm:$0xf]  ;;  %v1650_v39 = vor.u32 %v2137_v24, %v1649_v23 }
  0x17   :  { %1069 = vmatpush.bf16.msra.mxu3 %v1738_v62  ;;  %v1485_v28 = vld [vmem:[%s3375_s0] sm:$0xf]  ;;  %v1487_v31 = vld [vmem:[%s3375_s0 + $0x24] sm:$0xf0]  ;;  %v1833_v32 = vld [vmem:[%s3374_s1 + $0x270] sm:$0xf]  ;;  %v1714_v43 = vor.u32 %v2153_v27, %v1713_v25 }
  0x18   :  { %1016 = vmatpush.bf16.msra.mxu0 %v1538_v4  ;;  %v2183_v33 = vld [vmem:[%s3374_s1 + $0x274] sm:$0xf0]  ;;  %v1493_v35 = vld [vmem:[%s3375_s0 + $0x8] sm:$0xf]  ;;  %v1897_v36 = vld [vmem:[%s3374_s1 + $0x2f0] sm:$0xf]  ;;  %v2530_v48 = vor.u32 %v2099_v29, %v1485_v28  ;;  %v2541_v53 = vor.u32 %v2095_v30, %v1487_v31 }
  0x19   :  { %1034 = vmatpush.bf16.msra.mxu1 %v1602_v5  ;;  %v2199_v37 = vld [vmem:[%s3374_s1 + $0x2f4] sm:$0xf0]  ;;  %v2100_v40 = vld [vmem:[%s3375_s0 + $0x28] sm:$0xf0]  ;;  %v1495_v42 = vld [vmem:[%s3375_s0 + $0x2c] sm:$0xf0]  ;;  %v1834_v44 = vor.u32 %v2183_v33, %v1833_v32 }
  0x1a   :  { %1052 = vmatpush.bf16.msra.mxu2 %v1666_v6  ;;  %v2096_v41 = vld [vmem:[%s3375_s0 + $0xc] sm:$0xf]  ;;  %v1961_v45 = vld [vmem:[%s3374_s1 + $0x370] sm:$0xf]  ;;  %v2215_v46 = vld [vmem:[%s3374_s1 + $0x374] sm:$0xf0]  ;;  %v1898_v49 = vor.u32 %v2199_v37, %v1897_v36  ;;  %v2543_v54 = vor.u32 %v2100_v40, %v1493_v35 }
  0x1b   :  { %1070 = vmatpush.bf16.msra.mxu3 %v1730_v10  ;;  %v2025_v47 = vld [vmem:[%s3374_s1 + $0x3f0] sm:$0xf]  ;;  %v2231_v50 = vld [vmem:[%s3374_s1 + $0x3f4] sm:$0xf0]  ;;  %v1825_v51 = vld [vmem:[%s3374_s1 + $0x260] sm:$0xf]  ;;  %v2551_v57 = vor.u32 %v2096_v41, %v1495_v42  ;;  %v1962_v58 = vor.u32 %v2215_v46, %v1961_v45 }
  0x1c   :  { %1017 = vmatpush.bf16.msra.mxu0 %v1530_v17  ;;  %v2181_v52 = vld [vmem:[%s3374_s1 + $0x264] sm:$0xf0]  ;;  %v1889_v55 = vld [vmem:[%s3374_s1 + $0x2e0] sm:$0xf]  ;;  %v2026_v59 = vor.u32 %v2231_v50, %v2025_v47  ;;  %v1817_v2 = vld [vmem:[%s3374_s1 + $0x250] sm:$0xf] }
  0x1d   :  { %1035 = vmatpush.bf16.msra.mxu1 %v1594_v21  ;;  %v2197_v56 = vld [vmem:[%s3374_s1 + $0x2e4] sm:$0xf0]  ;;  %v1826_v60 = vor.u32 %v2181_v52, %v1825_v51  ;;  %v1953_v61 = vld [vmem:[%s3374_s1 + $0x360] sm:$0xf]  ;;  %v2179_v3 = vld [vmem:[%s3374_s1 + $0x254] sm:$0xf0] }
  0x1e   :  { %1053 = vmatpush.bf16.msra.mxu2 %v1658_v22  ;;  %v2213_v62 = vld [vmem:[%s3374_s1 + $0x364] sm:$0xf0]  ;;  %v2017_v63 = vld [vmem:[%s3374_s1 + $0x3e0] sm:$0xf]  ;;  %v1890_v0 = vor.u32 %v2197_v56, %v1889_v55  ;;  %v1881_v4 = vld [vmem:[%s3374_s1 + $0x2d0] sm:$0xf]  ;;  %v1818_v8 = vor.u32 %v2179_v3, %v1817_v2 }
  0x1f   :  { %1071 = vmatpush.bf16.msra.mxu3 %v1722_v26  ;;  %v2229_v1 = vld [vmem:[%s3374_s1 + $0x3e4] sm:$0xf0]  ;;  %v2195_v5 = vld [vmem:[%s3374_s1 + $0x2d4] sm:$0xf0]  ;;  %v1954_v6 = vor.u32 %v2213_v62, %v1953_v61  ;;  %v1945_v9 = vld [vmem:[%s3374_s1 + $0x350] sm:$0xf] }
  0x20   :  { %1018 = vmatpush.bf16.msra.mxu0 %v1522_v34  ;;  %v2018_v7 = vor.u32 %v2229_v1, %v2017_v63  ;;  %v2211_v10 = vld [vmem:[%s3374_s1 + $0x354] sm:$0xf0]  ;;  %v2009_v11 = vld [vmem:[%s3374_s1 + $0x3d0] sm:$0xf]  ;;  %v1882_v12 = vor.u32 %v2195_v5, %v1881_v4  ;;  %v1809_v14 = vld [vmem:[%s3374_s1 + $0x240] sm:$0xf] }
  0x21   :  { %1036 = vmatpush.bf16.msra.mxu1 %v1586_v38  ;;  %v2227_v13 = vld [vmem:[%s3374_s1 + $0x3d4] sm:$0xf0]  ;;  %v2177_v15 = vld [vmem:[%s3374_s1 + $0x244] sm:$0xf0]  ;;  %v1873_v16 = vld [vmem:[%s3374_s1 + $0x2c0] sm:$0xf]  ;;  %v1946_v19 = vor.u32 %v2211_v10, %v1945_v9 }
  0x22   :  { %1054 = vmatpush.bf16.msra.mxu2 %v1650_v39  ;;  %v2193_v17 = vld [vmem:[%s3374_s1 + $0x2c4] sm:$0xf0]  ;;  %v65_v20 = vld [vmem:[%s3375_s0 + $0x50] sm:$0xff]  ;;  %v2010_v21 = vor.u32 %v2227_v13, %v2009_v11  ;;  %v1810_v22 = vor.u32 %v2177_v15, %v1809_v14  ;;  %v1937_v23 = vld [vmem:[%s3374_s1 + $0x340] sm:$0xf] }
  0x23   :  { %1072 = vmatpush.bf16.msra.mxu3 %v1714_v43  ;;  %1019 = vmatmul.bf16.vlgmr.msra.gmra.mxu0 %v2530_v48  ;;  %v64_v18 = vld [vmem:[%s3375_s0 + $0x48] sm:$0xff]  ;;  %v2001_v25 = vld [vmem:[%s3374_s1 + $0x3c0] sm:$0xf]  ;;  %v1874_v26 = vor.u32 %v2193_v17, %v1873_v16  ;;  %v1801_v29 = vld [vmem:[%s3374_s1 + $0x230] sm:$0xf]  ;;  %v248_v32 = vunpack.c.l.b16 %v65_v20  ;;  %v249_v36 = vunpack.c.h.b16 %v65_v20 }
  0x24   :  { %1083 = vmatpush.bf16.msrb.mxu0 %v1834_v44  ;;  %1037 = vmatmul.bf16.vlgmr.msra.gmra.mxu1 %v2541_v53  ;;  %v2209_v24 = vld [vmem:[%s3374_s1 + $0x344] sm:$0xf0]  ;;  %v246_v28 = vunpack.c.l.b16 %v64_v18  ;;  %v2175_v30 = vld [vmem:[%s3374_s1 + $0x234] sm:$0xf0]  ;;  %v247_v31 = vunpack.c.h.b16 %v64_v18  ;;  %v1865_v33 = vld [vmem:[%s3374_s1 + $0x2b0] sm:$0xf] }
  0x25   :  { %1101 = vmatpush.bf16.msrb.mxu1 %v1898_v49  ;;  %1055 = vmatmul.bf16.vlgmr.msra.gmra.mxu2 %v2543_v54  ;;  %v2225_v27 = vld [vmem:[%s3374_s1 + $0x3c4] sm:$0xf0]  ;;  %v2191_v34 = vld [vmem:[%s3374_s1 + $0x2b4] sm:$0xf0]  ;;  %v1938_v35 = vor.u32 %v2209_v24, %v1937_v23  ;;  %v1802_v38 = vor.u32 %v2175_v30, %v1801_v29  ;;  %v1929_v39 = vld [vmem:[%s3374_s1 + $0x330] sm:$0xf]  ;;  %v2657_v49 = vpack.c.b16 %v248_v32, %v248_v32 }
  0x26   :  { %1073 = vmatmul.bf16.vlgmr.msra.gmra.mxu3 %v2551_v57  ;;  %1119 = vmatpush.bf16.msrb.mxu2 %v1962_v58  ;;  %v2002_v37 = vor.u32 %v2225_v27, %v2001_v25  ;;  %v2207_v40 = vld [vmem:[%s3374_s1 + $0x334] sm:$0xf0]  ;;  %v1993_v41 = vld [vmem:[%s3374_s1 + $0x3b0] sm:$0xf]  ;;  %v2644_v42 = vpack.c.b16 %v246_v28, %v246_v28  ;;  %v1866_v43 = vor.u32 %v2191_v34, %v1865_v33  ;;  %v1793_v45 = vld [vmem:[%s3374_s1 + $0x220] sm:$0xf] }
  0x27   :  { %1137 = vmatpush.bf16.msrb.mxu3 %v2026_v59  ;;  %v2223_v44 = vld [vmem:[%s3374_s1 + $0x3b4] sm:$0xf0]  ;;  %v2173_v46 = vld [vmem:[%s3374_s1 + $0x224] sm:$0xf0]  ;;  %v2655_v47 = vpack.c.b16 %v247_v31, %v247_v31  ;;  %v1857_v50 = vld [vmem:[%s3374_s1 + $0x2a0] sm:$0xf]  ;;  %v2665_v52 = vpack.c.b16 %v249_v36, %v249_v36  ;;  %v1930_v55 = vor.u32 %v2207_v40, %v1929_v39 }
  0x28   :  { %1084 = vmatpush.bf16.msrb.mxu0 %v1826_v60  ;;  %v2189_v51 = vld [vmem:[%s3374_s1 + $0x2a4] sm:$0xf0]  ;;  %v1994_v56 = vor.u32 %v2223_v44, %v1993_v41  ;;  %v1794_v58 = vor.u32 %v2173_v46, %v1793_v45  ;;  %v1921_v59 = vld [vmem:[%s3374_s1 + $0x320] sm:$0xf]  ;;  %v2171_v1 = vld [vmem:[%s3374_s1 + $0x214] sm:$0xf0] }
  0x29   :  { %1102 = vmatpush.bf16.msrb.mxu1 %v1890_v0  ;;  %v2205_v60 = vld [vmem:[%s3374_s1 + $0x324] sm:$0xf0]  ;;  %v1985_v61 = vld [vmem:[%s3374_s1 + $0x3a0] sm:$0xf]  ;;  %v1858_v62 = vor.u32 %v2189_v51, %v1857_v50  ;;  %v1785_v0 = vld [vmem:[%s3374_s1 + $0x210] sm:$0xf] }
  0x2a   :  { %1120 = vmatpush.bf16.msrb.mxu2 %v1954_v6  ;;  %v2221_v63 = vld [vmem:[%s3374_s1 + $0x3a4] sm:$0xf0]  ;;  %v1849_v2 = vld [vmem:[%s3374_s1 + $0x290] sm:$0xf]  ;;  %v2187_v3 = vld [vmem:[%s3374_s1 + $0x294] sm:$0xf0]  ;;  %v1922_v4 = vor.u32 %v2205_v60, %v1921_v59 }
  0x2b   :  { %1138 = vmatpush.bf16.msrb.mxu3 %v2018_v7  ;;  %v1913_v5 = vld [vmem:[%s3374_s1 + $0x310] sm:$0xf]  ;;  %v2203_v6 = vld [vmem:[%s3374_s1 + $0x314] sm:$0xf0]  ;;  %v1986_v7 = vor.u32 %v2221_v63, %v1985_v61  ;;  %v1777_v11 = vld [vmem:[%s3374_s1 + $0x200] sm:$0xf] }
  0x2c   :  { %1085 = vmatpush.bf16.msrb.mxu0 %v1818_v8  ;;  %v1786_v8 = vor.u32 %v2171_v1, %v1785_v0  ;;  %v1977_v9 = vld [vmem:[%s3374_s1 + $0x390] sm:$0xf]  ;;  %v2219_v10 = vld [vmem:[%s3374_s1 + $0x394] sm:$0xf0]  ;;  %v2169_v13 = vld [vmem:[%s3374_s1 + $0x204] sm:$0xf0]  ;;  %v1914_v20 = vor.u32 %v2203_v6, %v1913_v5 }
  0x2d   :  { %1103 = vmatpush.bf16.msrb.mxu1 %v1882_v12  ;;  %v1850_v12 = vor.u32 %v2187_v3, %v1849_v2  ;;  %v1841_v14 = vld [vmem:[%s3374_s1 + $0x280] sm:$0xf]  ;;  %v2185_v15 = vld [vmem:[%s3374_s1 + $0x284] sm:$0xf0]  ;;  %v2089_v18 = vld [vmem:[%s3374_s1 + $0x470] sm:$0xf]  ;;  %v1978_v24 = vor.u32 %v2219_v10, %v1977_v9  ;;  %v1778_v25 = vor.u32 %v2169_v13, %v1777_v11 }
  0x2e   :  { %1121 = vmatpush.bf16.msrb.mxu2 %v1946_v19  ;;  %v1905_v16 = vld [vmem:[%s3374_s1 + $0x300] sm:$0xf]  ;;  %v2201_v17 = vld [vmem:[%s3374_s1 + $0x304] sm:$0xf0]  ;;  %v2247_v19 = vld [vmem:[%s3374_s1 + $0x474] sm:$0xf0]  ;;  %v1842_v29 = vor.u32 %v2185_v15, %v1841_v14 }
  0x2f   :  { %1139 = vmatpush.bf16.msrb.mxu3 %v2010_v21  ;;  %v1969_v21 = vld [vmem:[%s3374_s1 + $0x380] sm:$0xf]  ;;  %v1579_v23 = vld [vmem:[%s3374_s1 + $0x78] sm:$0xf0]  ;;  %v1501_v27 = vld [vmem:[%s3375_s0 + $0x10] sm:$0xf]  ;;  %v2090_v32 = vor.u32 %v2247_v19, %v2089_v18  ;;  %v1906_v39 = vor.u32 %v2201_v17, %v1905_v16 }
  0x30   :  { %1086 = vmatpush.bf16.msrb.mxu0 %v1810_v22  ;;  %v2118_v22 = vld [vmem:[%s3374_s1 + $0x74] sm:$0xf]  ;;  %v1503_v31 = vld [vmem:[%s3375_s0 + $0x34] sm:$0xf0]  ;;  %v1643_v34 = vld [vmem:[%s3374_s1 + $0xf8] sm:$0xf0] }
  0x31   :  { %1104 = vmatpush.bf16.msrb.mxu1 %v1874_v26  ;;  %v2217_v26 = vld [vmem:[%s3374_s1 + $0x384] sm:$0xf0]  ;;  %v2101_v28 = vld [vmem:[%s3375_s0 + $0x30] sm:$0xf0]  ;;  %v1582_v36 = vor.u32 %v2118_v22, %v1579_v23  ;;  %v2102_v40 = vld [vmem:[%s3375_s0 + $0x38] sm:$0xf0] }
  0x32   :  { %1122 = vmatpush.bf16.msrb.mxu2 %v1938_v35  ;;  %v2097_v30 = vld [vmem:[%s3375_s0 + $0x14] sm:$0xf]  ;;  %v1509_v35 = vld [vmem:[%s3375_s0 + $0x18] sm:$0xf]  ;;  %v2098_v41 = vld [vmem:[%s3375_s0 + $0x1c] sm:$0xf]  ;;  %v1970_v44 = vor.u32 %v2217_v26, %v1969_v21 }
  0x33   :  { %1140 = vmatpush.bf16.msrb.mxu3 %v2002_v37  ;;  %1024 = vmatmul.bf16.gmra.mxu0 %v2644_v42  ;;  %v2134_v33 = vld [vmem:[%s3374_s1 + $0xf4] sm:$0xf]  ;;  %v2081_v46 = vld [vmem:[%s3374_s1 + $0x460] sm:$0xf]  ;;  %v2245_v50 = vld [vmem:[%s3374_s1 + $0x464] sm:$0xf0]  ;;  %v2799_v61 = vor.u32 %v2097_v30, %v1503_v31 }
  0x34   :  { %1087 = vmatpush.bf16.msrb.mxu0 %v1802_v38  ;;  %1042 = vmatmul.bf16.gmra.mxu1 %v2655_v47  ;;  %v2150_v37 = vld [vmem:[%s3374_s1 + $0x174] sm:$0xf]  ;;  %v1707_v38 = vld [vmem:[%s3374_s1 + $0x178] sm:$0xf0]  ;;  %v1646_v45 = vor.u32 %v2134_v33, %v1643_v34  ;;  %v2116_v51 = vld [vmem:[%s3374_s1 + $0x64] sm:$0xf]  ;;  %v2082_v2 = vor.u32 %v2245_v50, %v2081_v46 }
  0x35   :  { %1105 = vmatpush.bf16.msrb.mxu1 %v1866_v43  ;;  %1060 = vmatmul.bf16.gmra.mxu2 %v2657_v49  ;;  %v1511_v43 = vld [vmem:[%s3375_s0 + $0x3c] sm:$0xf0]  ;;  %v2132_v59 = vld [vmem:[%s3374_s1 + $0xe4] sm:$0xf]  ;;  %v1635_v60 = vld [vmem:[%s3374_s1 + $0xe8] sm:$0xf0] }
  0x36   :  { %1078 = vmatmul.bf16.gmra.mxu3 %v2665_v52  ;;  %1123 = vmatpush.bf16.msrb.mxu2 %v1930_v55  ;;  %v2788_v55 = vor.u32 %v2101_v28, %v1501_v27  ;;  %v2148_v63 = vld [vmem:[%s3374_s1 + $0x164] sm:$0xf]  ;;  %v1699_v0 = vld [vmem:[%s3374_s1 + $0x168] sm:$0xf0]  ;;  %v2809_v1 = vor.u32 %v2098_v41, %v1511_v43  ;;  %v2073_v5 = vld [vmem:[%s3374_s1 + $0x450] sm:$0xf] }
  0x37   :  { %1141 = vmatpush.bf16.msrb.mxu3 %v1994_v56  ;;  %v1710_v56 = vor.u32 %v2150_v37, %v1707_v38  ;;  %v2243_v6 = vld [vmem:[%s3374_s1 + $0x454] sm:$0xf0]  ;;  %v1563_v9 = vld [vmem:[%s3374_s1 + $0x58] sm:$0xf0]  ;;  %v2130_v10 = vld [vmem:[%s3374_s1 + $0xd4] sm:$0xf] }
  0x38   :  { %1088 = vmatpush.bf16.msrb.mxu0 %v1794_v58  ;;  %v1571_v58 = vld [vmem:[%s3374_s1 + $0x68] sm:$0xf0]  ;;  %v1627_v11 = vld [vmem:[%s3374_s1 + $0xd8] sm:$0xf0]  ;;  %v2074_v14 = vor.u32 %v2243_v6, %v2073_v5  ;;  %v2065_v17 = vld [vmem:[%s3374_s1 + $0x440] sm:$0xf] }
  0x39   :  { %1106 = vmatpush.bf16.msrb.mxu1 %v1858_v62  ;;  %v2801_v62 = vor.u32 %v2102_v40, %v1509_v35  ;;  %v1574_v3 = vor.u32 %v2116_v51, %v1571_v58  ;;  %v1691_v13 = vld [vmem:[%s3374_s1 + $0x158] sm:$0xf0]  ;;  %v1630_v16 = vor.u32 %v2130_v10, %v1627_v11  ;;  %v2241_v18 = vld [vmem:[%s3374_s1 + $0x444] sm:$0xf0]  ;;  %v2112_v19 = vld [vmem:[%s3374_s1 + $0x44] sm:$0xf] }
  0x3a   :  { %1124 = vmatpush.bf16.msrb.mxu2 %v1922_v4  ;;  %v1638_v4 = vor.u32 %v2132_v59, %v1635_v60  ;;  %v1555_v21 = vld [vmem:[%s3374_s1 + $0x48] sm:$0xf0]  ;;  %v2128_v22 = vld [vmem:[%s3374_s1 + $0xc4] sm:$0xf]  ;;  %v66_v26 = vld [vmem:[%s3375_s0 + $0x58] sm:$0xff]  ;;  %v2066_v27 = vor.u32 %v2241_v18, %v2065_v17 }
  0x3b   :  { %1142 = vmatpush.bf16.msrb.mxu3 %v1986_v7  ;;  %v2114_v7 = vld [vmem:[%s3374_s1 + $0x54] sm:$0xf]  ;;  %v1619_v23 = vld [vmem:[%s3374_s1 + $0xc8] sm:$0xf0]  ;;  %v67_v28 = vld [vmem:[%s3375_s0 + $0x60] sm:$0xff]  ;;  %v250_v35 = vunpack.c.l.b16 %v66_v26 }
  0x3c   :  { %1089 = vmatpush.bf16.msrb.mxu0 %v1786_v8  ;;  %v1702_v8 = vor.u32 %v2148_v63, %v1699_v0  ;;  %v1566_v15 = vor.u32 %v2114_v7, %v1563_v9  ;;  %v1622_v30 = vor.u32 %v2128_v22, %v1619_v23  ;;  %v2057_v31 = vld [vmem:[%s3374_s1 + $0x430] sm:$0xf]  ;;  %v2110_v33 = vld [vmem:[%s3374_s1 + $0x34] sm:$0xf]  ;;  %v1611_v38 = vld [vmem:[%s3374_s1 + $0xb8] sm:$0xf0]  ;;  %v252_v40 = vunpack.c.l.b16 %v67_v28 }
  0x3d   :  { %1107 = vmatpush.bf16.msrb.mxu1 %v1850_v12  ;;  %v2146_v12 = vld [vmem:[%s3374_s1 + $0x154] sm:$0xf]  ;;  %v1675_v43 = vld [vmem:[%s3374_s1 + $0x138] sm:$0xf0]  ;;  %v2049_v51 = vld [vmem:[%s3374_s1 + $0x420] sm:$0xf]  ;;  %v2902_v59 = vpack.c.b16 %v250_v35, %v250_v35 }
  0x3e   :  { %1125 = vmatpush.bf16.msrb.mxu2 %v1914_v20  ;;  %v1694_v20 = vor.u32 %v2146_v12, %v1691_v13  ;;  %v2126_v37 = vld [vmem:[%s3374_s1 + $0xb4] sm:$0xf]  ;;  %v2108_v58 = vld [vmem:[%s3374_s1 + $0x24] sm:$0xf]  ;;  %v1539_v63 = vld [vmem:[%s3374_s1 + $0x28] sm:$0xf0] }
  0x3f   :  { %1143 = vmatpush.bf16.msrb.mxu3 %v1978_v24  ;;  %v2144_v24 = vld [vmem:[%s3374_s1 + $0x144] sm:$0xf]  ;;  %v2142_v41 = vld [vmem:[%s3374_s1 + $0x134] sm:$0xf]  ;;  %v1614_v50 = vor.u32 %v2126_v37, %v1611_v38  ;;  %v1667_v6 = vld [vmem:[%s3374_s1 + $0x128] sm:$0xf0]  ;;  %v1542_v9 = vor.u32 %v2108_v58, %v1539_v63 }
  0x40   :  { %1090 = vmatpush.bf16.msrb.mxu0 %v1778_v25  ;;  %v1683_v25 = vld [vmem:[%s3374_s1 + $0x148] sm:$0xf0]  ;;  %v1678_v60 = vor.u32 %v2142_v41, %v1675_v43  ;;  %v2124_v0 = vld [vmem:[%s3374_s1 + $0xa4] sm:$0xf]  ;;  %v2041_v11 = vld [vmem:[%s3374_s1 + $0x410] sm:$0xf] }
  0x41   :  { %1108 = vmatpush.bf16.msrb.mxu1 %v1842_v29  ;;  %v1558_v29 = vor.u32 %v2112_v19, %v1555_v21  ;;  %v1686_v34 = vor.u32 %v2144_v24, %v1683_v25  ;;  %v2140_v5 = vld [vmem:[%s3374_s1 + $0x124] sm:$0xf]  ;;  %v2235_v12 = vld [vmem:[%s3374_s1 + $0x414] sm:$0xf0]  ;;  %v2106_v13 = vld [vmem:[%s3374_s1 + $0x14] sm:$0xf] }
  0x42   :  { %1126 = vmatpush.bf16.msrb.mxu2 %v1906_v39  ;;  %v251_v39 = vunpack.c.h.b16 %v66_v26  ;;  %v1595_v17 = vld [vmem:[%s3374_s1 + $0x98] sm:$0xf0]  ;;  %v2138_v18 = vld [vmem:[%s3374_s1 + $0x114] sm:$0xf]  ;;  %v2033_v21 = vld [vmem:[%s3374_s1 + $0x400] sm:$0xf] }
  0x43   :  { %1144 = vmatpush.bf16.msrb.mxu3 %v1970_v44  ;;  %1091 = vmatmul.bf16.vlgmr.msrb.gmra.mxu0 %v2788_v55  ;;  %v253_v44 = vunpack.c.h.b16 %v67_v28  ;;  %v1659_v19 = vld [vmem:[%s3374_s1 + $0x118] sm:$0xf0]  ;;  %v2233_v22 = vld [vmem:[%s3374_s1 + $0x404] sm:$0xf0]  ;;  %v2104_v25 = vld [vmem:[%s3374_s1 + $0x4] sm:$0xf] }
  0x44   :  { %1155 = vmatpush.bf16.msra.mxu0 %v2090_v32  ;;  %1109 = vmatmul.bf16.vlgmr.msrb.gmra.mxu1 %v2799_v61  ;;  %v2239_v32 = vld [vmem:[%s3374_s1 + $0x434] sm:$0xf0]  ;;  %v1523_v26 = vld [vmem:[%s3374_s1 + $0x8] sm:$0xf0]  ;;  %v1662_v28 = vor.u32 %v2138_v18, %v1659_v19  ;;  %v2034_v35 = vor.u32 %v2233_v22, %v2033_v21  ;;  %v2198_v37 = vld [vmem:[%s3374_s1 + $0x2f4] sm:$0xf] }
  0x45   :  { %1173 = vmatpush.bf16.msra.mxu1 %v1582_v36  ;;  %1127 = vmatmul.bf16.vlgmr.msrb.gmra.mxu2 %v2801_v62  ;;  %v1547_v36 = vld [vmem:[%s3374_s1 + $0x38] sm:$0xf0]  ;;  %v2923_v7 = vpack.c.b16 %v253_v44, %v253_v44  ;;  %v2214_v41 = vld [vmem:[%s3374_s1 + $0x374] sm:$0xf]  ;;  %v1763_v63 = vld [vmem:[%s3374_s1 + $0x1e8] sm:$0xf0] }
  0x46   :  { %1191 = vmatpush.bf16.msra.mxu2 %v1646_v45  ;;  %1145 = vmatmul.bf16.vlgmr.msrb.gmra.mxu3 %v2809_v1  ;;  %v2058_v45 = vor.u32 %v2239_v32, %v2057_v31  ;;  %v1550_v46 = vor.u32 %v2110_v33, %v1547_v36  ;;  %v1651_v31 = vld [vmem:[%s3374_s1 + $0x108] sm:$0xf0]  ;;  %v2166_v32 = vld [vmem:[%s3374_s1 + $0x1f4] sm:$0xf]  ;;  %v1771_v33 = vld [vmem:[%s3374_s1 + $0x1f8] sm:$0xf0] }
  0x47   :  { %1209 = vmatpush.bf16.msra.mxu3 %v1710_v56  ;;  %v2237_v56 = vld [vmem:[%s3374_s1 + $0x424] sm:$0xf0]  ;;  %v1835_v36 = vld [vmem:[%s3374_s1 + $0x278] sm:$0xf0]  ;;  %v2194_v19 = vld [vmem:[%s3374_s1 + $0x2d4] sm:$0xf] }
  0x48   :  { %1156 = vmatpush.bf16.msra.mxu0 %v2082_v2  ;;  %v1603_v2 = vld [vmem:[%s3374_s1 + $0xa8] sm:$0xf0]  ;;  %v1899_v38 = vld [vmem:[%s3374_s1 + $0x2f8] sm:$0xf0]  ;;  %v2210_v21 = vld [vmem:[%s3374_s1 + $0x354] sm:$0xf] }
  0x49   :  { %1174 = vmatpush.bf16.msra.mxu1 %v1574_v3  ;;  %v2913_v3 = vpack.c.b16 %v251_v39, %v251_v39  ;;  %v1606_v10 = vor.u32 %v2124_v0, %v1603_v2  ;;  %v1526_v39 = vor.u32 %v2104_v25, %v1523_v26  ;;  %v1963_v43 = vld [vmem:[%s3374_s1 + $0x378] sm:$0xf0]  ;;  %v2180_v0 = vld [vmem:[%s3374_s1 + $0x264] sm:$0xf] }
  0x4a   :  { %1192 = vmatpush.bf16.msra.mxu2 %v1638_v4  ;;  %v2915_v4 = vpack.c.b16 %v252_v40, %v252_v40  ;;  %v1966_v58 = vor.u32 %v2214_v41, %v1963_v43  ;;  %v1819_v18 = vld [vmem:[%s3374_s1 + $0x258] sm:$0xf0]  ;;  %v2176_v26 = vld [vmem:[%s3374_s1 + $0x244] sm:$0xf]  ;;  %v2190_v43 = vld [vmem:[%s3374_s1 + $0x2b4] sm:$0xf] }
  0x4b   :  { %1210 = vmatpush.bf16.msra.mxu3 %v1702_v8  ;;  %v2050_v8 = vor.u32 %v2237_v56, %v2049_v51  ;;  %v1902_v56 = vor.u32 %v2198_v37, %v1899_v38  ;;  %v1947_v22 = vld [vmem:[%s3374_s1 + $0x358] sm:$0xf0]  ;;  %v2174_v38 = vld [vmem:[%s3374_s1 + $0x234] sm:$0xf] }
  0x4c   :  { %1157 = vmatpush.bf16.msra.mxu0 %v2074_v14  ;;  %v1670_v14 = vor.u32 %v2140_v5, %v1667_v6  ;;  %v1827_v5 = vld [vmem:[%s3374_s1 + $0x268] sm:$0xf0]  ;;  %v2196_v6 = vld [vmem:[%s3374_s1 + $0x2e4] sm:$0xf]  ;;  %v1739_v37 = vld [vmem:[%s3374_s1 + $0x1b8] sm:$0xf0] }
  0x4d   :  { %1175 = vmatpush.bf16.msra.mxu1 %v1566_v15  ;;  %v1531_v15 = vld [vmem:[%s3374_s1 + $0x18] sm:$0xf0] }
  0x4e   :  { %1193 = vmatpush.bf16.msra.mxu2 %v1630_v16  ;;  %v2122_v16 = vld [vmem:[%s3374_s1 + $0x94] sm:$0xf]  ;;  %v1534_v23 = vor.u32 %v2106_v13, %v1531_v15  ;;  %v1755_v15 = vld [vmem:[%s3374_s1 + $0x1d8] sm:$0xf0] }
  0x4f   :  { %1211 = vmatpush.bf16.msra.mxu3 %v1694_v20  ;;  %v2042_v20 = vor.u32 %v2235_v12, %v2041_v11  ;;  %v1598_v24 = vor.u32 %v2122_v16, %v1595_v17  ;;  %v1830_v12 = vor.u32 %v2180_v0, %v1827_v5  ;;  %v2178_v16 = vld [vmem:[%s3374_s1 + $0x254] sm:$0xf]  ;;  %v1803_v41 = vld [vmem:[%s3374_s1 + $0x238] sm:$0xf0] }
  0x50   :  { %1158 = vmatpush.bf16.msra.mxu0 %v2066_v27  ;;  %v2120_v27 = vld [vmem:[%s3374_s1 + $0x84] sm:$0xf] }
  0x51   :  { %1176 = vmatpush.bf16.msra.mxu1 %v1558_v29  ;;  %v1587_v29 = vld [vmem:[%s3374_s1 + $0x88] sm:$0xf0] }
  0x52   :  { %1194 = vmatpush.bf16.msra.mxu2 %v1622_v30  ;;  %v2136_v30 = vld [vmem:[%s3374_s1 + $0x104] sm:$0xf]  ;;  %v1590_v40 = vor.u32 %v2120_v27, %v1587_v29  ;;  %v1811_v27 = vld [vmem:[%s3374_s1 + $0x248] sm:$0xf0] }
  0x53   :  { %1212 = vmatpush.bf16.msra.mxu3 %v1686_v34  ;;  %1096 = vmatmul.bf16.gmra.mxu0 %v2902_v59  ;;  %v2182_v34 = vld [vmem:[%s3374_s1 + $0x274] sm:$0xf]  ;;  %v1654_v44 = vor.u32 %v2136_v30, %v1651_v31  ;;  %v1875_v29 = vld [vmem:[%s3374_s1 + $0x2c8] sm:$0xf0]  ;;  %v2208_v30 = vld [vmem:[%s3374_s1 + $0x344] sm:$0xf] }
  0x54   :  { %1159 = vmatpush.bf16.msra.mxu0 %v2058_v45  ;;  %1114 = vmatmul.bf16.gmra.mxu1 %v2913_v3  ;;  %v1774_v45 = vor.u32 %v2166_v32, %v1771_v33  ;;  %v1838_v51 = vor.u32 %v2182_v34, %v1835_v36  ;;  %v1939_v31 = vld [vmem:[%s3374_s1 + $0x348] sm:$0xf0]  ;;  %v68_v32 = vld [vmem:[%s3375_s0 + $0x68] sm:$0xf]  ;;  %v1814_v34 = vor.u32 %v2176_v26, %v1811_v27  ;;  %v2158_v36 = vld [vmem:[%s3374_s1 + $0x1b4] sm:$0xf] }
  0x55   :  { %1177 = vmatpush.bf16.msra.mxu1 %v1550_v46  ;;  %1132 = vmatmul.bf16.gmra.mxu2 %v2915_v4  ;;  %v1517_v46 = vld [vmem:[%s3375_s0 + $0x20] sm:$0xf]  ;;  %v1843_v27 = vld [vmem:[%s3374_s1 + $0x288] sm:$0xf0] }
  0x56   :  { %1195 = vmatpush.bf16.msra.mxu2 %v1614_v50  ;;  %1150 = vmatmul.bf16.gmra.mxu3 %v2923_v7  ;;  %v2103_v50 = vld [vmem:[%s3375_s0 + $0x40] sm:$0xf0] }
  0x57   :  { %1213 = vmatpush.bf16.msra.mxu3 %v1678_v60  ;;  %v2164_v60 = vld [vmem:[%s3374_s1 + $0x1e4] sm:$0xf]  ;;  %v3016_v2 = vor.u32 %v2103_v50, %v1517_v46  ;;  %v1931_v46 = vld [vmem:[%s3374_s1 + $0x338] sm:$0xf0]  ;;  %v1742_v50 = vor.u32 %v2158_v36, %v1739_v37 }
  0x58   :  { %1160 = vmatpush.bf16.msra.mxu0 %v2050_v8  ;;  %v1891_v8 = vld [vmem:[%s3374_s1 + $0x2e8] sm:$0xf0]  ;;  %v1766_v11 = vor.u32 %v2164_v60, %v1763_v63  ;;  %v2172_v63 = vld [vmem:[%s3374_s1 + $0x224] sm:$0xf] }
  0x59   :  { %1178 = vmatpush.bf16.msra.mxu1 %v1542_v9  ;;  %v2212_v9 = vld [vmem:[%s3374_s1 + $0x364] sm:$0xf]  ;;  %v1894_v13 = vor.u32 %v2196_v6, %v1891_v8  ;;  %v1731_v60 = vld [vmem:[%s3374_s1 + $0x1a8] sm:$0xf0] }
  0x5a   :  { %1196 = vmatpush.bf16.msra.mxu2 %v1606_v10  ;;  %v1955_v10 = vld [vmem:[%s3374_s1 + $0x368] sm:$0xf0]  ;;  %v2188_v8 = vld [vmem:[%s3374_s1 + $0x2a4] sm:$0xf] }
  0x5b   :  { %1214 = vmatpush.bf16.msra.mxu3 %v1670_v14  ;;  %v2162_v14 = vld [vmem:[%s3374_s1 + $0x1d4] sm:$0xf]  ;;  %v1958_v17 = vor.u32 %v2212_v9, %v1955_v10  ;;  %v1795_v6 = vld [vmem:[%s3374_s1 + $0x228] sm:$0xf0]  ;;  %v2204_v10 = vld [vmem:[%s3374_s1 + $0x324] sm:$0xf] }
  0x5c   :  { %1161 = vmatpush.bf16.msra.mxu0 %v2042_v20  ;;  %v1883_v20 = vld [vmem:[%s3374_s1 + $0x2d8] sm:$0xf0]  ;;  %v1859_v9 = vld [vmem:[%s3374_s1 + $0x2a8] sm:$0xf0] }
  0x5d   :  { %1179 = vmatpush.bf16.msra.mxu1 %v1534_v23  ;;  %v1758_v23 = vor.u32 %v2162_v14, %v1755_v15  ;;  %v1886_v25 = vor.u32 %v2194_v19, %v1883_v20  ;;  %v1862_v14 = vor.u32 %v2188_v8, %v1859_v9  ;;  %v2154_v15 = vld [vmem:[%s3374_s1 + $0x194] sm:$0xf]  ;;  %v1787_v19 = vld [vmem:[%s3374_s1 + $0x218] sm:$0xf0] }
  0x5e   :  { %1197 = vmatpush.bf16.msra.mxu2 %v1598_v24  ;;  %v1822_v24 = vor.u32 %v2178_v16, %v1819_v18  ;;  %v1723_v16 = vld [vmem:[%s3374_s1 + $0x198] sm:$0xf0]  ;;  %v2186_v20 = vld [vmem:[%s3374_s1 + $0x294] sm:$0xf] }
  0x5f   :  { %1215 = vmatpush.bf16.msra.mxu3 %v1662_v28  ;;  %v2192_v28 = vld [vmem:[%s3374_s1 + $0x2c4] sm:$0xf]  ;;  %v2222_v8 = vld [vmem:[%s3374_s1 + $0x3b4] sm:$0xf]  ;;  %v1995_v9 = vld [vmem:[%s3374_s1 + $0x3b8] sm:$0xf0] }
  0x60   :  { %1162 = vmatpush.bf16.msra.mxu0 %v2034_v35  ;;  %v1878_v35 = vor.u32 %v2192_v28, %v1875_v29  ;;  %v2200_v28 = vld [vmem:[%s3374_s1 + $0x304] sm:$0xf]  ;;  %v1907_v29 = vld [vmem:[%s3374_s1 + $0x308] sm:$0xf0] }
  0x61   :  { %1180 = vmatpush.bf16.msra.mxu1 %v1526_v39  ;;  %v1942_v39 = vor.u32 %v2208_v30, %v1939_v31  ;;  %v2230_v30 = vld [vmem:[%s3374_s1 + $0x3f4] sm:$0xf]  ;;  %v2027_v31 = vld [vmem:[%s3374_s1 + $0x3f8] sm:$0xf0]  ;;  %v1910_v37 = vor.u32 %v2200_v28, %v1907_v29 }
  0x62   :  { %1198 = vmatpush.bf16.msra.mxu2 %v1590_v40  ;;  %v254_v40 = vunpack.c.l.b16 %v68_v32 }
  0x63   :  { %1216 = vmatpush.bf16.msra.mxu3 %v1654_v44  ;;  %1163 = vmatmul.bf16.vlgmr.msra.gmra.mxu0 %v3016_v2  ;;  %v1867_v44 = vld [vmem:[%s3374_s1 + $0x2b8] sm:$0xf0] }
  0x64   :  { %1227 = vmatpush.bf16.msrb.mxu0 %v1774_v45  ;;  %1181 = vmatmul.bf16.vlgmr.msra.gmra.mxu1 %v2530_v48  ;;  %v2160_v48 = vld [vmem:[%s3374_s1 + $0x1c4] sm:$0xf]  ;;  %v2206_v45 = vld [vmem:[%s3374_s1 + $0x334] sm:$0xf]  ;;  %v3121_v0 = vpack.c.b16 %v254_v40, %v254_v40 }
  0x65   :  { %1245 = vmatpush.bf16.msrb.mxu1 %v1838_v51  ;;  %1199 = vmatmul.bf16.vlgmr.msra.gmra.mxu2 %v2541_v53  ;;  %v1747_v53 = vld [vmem:[%s3374_s1 + $0x1c8] sm:$0xf0]  ;;  %v1806_v51 = vor.u32 %v2174_v38, %v1803_v41  ;;  %v1934_v5 = vor.u32 %v2206_v45, %v1931_v46  ;;  %v2030_v38 = vor.u32 %v2230_v30, %v2027_v31  ;;  %v2228_v40 = vld [vmem:[%s3374_s1 + $0x3e4] sm:$0xf] }
  0x66   :  { %1263 = vmatpush.bf16.msrb.mxu2 %v1902_v56  ;;  %1217 = vmatmul.bf16.vlgmr.msra.gmra.mxu3 %v2543_v54  ;;  %v1950_v54 = vor.u32 %v2210_v21, %v1947_v22  ;;  %v1750_v33 = vor.u32 %v2160_v48, %v1747_v53  ;;  %v1870_v56 = vor.u32 %v2190_v43, %v1867_v44  ;;  %v1851_v21 = vld [vmem:[%s3374_s1 + $0x298] sm:$0xf0]  ;;  %v2202_v22 = vld [vmem:[%s3374_s1 + $0x314] sm:$0xf]  ;;  %v1715_v48 = vld [vmem:[%s3374_s1 + $0x188] sm:$0xf0] }
  0x67   :  { %1281 = vmatpush.bf16.msrb.mxu3 %v1966_v58  ;;  %v2156_v58 = vld [vmem:[%s3374_s1 + $0x1a4] sm:$0xf]  ;;  %v2019_v41 = vld [vmem:[%s3374_s1 + $0x3e8] sm:$0xf0] }
  0x68   :  { %1228 = vmatpush.bf16.msrb.mxu0 %v1766_v11  ;;  %v1923_v11 = vld [vmem:[%s3374_s1 + $0x328] sm:$0xf0]  ;;  %v2168_v53 = vld [vmem:[%s3374_s1 + $0x204] sm:$0xf]  ;;  %v2022_v45 = vor.u32 %v2228_v40, %v2019_v41 }
  0x69   :  { %1246 = vmatpush.bf16.msrb.mxu1 %v1830_v12  ;;  %v1734_v12 = vor.u32 %v2156_v58, %v1731_v60  ;;  %v1926_v18 = vor.u32 %v2204_v10, %v1923_v11  ;;  %v2244_v43 = vld [vmem:[%s3374_s1 + $0x464] sm:$0xf]  ;;  %v2083_v44 = vld [vmem:[%s3374_s1 + $0x468] sm:$0xf0]  ;;  %v2075_v58 = vld [vmem:[%s3374_s1 + $0x458] sm:$0xf0] }
  0x6a   :  { %1264 = vmatpush.bf16.msrb.mxu2 %v1894_v13  ;;  %v1798_v13 = vor.u32 %v2172_v63, %v1795_v6  ;;  %v2086_v46 = vor.u32 %v2244_v43, %v2083_v44  ;;  %v2238_v10 = vld [vmem:[%s3374_s1 + $0x434] sm:$0xf]  ;;  %v2059_v11 = vld [vmem:[%s3374_s1 + $0x438] sm:$0xf0] }
  0x6b   :  { %1282 = vmatpush.bf16.msrb.mxu3 %v1958_v17  ;;  %v2170_v17 = vld [vmem:[%s3374_s1 + $0x214] sm:$0xf] }
  0x6c   :  { %1229 = vmatpush.bf16.msrb.mxu0 %v1758_v23  ;;  %v1915_v23 = vld [vmem:[%s3374_s1 + $0x318] sm:$0xf0] }
  0x6d   :  { %1247 = vmatpush.bf16.msrb.mxu1 %v1822_v24  ;;  %v1726_v24 = vor.u32 %v2154_v15, %v1723_v16  ;;  %v1918_v26 = vor.u32 %v2202_v22, %v1915_v23  ;;  %v1987_v15 = vld [vmem:[%s3374_s1 + $0x3a8] sm:$0xf0]  ;;  %v2236_v16 = vld [vmem:[%s3374_s1 + $0x424] sm:$0xf]  ;;  %v2234_v22 = vld [vmem:[%s3374_s1 + $0x414] sm:$0xf] }
  0x6e   :  { %1265 = vmatpush.bf16.msrb.mxu2 %v1886_v25  ;;  %v2152_v25 = vld [vmem:[%s3374_s1 + $0x184] sm:$0xf]  ;;  %v2043_v23 = vld [vmem:[%s3374_s1 + $0x418] sm:$0xf0] }
  0x6f   :  { %1283 = vmatpush.bf16.msrb.mxu3 %v1950_v54  ;;  %v2184_v54 = vld [vmem:[%s3374_s1 + $0x284] sm:$0xf]  ;;  %v1718_v32 = vor.u32 %v2152_v25, %v1715_v48 }
  0x70   :  { %1230 = vmatpush.bf16.msrb.mxu0 %v1750_v33  ;;  %v2246_v33 = vld [vmem:[%s3374_s1 + $0x474] sm:$0xf]  ;;  %v1846_v36 = vor.u32 %v2184_v54, %v1843_v27  ;;  %v2216_v25 = vld [vmem:[%s3374_s1 + $0x384] sm:$0xf] }
  0x71   :  { %1248 = vmatpush.bf16.msrb.mxu1 %v1814_v34  ;;  %v2091_v34 = vld [vmem:[%s3374_s1 + $0x478] sm:$0xf0] }
  0x72   :  { %1266 = vmatpush.bf16.msrb.mxu2 %v1878_v35 }
  0x73   :  { %1284 = vmatpush.bf16.msrb.mxu3 %v1942_v39  ;;  %1168 = vmatmul.bf16.gmra.mxu0 %v3121_v0  ;;  %v2094_v39 = vor.u32 %v2246_v33, %v2091_v34 }
  0x74   :  { %1231 = vmatpush.bf16.msrb.mxu0 %v1742_v50  ;;  %1186 = vmatmul.bf16.gmra.mxu1 %v2644_v42  ;;  %v1790_v42 = vor.u32 %v2170_v17, %v1787_v19  ;;  %v2226_v50 = vld [vmem:[%s3374_s1 + $0x3d4] sm:$0xf]  ;;  %v2051_v17 = vld [vmem:[%s3374_s1 + $0x428] sm:$0xf0] }
  0x75   :  { %1249 = vmatpush.bf16.msrb.mxu1 %v1806_v51  ;;  %1204 = vmatmul.bf16.gmra.mxu2 %v2655_v47  ;;  %v1854_v47 = vor.u32 %v2186_v20, %v1851_v21  ;;  %v2011_v51 = vld [vmem:[%s3374_s1 + $0x3d8] sm:$0xf0]  ;;  %v2054_v19 = vor.u32 %v2236_v16, %v2051_v17  ;;  %v2218_v20 = vld [vmem:[%s3374_s1 + $0x394] sm:$0xf] }
  0x76   :  { %1267 = vmatpush.bf16.msrb.mxu2 %v1870_v56  ;;  %1222 = vmatmul.bf16.gmra.mxu3 %v2657_v49  ;;  %v1779_v49 = vld [vmem:[%s3374_s1 + $0x208] sm:$0xf0]  ;;  %v2242_v56 = vld [vmem:[%s3374_s1 + $0x454] sm:$0xf]  ;;  %v2014_v60 = vor.u32 %v2226_v50, %v2011_v51  ;;  %v1979_v21 = vld [vmem:[%s3374_s1 + $0x398] sm:$0xf0] }
  0x77   :  { %1285 = vmatpush.bf16.msrb.mxu3 %v1934_v5  ;;  %v1782_v35 = vor.u32 %v2168_v53, %v1779_v49  ;;  %v2078_v63 = vor.u32 %v2242_v56, %v2075_v58  ;;  %v2003_v5 = vld [vmem:[%s3374_s1 + $0x3c8] sm:$0xf0] }
  0x78   :  { %1232 = vmatpush.bf16.msrb.mxu0 %v1734_v12  ;;  %v1998_v12 = vor.u32 %v2222_v8, %v1995_v9 }
  0x79   :  { %1250 = vmatpush.bf16.msrb.mxu1 %v1798_v13  ;;  %v2062_v13 = vor.u32 %v2238_v10, %v2059_v11 }
  0x7a   :  { %1268 = vmatpush.bf16.msrb.mxu2 %v1862_v14  ;;  %v2220_v14 = vld [vmem:[%s3374_s1 + $0x3a4] sm:$0xf] }
  0x7b   :  { %1286 = vmatpush.bf16.msrb.mxu3 %v1926_v18  ;;  %v1990_v18 = vor.u32 %v2220_v14, %v1987_v15 }
  0x7c   :  { %1233 = vmatpush.bf16.msrb.mxu0 %v1726_v24  ;;  %v1982_v24 = vor.u32 %v2218_v20, %v1979_v21 }
  0x7d   :  { %1251 = vmatpush.bf16.msrb.mxu1 %v1790_v42  ;;  %v1971_v42 = vld [vmem:[%s3374_s1 + $0x388] sm:$0xf0] }
  0x7e   :  { %1269 = vmatpush.bf16.msrb.mxu2 %v1854_v47 }
  0x7f   :  { %1287 = vmatpush.bf16.msrb.mxu3 %v1918_v26 }
  0x80   :  { %1234 = vmatpush.bf16.msrb.mxu0 %v1718_v32 }
  0x81   :  { %1252 = vmatpush.bf16.msrb.mxu1 %v1782_v35 }
  0x82   :  { %1270 = vmatpush.bf16.msrb.mxu2 %v1846_v36 }
  0x83   :  { %1288 = vmatpush.bf16.msrb.mxu3 %v1910_v37  ;;  %1235 = vmatmul.bf16.vlgmr.msrb.gmra.mxu0 %v2551_v57  ;;  %v2224_v57 = vld [vmem:[%s3374_s1 + $0x3c4] sm:$0xf] }
  0x84   :  { %1299 = vmatpush.bf16.msra.mxu0 %v2030_v38  ;;  %1253 = vmatmul.bf16.vlgmr.msrb.gmra.mxu1 %v2788_v55  ;;  %v2240_v55 = vld [vmem:[%s3374_s1 + $0x444] sm:$0xf] }
  0x85   :  { %1317 = vmatpush.bf16.msra.mxu1 %v2094_v39  ;;  %1271 = vmatmul.bf16.vlgmr.msrb.gmra.mxu2 %v2799_v61  ;;  %v2067_v61 = vld [vmem:[%s3374_s1 + $0x448] sm:$0xf0] }
  0x86   :  { %2248 = vmatpush.bf16.msra.mxu2 %v2030_v38  ;;  %1289 = vmatmul.bf16.vlgmr.msrb.gmra.mxu3 %v2801_v62  ;;  %v2006_v62 = vor.u32 %v2224_v57, %v2003_v5  ;;  %v2070_v6 = vor.u32 %v2240_v55, %v2067_v61 }
  0x87   :  { %2256 = vmatpush.bf16.msra.mxu3 %v2094_v39 }
  0x88   :  { %1300 = vmatpush.bf16.msra.mxu0 %v2022_v45 }
  0x89   :  { %1318 = vmatpush.bf16.msra.mxu1 %v2086_v46 }
  0x8a   :  { %2249 = vmatpush.bf16.msra.mxu2 %v2022_v45 }
  0x8b   :  { %2257 = vmatpush.bf16.msra.mxu3 %v2086_v46 }
  0x8c   :  { %1301 = vmatpush.bf16.msra.mxu0 %v2014_v60 }
  0x8d   :  { %1319 = vmatpush.bf16.msra.mxu1 %v2078_v63 }
  0x8e   :  { %2250 = vmatpush.bf16.msra.mxu2 %v2014_v60 }
  0x8f   :  { %2258 = vmatpush.bf16.msra.mxu3 %v2078_v63 }
  0x90   :  { %1302 = vmatpush.bf16.msra.mxu0 %v2006_v62 }
  0x91   :  { %1320 = vmatpush.bf16.msra.mxu1 %v2070_v6 }
  0x92   :  { %2251 = vmatpush.bf16.msra.mxu2 %v2006_v62 }
  0x93   :  { %2259 = vmatpush.bf16.msra.mxu3 %v2070_v6  ;;  %1240 = vmatmul.bf16.gmra.mxu0 %v2665_v52  ;;  %v2046_v52 = vor.u32 %v2234_v22, %v2043_v23 }
  0x94   :  { %1303 = vmatpush.bf16.msra.mxu0 %v1998_v12  ;;  %1258 = vmatmul.bf16.gmra.mxu1 %v2902_v59  ;;  %v2232_v59 = vld [vmem:[%s3374_s1 + $0x404] sm:$0xf] }
  0x95   :  { %1321 = vmatpush.bf16.msra.mxu1 %v2062_v13  ;;  %1276 = vmatmul.bf16.gmra.mxu2 %v2913_v3  ;;  %v2035_v3 = vld [vmem:[%s3374_s1 + $0x408] sm:$0xf0] }
  0x96   :  { %2252 = vmatpush.bf16.msra.mxu2 %v1998_v12  ;;  %1294 = vmatmul.bf16.gmra.mxu3 %v2915_v4  ;;  %v1974_v4 = vor.u32 %v2216_v25, %v1971_v42  ;;  %v2038_v47 = vor.u32 %v2232_v59, %v2035_v3 }
  0x97   :  { %2260 = vmatpush.bf16.msra.mxu3 %v2062_v13 }
  0x98   :  { %1304 = vmatpush.bf16.msra.mxu0 %v1990_v18 }
  0x99   :  { %1322 = vmatpush.bf16.msra.mxu1 %v2054_v19 }
  0x9a   :  { %2253 = vmatpush.bf16.msra.mxu2 %v1990_v18 }
  0x9b   :  { %2261 = vmatpush.bf16.msra.mxu3 %v2054_v19 }
  0x9c   :  { %1305 = vmatpush.bf16.msra.mxu0 %v1982_v24 }
  0x9d   :  { %1323 = vmatpush.bf16.msra.mxu1 %v2046_v52 }
  0x9e   :  { %2254 = vmatpush.bf16.msra.mxu2 %v1982_v24 }
  0x9f   :  { %2262 = vmatpush.bf16.msra.mxu3 %v2046_v52 }
  0xa0   :  { %1306 = vmatpush.bf16.msra.mxu0 %v1974_v4  ;;  %v1020_v48 = vpop.f32.mrf.mxu0 }
  0xa1   :  { %1324 = vmatpush.bf16.msra.mxu1 %v2038_v47  ;;  %v1038_v53 = vpop.f32.mrf.mxu1 }
  0xa2   :  { %2255 = vmatpush.bf16.msra.mxu2 %v1974_v4  ;;  %v1039_v49 = vadd.f32 %v1038_v53, %v1020_v48 }
  0xa3   :  { %2263 = vmatpush.bf16.msra.mxu3 %v2038_v47  ;;  %1307 = vmatmul.bf16.vlgmr.msra.gmra.mxu0 %v2809_v1 }
  0xa4   :  { %1325 = vmatmul.bf16.vlgmr.msra.gmra.mxu1 %v3016_v2 }
  0xa5   :  { %1312 = vmatmul.bf16.vlgmr.msra.gmra.mxu2 %v2923_v7 }
  0xa6   :  { %1330 = vmatmul.bf16.vlgmr.msra.gmra.mxu3 %v3121_v0 }
  0xa8   :  { %v1056_v26 = vpop.f32.mrf.mxu2  ;;  %v1022_v28 = vpop.f32.mrf.mxu0 }
  0xa9   :  { %v1057_v54 = vadd.f32 %v1056_v26, %v1039_v49  ;;  %v1074_v27 = vpop.f32.mrf.mxu3  ;;  %v1040_v29 = vpop.f32.mrf.mxu1 }
  0xaa   :  { %v1041_v31 = vadd.f32 %v1040_v29, %v1022_v28 }
  0xab   :  { %v1075_v30 = vadd.f32 %v1074_v27, %v1057_v54 }
  0xb0   :  { %v1058_v32 = vpop.f32.mrf.mxu2  ;;  %v1025_v35 = vpop.f32.mrf.mxu0 }
  0xb1   :  { %v1059_v33 = vadd.f32 %v1058_v32, %v1041_v31  ;;  %v1076_v34 = vpop.f32.mrf.mxu3  ;;  %v1043_v36 = vpop.f32.mrf.mxu1 }
  0xb2   :  { %v1044_v1 = vadd.f32 %v1043_v36, %v1025_v35 }
  0xb3   :  { %v1077_v37 = vadd.f32 %v1076_v34, %v1059_v33 }
  0xb8   :  { %v1061_v38 = vpop.f32.mrf.mxu2  ;;  %v1027_v2 = vpop.f32.mrf.mxu0 }
  0xb9   :  { %v1062_v7 = vadd.f32 %v1061_v38, %v1044_v1  ;;  %v1079_v39 = vpop.f32.mrf.mxu3  ;;  %v1045_v40 = vpop.f32.mrf.mxu1 }
  0xba   :  { %v48_v40 = vlaneseq }
  0xbb   :  { %v1080_v0 = vadd.f32 %v1079_v39, %v1062_v7 }
  0xbc   :  { %vm3315_vm0 = vcmp.lt.s32.totalorder %v48_v40, 256 }
  0xc0   :  { %v1063_v41 = vpop.f32.mrf.mxu2  ;;  %v1092_v44 = vpop.f32.mrf.mxu0 }
  0xc1   :  { %v1081_v43 = vpop.f32.mrf.mxu3  ;;  %v1093_v45 = vadd.f32 %v1092_v44, %v1075_v30  ;;  %v1110_v46 = vpop.f32.mrf.mxu1 }
  0xc2   :  { %v2267_v43 = vmov 0.0  }
  0xc3   :  { %v1111_v50 = vadd.f32 %v1110_v46, %v1093_v45  ;;  %52 = vst.msk [vmem:[#allocation2] sm:$0x3] %vm3315_vm0, %v2267_v43 }
  0xc4   :  { %53 = vst.msk [vmem:[#allocation3] sm:$0x3] %vm3315_vm0, %v2267_v43 }
  0xc8   :  { %v1128_v51 = vpop.f32.mrf.mxu2  ;;  %v1094_v60 = vpop.f32.mrf.mxu0 }
  0xc9   :  { %v1129_v56 = vadd.f32 %v1128_v51, %v1111_v50  ;;  %v1146_v58 = vpop.f32.mrf.mxu3  ;;  %v1095_v63 = vadd.f32 %v1094_v60, %v1077_v37  ;;  %v1112_v57 = vpop.f32.mrf.mxu1 }
  0xcb   :  { %v1147_v5 = vadd.f32 %v1146_v58, %v1129_v56  ;;  %v1113_v55 = vadd.f32 %v1112_v57, %v1095_v63 }
  0xd0   :  { %v1130_v61 = vpop.f32.mrf.mxu2  ;;  %v1097_v8 = vpop.f32.mrf.mxu0 }
  0xd1   :  { %v1131_v62 = vadd.f32 %v1130_v61, %v1113_v55  ;;  %v1148_v6 = vpop.f32.mrf.mxu3  ;;  %v1098_v9 = vadd.f32 %v1097_v8, %v1080_v0  ;;  %v1115_v10 = vpop.f32.mrf.mxu1 }
  0xd3   :  { %v1149_v11 = vadd.f32 %v1148_v6, %v1131_v62  ;;  %v1116_v12 = vadd.f32 %v1115_v10, %v1098_v9 }
  0xd8   :  { %v1133_v13 = vpop.f32.mrf.mxu2  ;;  %v1099_v16 = vpop.f32.mrf.mxu0 }
  0xd9   :  { %v1134_v14 = vadd.f32 %v1133_v13, %v1116_v12  ;;  %v1151_v15 = vpop.f32.mrf.mxu3  ;;  %v1117_v17 = vpop.f32.mrf.mxu1 }
  0xdb   :  { %v1152_v18 = vadd.f32 %v1151_v15, %v1134_v14 }
  0xe0   :  { %v1135_v19 = vpop.f32.mrf.mxu2  ;;  %v1164_v21 = vpop.f32.mrf.mxu0 }
  0xe1   :  { %v1153_v20 = vpop.f32.mrf.mxu3  ;;  %v3298_v22 = vadd.f32 %v1164_v21, %v1147_v5  ;;  %v1182_v23 = vpop.f32.mrf.mxu1 }
  0xe3   :  { %v1365_v3 = vmul.f32 %v3298_v22, %v3298_v22 }
  0xe8   :  { %v1200_v24 = vpop.f32.mrf.mxu2  ;;  %v1166_v25 = vpop.f32.mrf.mxu0 }
  0xe9   :  { %v1218_v52 = vpop.f32.mrf.mxu3  ;;  %v3300_v42 = vadd.f32 %v1166_v25, %v1149_v11  ;;  %v1184_v59 = vpop.f32.mrf.mxu1  ;;  %v1201_v50 = vadd.f32 %v1200_v24, %v1182_v23 }
  0xeb   :  { %v1336_v4 = vadd.f32 %v3300_v42, %v3298_v22  ;;  %v1367_v47 = vmul.f32 %v3300_v42, %v3300_v42  ;;  %v1219_v56 = vadd.f32 %v1218_v52, %v1201_v50 }
  0xed   :  { %v1371_v48 = vadd.f32 %v1367_v47, %v1365_v3 }
  0xf0   :  { %v1202_v53 = vpop.f32.mrf.mxu2  ;;  %v1169_v26 = vpop.f32.mrf.mxu0 }
  0xf1   :  { %v1220_v49 = vpop.f32.mrf.mxu3  ;;  %v3308_v54 = vadd.f32 %v1169_v26, %v1152_v18  ;;  %v1187_v27 = vpop.f32.mrf.mxu1  ;;  %v1203_v58 = vadd.f32 %v1202_v53, %v1184_v59 }
  0xf3   :  { %v1337_v28 = vadd.f32 %v1336_v4, %v3308_v54  ;;  %v1369_v29 = vmul.f32 %v3308_v54, %v3308_v54  ;;  %v1221_v62 = vadd.f32 %v1220_v49, %v1203_v58 }
  0xf5   :  { %v3313_v30 = vadd.f32 %v1371_v48, %v1369_v29  ;;  %v1338_v3 = vrot.slane %v1337_v28, 4 }
  0xf7   :  { %v1373_v53 = vrot.slane %v3313_v30, 4 }
  0xf8   :  { %v1205_v31 = vpop.f32.mrf.mxu2  ;;  %v1171_v33 = vpop.f32.mrf.mxu0 }
  0xf9   :  { %v1223_v32 = vpop.f32.mrf.mxu3  ;;  %v1189_v34 = vpop.f32.mrf.mxu1  ;;  %v1206_v51 = vadd.f32 %v1205_v31, %v1187_v27  ;;  %v1339_v27 = vadd.f32 %v1338_v3, %v1337_v28  ;;  %v1374_v33 = vadd.f32 %v1373_v53, %v3313_v30 }
  0xfb   :  { %v1224_v61 = vadd.f32 %v1223_v32, %v1206_v51  ;;  %v1340_v28 = vrot.slane %v1339_v27, 2 }
 0x100   :  { %v1207_v35 = vpop.f32.mrf.mxu2  ;;  %v1236_v37 = vpop.f32.mrf.mxu0 }
 0x101   :  { %v1225_v36 = vpop.f32.mrf.mxu3  ;;  %v1254_v1 = vpop.f32.mrf.mxu1  ;;  %v1237_v5 = vadd.f32 %v1236_v37, %v1219_v56 }
 0x103   :  { %v1255_v8 = vadd.f32 %v1254_v1, %v1237_v5  ;;  %v1335_v5 = vld [vmem:[#allocation2] sm:$0x3] }
 0x108   :  { %v1272_v38 = vpop.f32.mrf.mxu2  ;;  %v1238_v39 = vpop.f32.mrf.mxu0 }
 0x109   :  { %v1290_v7 = vpop.f32.mrf.mxu3  ;;  %v1256_v2 = vpop.f32.mrf.mxu1  ;;  %v1239_v9 = vadd.f32 %v1238_v39, %v1221_v62  ;;  %v1273_v10 = vadd.f32 %v1272_v38, %v1255_v8  ;;  %v1375_v39 = vrot.slane %v1374_v33, 2  ;;  %v1364_v8 = vld [vmem:[#allocation3] sm:$0x3] }
 0x10b   :  { %v1257_v15 = vadd.f32 %v1256_v2, %v1239_v9  ;;  %v1291_v18 = vadd.f32 %v1290_v7, %v1273_v10 }
 0x110   :  { %v1274_v41 = vpop.f32.mrf.mxu2  ;;  %v1241_v45 = vpop.f32.mrf.mxu0 }
 0x111   :  { %v1292_v44 = vpop.f32.mrf.mxu3  ;;  %v1259_v46 = vpop.f32.mrf.mxu1  ;;  %v1242_v6 = vadd.f32 %v1241_v45, %v1224_v61  ;;  %v1275_v19 = vadd.f32 %v1274_v41, %v1257_v15  ;;  %v1341_v41 = vadd.f32 %v1340_v28, %v1339_v27  ;;  %v1376_v45 = vadd.f32 %v1375_v39, %v1374_v33 }
 0x113   :  { %v1260_v12 = vadd.f32 %v1259_v46, %v1242_v6  ;;  %v1293_v23 = vadd.f32 %v1292_v44, %v1275_v19  ;;  %v1342_v50 = vrot.slane %v1341_v41, 1  ;;  %v1377_v58 = vrot.slane %v1376_v45, 1 }
 0x115   :  { %v1378_v62 = vadd.f32 %v1377_v58, %v1376_v45 }
 0x118   :  { %v1277_v60 = vpop.f32.mrf.mxu2  ;;  %v1243_v57 = vpop.f32.mrf.mxu0 }
 0x119   :  { %v1295_v63 = vpop.f32.mrf.mxu3  ;;  %v1261_v55 = vpop.f32.mrf.mxu1  ;;  %v1278_v17 = vadd.f32 %v1277_v60, %v1260_v12  ;;  %v1343_v57 = vadd.f32 %v1342_v50, %v1341_v41 }
 0x11b   :  { %v1296_v21 = vadd.f32 %v1295_v63, %v1278_v17 }
 0x120   :  { %v1279_v11 = vpop.f32.mrf.mxu2  ;;  %v1308_v14 = vpop.f32.mrf.mxu0 }
 0x121   :  { %v1297_v13 = vpop.f32.mrf.mxu3  ;;  %v1326_v16 = vpop.f32.mrf.mxu1  ;;  %v1309_v20 = vadd.f32 %v1308_v14, %v1291_v18 }
 0x123   :  { %v3323_v4 = vadd.f32 %v1326_v16, %v1309_v20 }
 0x125   :  { %v1366_v29 = vmul.f32 %v3323_v4, %v3323_v4 }
 0x128   :  { %v1313_v24 = vpop.f32.mrf.mxu2  ;;  %v1310_v59 = vpop.f32.mrf.mxu0 }
 0x129   :  { %v1314_v52 = vadd.f32 %v1313_v24, %v1296_v21  ;;  %v1331_v25 = vpop.f32.mrf.mxu3  ;;  %v1311_v47 = vadd.f32 %v1310_v59, %v1293_v23  ;;  %v1328_v48 = vpop.f32.mrf.mxu1 }
 0x12b   :  { %v3326_v49 = vadd.f32 %v1331_v25, %v1314_v52  ;;  %v3328_v26 = vadd.f32 %v1328_v48, %v1311_v47  ;;  %v1415_v25 = vld [vmem:[%s3376_s2] sm:$0x3] }
 0x12c   :  { %v1428_v47 = vld [vmem:[%s3377_s3] sm:$0x3] }
 0x12d   :  { %v1344_v31 = vadd.f32 %v3328_v26, %v3323_v4  ;;  %v1368_v32 = vmul.f32 %v3328_v26, %v3328_v26  ;;  %v1370_v34 = vmul.f32 %v3326_v49, %v3326_v49 }
 0x12f   :  { %v1345_v35 = vadd.f32 %v1344_v31, %v3326_v49  ;;  %v1379_v36 = vadd.f32 %v1368_v32, %v1366_v29 }
 0x130   :  { %v1315_v37 = vpop.f32.mrf.mxu2 }
 0x131   :  { %v1333_v1 = vpop.f32.mrf.mxu3  ;;  %v1346_v38 = vrot.slane %v1345_v35, 4  ;;  %v1380_v7 = vadd.f32 %v1379_v36, %v1370_v34 }
 0x133   :  { %v1347_v2 = vadd.f32 %v1346_v38, %v1345_v35  ;;  %v1381_v40 = vrot.slane %v1380_v7, 4 }
 0x135   :  { %v1348_v43 = vrot.slane %v1347_v2, 2  ;;  %v1382_v44 = vadd.f32 %v1381_v40, %v1380_v7 }
 0x137   :  { %v1349_v46 = vadd.f32 %v1348_v43, %v1347_v2  ;;  %v1383_v30 = vrot.slane %v1382_v44, 2 }
 0x139   :  { %v1350_v51 = vrot.slane %v1349_v46, 1  ;;  %v1384_v56 = vadd.f32 %v1383_v30, %v1382_v44 }
 0x13b   :  { %v1351_v60 = vadd.f32 %v1350_v51, %v1349_v46  ;;  %v1385_v63 = vrot.slane %v1384_v56, 1 }
 0x13d   :  { %v1354_v55 = vrot.slane %v1351_v60, 7  ;;  %v1386_v61 = vadd.f32 %v1385_v63, %v1384_v56 }
 0x13f   :  { %v1356_v6 = vsel %vm1355_vm1, %v1343_v57, %v1354_v55  ;;  %v1389_v9 = vrot.slane %v1386_v61, 7 }
 0x140   :  { %v1358_v10 = vadd.f32 %v1356_v6, %v1335_v5 }
 0x141   :  { %v1390_v11 = vsel %vm1355_vm1, %v1378_v62, %v1389_v9 }
 0x142   :  { %1363 = vst.msk [vmem:[#allocation2] sm:$0x3] %vm3315_vm0, %v1358_v10  ;;  %v1392_v12 = vadd.f32 %v1390_v11, %v1364_v8 }
 0x144   :  { %1393 = vst.msk [vmem:[#allocation3] sm:$0x3] %vm3315_vm0, %v1392_v12 }
 0x149   :  { %v1409_v13 = vld [vmem:[#allocation2] sm:$0x3] }
 0x14a   :  { %v1410_v14 = vmul.f32 0.055555556, %v1409_v13 }
 0x14b   :  { %v1411_v15 = vld [vmem:[#allocation3] sm:$0x3] }
 0x14c   :  { %v1412_v16 = vmul.f32 0.055555556, %v1411_v15  ;;  %v1413_v17 = vmul.f32 %v1410_v14, %v1410_v14 }
 0x14e   :  { %v1414_v18 = vsub.f32 %v1412_v16, %v1413_v17 }
 0x150   :  { %v1416_v19 = vadd.f32 1e-05, %v1414_v18 }
 0x152   :  { %2265 = vrsqrt.f32 %v1416_v19  ;;  %vm1423_vm3 = vweird.f32 %v1416_v19 }
 0x158   :  { %v2266_v20 = vpop.eup %2265 }
 0x159   :  { %v1418_v21 = vmul.f32 %v2266_v20, %v1416_v19  ;;  %vm1424_vm2 = vweird.f32 %v2266_v20 }
 0x15a   :  { %vm1425_vm4 = vmor %vm1423_vm3, %vm1424_vm2 }
 0x15b   :  { %v1419_v23 = vmul.f32 %v2266_v20, %v1418_v21 }
 0x15d   :  { %v1420_v24 = vmul.f32 0.5, %v1419_v23 }
 0x15f   :  { %v1421_v52 = vsub.f32 1.5, %v1420_v24 }
 0x161   :  { %v1422_v0 = vmul.f32 %v2266_v20, %v1421_v52 }
 0x163   :  { %v1426_v59 = vsel %vm1425_vm4, %v2266_v20, %v1422_v0 }
 0x164   :  { %v1427_v3 = vmul.f32 %v1426_v59, %v1415_v25 }
 0x166   :  { %v1429_v48 = vmul.f32 %v1427_v3, %v1410_v14  ;;  %v1438_v53 = vperm.slane %v1427_v3, 0  ;;  %v1439_v27 = vperm.slane %v1427_v3, 1 }
 0x168   :  { %v1430_v29 = vsub.f32 %v1428_v47, %v1429_v48  ;;  %v1442_v31 = vmul.f32 %v1438_v53, %v3298_v22  ;;  %v1443_v32 = vmul.f32 %v1439_v27, %v3323_v4  ;;  %v1444_v33 = vmul.f32 %v1438_v53, %v3300_v42 }
 0x169   :  { %v1445_v34 = vmul.f32 %v1439_v27, %v3328_v26  ;;  %v1446_v37 = vmul.f32 %v1438_v53, %v3308_v54  ;;  %v1447_v1 = vmul.f32 %v1439_v27, %v3326_v49 }
 0x16a   :  { %v1449_v35 = vperm.slane %v1430_v29, 0  ;;  %v1450_v36 = vperm.slane %v1430_v29, 1 }
 0x16c   :  { %v1453_v28 = vadd.f32 %v1449_v35, %v1442_v31  ;;  %v1454_v38 = vadd.f32 %v1450_v36, %v1443_v32  ;;  %v1455_v7 = vadd.f32 %v1449_v35, %v1444_v33  ;;  %v1456_v39 = vadd.f32 %v1450_v36, %v1445_v34 }
 0x16d   :  { %v1457_v2 = vadd.f32 %v1449_v35, %v1446_v37  ;;  %v1458_v40 = vadd.f32 %v1450_v36, %v1447_v1 }
 0x16e   :  { %v1459_v41 = vmax.f32 %v1453_v28, 0.0  ;;  %v1460_v22 = vmax.f32 %v1454_v38, 0.0  ;;  %v1461_v43 = vmax.f32 %v1455_v7, 0.0  ;;  %v1462_v4 = vmax.f32 %v1456_v39, 0.0 }
 0x16f   :  { %v1463_v44 = vmax.f32 %v1457_v2, 0.0  ;;  %v1464_v42 = vmax.f32 %v1458_v40, 0.0 }
 0x170   :  { %1465 = vst [vmem:[%s3378_s4] sm:$0xff] %v1459_v41 }
 0x171   :  { %1466 = vst [vmem:[%s3378_s4 + $0x8] sm:$0xff] %v1460_v22 }
 0x172   :  { %1467 = vst [vmem:[%s3378_s4 + $0x10] sm:$0xff] %v1461_v43 }
 0x173   :  { %1468 = vst [vmem:[%s3378_s4 + $0x18] sm:$0xff] %v1462_v4 }
 0x174   :  { %1469 = vst [vmem:[%s3378_s4 + $0x20] sm:$0xff] %v1463_v44 }
 0x175   :  { %1470 = vst [vmem:[%s3378_s4 + $0x28] sm:$0xff] %v1464_v42 }

// kernel: generator_forward.5
= control target key start
LH: loop header
LB: loop body
LE: loop exit
PB: predicated region body
PF: predicated region fallthrough
CT: control target
= control target key end

     0   :  { %s5563_s1 = inlined_call_operand.vmem [shape: bf16[1,2304,128], index: 1, kind: input, shape index: {}]   ;;  %s5564_s0 = inlined_call_operand.vmem [shape: bf16[104,2304], index: 0, kind: input, shape index: {}]   ;;  %s5565_s2 = inlined_call_operand.vmem [shape: f32[1,128], index: 2, kind: input, shape index: {}]   ;;  %s5566_s3 = inlined_call_operand.vmem [shape: f32[1,128], index: 3, kind: input, shape index: {}]   ;;  %s5567_s4 = inlined_call_operand.vmem [shape: f32[104,128], index: 4, kind: output, shape index: {}]  }
   0x1   :  { %v3995_v0 = vld [vmem:[%s5563_s1 + $0x38] sm:$0xff]  ;;  %v3994_v2 = vld [vmem:[%s5563_s1 + $0x30] sm:$0xff]  ;;  %v3993_v4 = vld [vmem:[%s5563_s1 + $0x28] sm:$0xff] }
   0x2   :  { %v4003_v1 = vld [vmem:[%s5563_s1 + $0x78] sm:$0xff]  ;;  %1922 = vmatpush.bf16.msra.mxu0 %v3995_v0  ;;  %4132 = vmatpush.bf16.msra.mxu2 %v3995_v0  ;;  %v4002_v3 = vld [vmem:[%s5563_s1 + $0x70] sm:$0xff]  ;;  %v4001_v5 = vld [vmem:[%s5563_s1 + $0x68] sm:$0xff] }
   0x3   :  { %1965 = vmatpush.bf16.msra.mxu1 %v4003_v1  ;;  %4140 = vmatpush.bf16.msra.mxu3 %v4003_v1  ;;  %v3992_v6 = vld [vmem:[%s5563_s1 + $0x20] sm:$0xff]  ;;  %v3991_v8 = vld [vmem:[%s5563_s1 + $0x18] sm:$0xff]  ;;  %v3990_v10 = vld [vmem:[%s5563_s1 + $0x10] sm:$0xff] }
   0x4   :  { %v4000_v7 = vld [vmem:[%s5563_s1 + $0x60] sm:$0xff]  ;;  %v3999_v9 = vld [vmem:[%s5563_s1 + $0x58] sm:$0xff]  ;;  %v3998_v11 = vld [vmem:[%s5563_s1 + $0x50] sm:$0xff] }
   0x5   :  { %v3989_v12 = vld [vmem:[%s5563_s1 + $0x8] sm:$0xff]  ;;  %v3988_v14 = vld [vmem:[%s5563_s1] sm:$0xff]  ;;  %v4027_v24 = vld [vmem:[%s5563_s1 + $0x138] sm:$0xff] }
   0x6   :  { %1923 = vmatpush.bf16.msra.mxu0 %v3994_v2  ;;  %4133 = vmatpush.bf16.msra.mxu2 %v3994_v2  ;;  %v3997_v13 = vld [vmem:[%s5563_s1 + $0x48] sm:$0xff]  ;;  %v3996_v15 = vld [vmem:[%s5563_s1 + $0x40] sm:$0xff]  ;;  %v4035_v25 = vld [vmem:[%s5563_s1 + $0x178] sm:$0xff] }
   0x7   :  { %1966 = vmatpush.bf16.msra.mxu1 %v4002_v3  ;;  %4141 = vmatpush.bf16.msra.mxu3 %v4002_v3  ;;  %v2874_v16 = vld [vmem:[%s5564_s0] sm:$0xf]  ;;  %v3889_v17 = vld [vmem:[%s5564_s0 + $0x44] sm:$0xf0]  ;;  %v3880_v20 = vld [vmem:[%s5564_s0 + $0x4] sm:$0xf] }
   0x8   :  { %v3162_v18 = vld [vmem:[%s5564_s0 + $0x240] sm:$0xf]  ;;  %v3961_v19 = vld [vmem:[%s5564_s0 + $0x284] sm:$0xf0]  ;;  %v2876_v21 = vld [vmem:[%s5564_s0 + $0x48] sm:$0xf0]  ;;  %v2875_v26 = vor.u32 %v3889_v17, %v2874_v16 }
   0x9   :  { %v3952_v22 = vld [vmem:[%s5564_s0 + $0x244] sm:$0xf]  ;;  %v3164_v23 = vld [vmem:[%s5564_s0 + $0x288] sm:$0xf0]  ;;  %v3163_v27 = vor.u32 %v3961_v19, %v3162_v18  ;;  %v2879_v28 = vor.u32 %v3880_v20, %v2876_v21  ;;  %v4011_v30 = vld [vmem:[%s5563_s1 + $0xb8] sm:$0xff] }
   0xa   :  { %1924 = vmatpush.bf16.msra.mxu0 %v3993_v4  ;;  %4134 = vmatpush.bf16.msra.mxu2 %v3993_v4  ;;  %v3167_v29 = vor.u32 %v3952_v22, %v3164_v23  ;;  %v4019_v31 = vld [vmem:[%s5563_s1 + $0xf8] sm:$0xff]  ;;  %v4026_v32 = vld [vmem:[%s5563_s1 + $0x130] sm:$0xff]  ;;  %v4025_v36 = vld [vmem:[%s5563_s1 + $0x128] sm:$0xff] }
   0xb   :  { %1967 = vmatpush.bf16.msra.mxu1 %v4001_v5  ;;  %4142 = vmatpush.bf16.msra.mxu3 %v4001_v5  ;;  %v4034_v33 = vld [vmem:[%s5563_s1 + $0x170] sm:$0xff]  ;;  %v4033_v37 = vld [vmem:[%s5563_s1 + $0x168] sm:$0xff]  ;;  %v4024_v41 = vld [vmem:[%s5563_s1 + $0x120] sm:$0xff] }
   0xc   :  { %v4010_v34 = vld [vmem:[%s5563_s1 + $0xb0] sm:$0xff]  ;;  %v4009_v38 = vld [vmem:[%s5563_s1 + $0xa8] sm:$0xff]  ;;  %v4032_v42 = vld [vmem:[%s5563_s1 + $0x160] sm:$0xff] }
   0xd   :  { %v4018_v35 = vld [vmem:[%s5563_s1 + $0xf0] sm:$0xff]  ;;  %v4017_v39 = vld [vmem:[%s5563_s1 + $0xe8] sm:$0xff]  ;;  %v3907_v43 = vld [vmem:[%s5564_s0 + $0xd4] sm:$0xf0] }
   0xe   :  { %1925 = vmatpush.bf16.msra.mxu0 %v3992_v6  ;;  %4135 = vmatpush.bf16.msra.mxu2 %v3992_v6  ;;  %v2946_v40 = vld [vmem:[%s5564_s0 + $0x90] sm:$0xf]  ;;  %v3979_v45 = vld [vmem:[%s5564_s0 + $0x314] sm:$0xf0]  ;;  %v3898_v46 = vld [vmem:[%s5564_s0 + $0x94] sm:$0xf] }
   0xf   :  { %1968 = vmatpush.bf16.msra.mxu1 %v4000_v7  ;;  %4143 = vmatpush.bf16.msra.mxu3 %v4000_v7  ;;  %v3234_v44 = vld [vmem:[%s5564_s0 + $0x2d0] sm:$0xf]  ;;  %v2948_v47 = vld [vmem:[%s5564_s0 + $0xd8] sm:$0xf0]  ;;  %v3970_v48 = vld [vmem:[%s5564_s0 + $0x2d4] sm:$0xf]  ;;  %v2947_v54 = vor.u32 %v3907_v43, %v2946_v40 }
  0x10   :  { %v3236_v49 = vld [vmem:[%s5564_s0 + $0x318] sm:$0xf0]  ;;  %v4008_v50 = vld [vmem:[%s5563_s1 + $0xa0] sm:$0xff]  ;;  %v3235_v55 = vor.u32 %v3979_v45, %v3234_v44  ;;  %v2951_v56 = vor.u32 %v3898_v46, %v2948_v47  ;;  %v4022_v60 = vld [vmem:[%s5563_s1 + $0x110] sm:$0xff] }
  0x11   :  { %v4016_v51 = vld [vmem:[%s5563_s1 + $0xe0] sm:$0xff]  ;;  %v4023_v52 = vld [vmem:[%s5563_s1 + $0x118] sm:$0xff]  ;;  %v3239_v57 = vor.u32 %v3970_v48, %v3236_v49  ;;  %v4030_v61 = vld [vmem:[%s5563_s1 + $0x150] sm:$0xff] }
  0x12   :  { %1926 = vmatpush.bf16.msra.mxu0 %v3991_v8  ;;  %4136 = vmatpush.bf16.msra.mxu2 %v3991_v8  ;;  %v4031_v53 = vld [vmem:[%s5563_s1 + $0x158] sm:$0xff]  ;;  %v4006_v62 = vld [vmem:[%s5563_s1 + $0x90] sm:$0xff]  ;;  %v4021_v0 = vld [vmem:[%s5563_s1 + $0x108] sm:$0xff] }
  0x13   :  { %1969 = vmatpush.bf16.msra.mxu1 %v3999_v9  ;;  %4144 = vmatpush.bf16.msra.mxu3 %v3999_v9  ;;  %v4007_v58 = vld [vmem:[%s5563_s1 + $0x98] sm:$0xff]  ;;  %v4014_v63 = vld [vmem:[%s5563_s1 + $0xd0] sm:$0xff]  ;;  %v4029_v1 = vld [vmem:[%s5563_s1 + $0x148] sm:$0xff] }
  0x14   :  { %v4015_v59 = vld [vmem:[%s5563_s1 + $0xd8] sm:$0xff]  ;;  %v158_v2 = vld [vmem:[%s5564_s0 + $0x360] sm:$0xff]  ;;  %v4005_v3 = vld [vmem:[%s5563_s1 + $0x88] sm:$0xff] }
  0x15   :  { %v4013_v4 = vld [vmem:[%s5563_s1 + $0xc8] sm:$0xff]  ;;  %v4020_v5 = vld [vmem:[%s5563_s1 + $0x100] sm:$0xff]  ;;  %v788_v7 = vunpack.c.l.b16 %v158_v2  ;;  %v4051_v16 = vld [vmem:[%s5563_s1 + $0x1f8] sm:$0xff] }
  0x16   :  { %1927 = vmatpush.bf16.msra.mxu0 %v3990_v10  ;;  %4137 = vmatpush.bf16.msra.mxu2 %v3990_v10  ;;  %v4028_v6 = vld [vmem:[%s5563_s1 + $0x140] sm:$0xff]  ;;  %v3925_v9 = vld [vmem:[%s5564_s0 + $0x164] sm:$0xf0]  ;;  %v4059_v21 = vld [vmem:[%s5563_s1 + $0x238] sm:$0xff] }
  0x17   :  { %1970 = vmatpush.bf16.msra.mxu1 %v3998_v11  ;;  %4145 = vmatpush.bf16.msra.mxu3 %v3998_v11  ;;  %v3018_v8 = vld [vmem:[%s5564_s0 + $0x120] sm:$0xf]  ;;  %v3916_v10 = vld [vmem:[%s5564_s0 + $0x124] sm:$0xf]  ;;  %v789_v11 = vunpack.c.h.b16 %v158_v2  ;;  %v914_v18 = vpack.c.b16 %v788_v7, %v788_v7  ;;  %v4067_v22 = vld [vmem:[%s5563_s1 + $0x278] sm:$0xff] }
  0x18   :  { %v3019_v17 = vor.u32 %v3925_v9, %v3018_v8  ;;  %v4042_v23 = vld [vmem:[%s5563_s1 + $0x1b0] sm:$0xff]  ;;  %v4049_v40 = vld [vmem:[%s5563_s1 + $0x1e8] sm:$0xff]  ;;  %v2954_v43 = vld [vmem:[%s5564_s0 + $0x98] sm:$0xf] }
  0x19   :  { %v915_v20 = vpack.c.b16 %v789_v11, %v789_v11  ;;  %v3908_v44 = vld [vmem:[%s5564_s0 + $0xdc] sm:$0xf0]  ;;  %v3899_v45 = vld [vmem:[%s5564_s0 + $0x9c] sm:$0xf]  ;;  %v2890_v46 = vld [vmem:[%s5564_s0 + $0x10] sm:$0xf] }
  0x1a   :  { %1928 = vmatpush.bf16.msra.mxu0 %v3989_v12  ;;  %4138 = vmatpush.bf16.msra.mxu2 %v3989_v12  ;;  %v3020_v12 = vld [vmem:[%s5564_s0 + $0x168] sm:$0xf0]  ;;  %v3891_v47 = vld [vmem:[%s5564_s0 + $0x54] sm:$0xf0]  ;;  %v2956_v48 = vld [vmem:[%s5564_s0 + $0xe0] sm:$0xf0] }
  0x1b   :  { %1971 = vmatpush.bf16.msra.mxu1 %v3997_v13  ;;  %4146 = vmatpush.bf16.msra.mxu3 %v3997_v13  ;;  %v4004_v13 = vld [vmem:[%s5563_s1 + $0x80] sm:$0xff]  ;;  %v3023_v19 = vor.u32 %v3916_v10, %v3020_v12  ;;  %v3882_v49 = vld [vmem:[%s5564_s0 + $0x14] sm:$0xf]  ;;  %v4047_v8 = vld [vmem:[%s5563_s1 + $0x1d8] sm:$0xff] }
  0x1c   :  { %v3900_v2 = vld [vmem:[%s5564_s0 + $0xa4] sm:$0xf]  ;;  %v4055_v9 = vld [vmem:[%s5563_s1 + $0x218] sm:$0xff]  ;;  %v4038_v11 = vld [vmem:[%s5563_s1 + $0x190] sm:$0xff] }
  0x1d   :  { %v4063_v10 = vld [vmem:[%s5563_s1 + $0x258] sm:$0xff] }
  0x1e   :  { %1929 = vmatpush.bf16.msra.mxu0 %v3988_v14  ;;  %4139 = vmatpush.bf16.msra.mxu2 %v3988_v14  ;;  %v4012_v14 = vld [vmem:[%s5563_s1 + $0xc0] sm:$0xff]  ;;  %v3098_v12 = vld [vmem:[%s5564_s0 + $0x1b8] sm:$0xf] }
  0x1f   :  { %1972 = vmatpush.bf16.msra.mxu1 %v3996_v15  ;;  %4147 = vmatpush.bf16.msra.mxu3 %v3996_v15  ;;  %v4043_v15 = vld [vmem:[%s5563_s1 + $0x1b8] sm:$0xff] }
  0x21   :  { %1930 = vmatmul.bf16.vlgmr.msra.gmra.mxu0 %v2875_v26  ;;  %1950 = vmatmul.bf16.vlgmr.msra.gmra.mxu2 %v3163_v27  ;;  %v3090_v26 = vld [vmem:[%s5564_s0 + $0x1b0] sm:$0xf]  ;;  %v3943_v27 = vld [vmem:[%s5564_s0 + $0x1f4] sm:$0xf0] }
  0x22   :  { %2094 = vmatpush.bf16.msrb.mxu0 %v4027_v24  ;;  %1973 = vmatmul.bf16.vlgmr.msra.gmra.mxu1 %v2879_v28  ;;  %v4050_v24 = vld [vmem:[%s5563_s1 + $0x1f0] sm:$0xff] }
  0x23   :  { %2137 = vmatpush.bf16.msrb.mxu1 %v4035_v25  ;;  %1993 = vmatmul.bf16.vlgmr.msra.gmra.mxu3 %v3167_v29  ;;  %v4058_v25 = vld [vmem:[%s5563_s1 + $0x230] sm:$0xff]  ;;  %v2882_v29 = vld [vmem:[%s5564_s0 + $0x8] sm:$0xf] }
  0x24   :  { %2008 = vmatpush.bf16.msrb.mxu2 %v4011_v30  ;;  %2051 = vmatpush.bf16.msrb.mxu3 %v4019_v31  ;;  %v3934_v28 = vld [vmem:[%s5564_s0 + $0x1b4] sm:$0xf]  ;;  %v3890_v30 = vld [vmem:[%s5564_s0 + $0x4c] sm:$0xf0]  ;;  %v3092_v31 = vld [vmem:[%s5564_s0 + $0x1f8] sm:$0xf0] }
  0x26   :  { %2095 = vmatpush.bf16.msrb.mxu0 %v4026_v32  ;;  %v3881_v32 = vld [vmem:[%s5564_s0 + $0xc] sm:$0xf] }
  0x27   :  { %2138 = vmatpush.bf16.msrb.mxu1 %v4034_v33  ;;  %v2884_v33 = vld [vmem:[%s5564_s0 + $0x50] sm:$0xf0] }
  0x28   :  { %2009 = vmatpush.bf16.msrb.mxu2 %v4010_v34  ;;  %2052 = vmatpush.bf16.msrb.mxu3 %v4018_v35  ;;  %v3091_v34 = vor.u32 %v3943_v27, %v3090_v26  ;;  %v2883_v35 = vor.u32 %v3890_v30, %v2882_v29  ;;  %v4062_v26 = vld [vmem:[%s5563_s1 + $0x250] sm:$0xff]  ;;  %v4037_v27 = vld [vmem:[%s5563_s1 + $0x188] sm:$0xff] }
  0x29   :  { %v3962_v29 = vld [vmem:[%s5564_s0 + $0x28c] sm:$0xf0]  ;;  %v3953_v30 = vld [vmem:[%s5564_s0 + $0x24c] sm:$0xf] }
  0x2a   :  { %2096 = vmatpush.bf16.msrb.mxu0 %v4025_v36  ;;  %v3095_v36 = vor.u32 %v3934_v28, %v3092_v31  ;;  %v3170_v28 = vld [vmem:[%s5564_s0 + $0x248] sm:$0xf]  ;;  %v3106_v31 = vld [vmem:[%s5564_s0 + $0x1c0] sm:$0xf] }
  0x2b   :  { %2139 = vmatpush.bf16.msrb.mxu1 %v4033_v37  ;;  %v2887_v37 = vor.u32 %v3881_v32, %v2884_v33  ;;  %v3945_v32 = vld [vmem:[%s5564_s0 + $0x204] sm:$0xf0]  ;;  %v3172_v33 = vld [vmem:[%s5564_s0 + $0x290] sm:$0xf0] }
  0x2c   :  { %2010 = vmatpush.bf16.msrb.mxu2 %v4009_v38  ;;  %2053 = vmatpush.bf16.msrb.mxu3 %v4017_v39  ;;  %v4066_v38 = vld [vmem:[%s5563_s1 + $0x270] sm:$0xff]  ;;  %v4041_v39 = vld [vmem:[%s5563_s1 + $0x1a8] sm:$0xff] }
  0x2e   :  { %2097 = vmatpush.bf16.msrb.mxu0 %v4024_v41  ;;  %v4057_v41 = vld [vmem:[%s5563_s1 + $0x228] sm:$0xff] }
  0x2f   :  { %2140 = vmatpush.bf16.msrb.mxu1 %v4032_v42  ;;  %v4065_v42 = vld [vmem:[%s5563_s1 + $0x268] sm:$0xff] }
  0x30   :  { %2011 = vmatpush.bf16.msrb.mxu2 %v4008_v50  ;;  %2054 = vmatpush.bf16.msrb.mxu3 %v4016_v51  ;;  %v2892_v50 = vld [vmem:[%s5564_s0 + $0x58] sm:$0xf0]  ;;  %v2955_v51 = vor.u32 %v3908_v44, %v2954_v43  ;;  %v4036_v43 = vld [vmem:[%s5563_s1 + $0x180] sm:$0xff] }
  0x31   :  { %1935 = vmatmul.bf16.gmra.mxu0 %v2947_v54  ;;  %1955 = vmatmul.bf16.gmra.mxu2 %v3235_v55  ;;  %v2895_v54 = vor.u32 %v3882_v49, %v2892_v50  ;;  %v4040_v55 = vld [vmem:[%s5563_s1 + $0x1a0] sm:$0xff]  ;;  %v3963_v49 = vld [vmem:[%s5564_s0 + $0x294] sm:$0xf0] }
  0x32   :  { %2098 = vmatpush.bf16.msrb.mxu0 %v4023_v52  ;;  %1978 = vmatmul.bf16.gmra.mxu1 %v2951_v56  ;;  %v2891_v52 = vor.u32 %v3891_v47, %v2890_v46  ;;  %v4048_v56 = vld [vmem:[%s5563_s1 + $0x1e0] sm:$0xff]  ;;  %v3971_v47 = vld [vmem:[%s5564_s0 + $0x2dc] sm:$0xf] }
  0x33   :  { %2141 = vmatpush.bf16.msrb.mxu1 %v4031_v53  ;;  %1998 = vmatmul.bf16.gmra.mxu3 %v3239_v57  ;;  %v2959_v53 = vor.u32 %v3899_v45, %v2956_v48  ;;  %v4056_v57 = vld [vmem:[%s5563_s1 + $0x220] sm:$0xff]  ;;  %v3242_v45 = vld [vmem:[%s5564_s0 + $0x2d8] sm:$0xf]  ;;  %v3178_v48 = vld [vmem:[%s5564_s0 + $0x250] sm:$0xf] }
  0x34   :  { %2012 = vmatpush.bf16.msrb.mxu2 %v4007_v58  ;;  %2055 = vmatpush.bf16.msrb.mxu3 %v4015_v59  ;;  %v4064_v58 = vld [vmem:[%s5563_s1 + $0x260] sm:$0xff]  ;;  %v4039_v59 = vld [vmem:[%s5563_s1 + $0x198] sm:$0xff] }
  0x35   :  { %v4044_v44 = vld [vmem:[%s5563_s1 + $0x1c0] sm:$0xff] }
  0x36   :  { %2099 = vmatpush.bf16.msrb.mxu0 %v4022_v60  ;;  %v3026_v60 = vld [vmem:[%s5564_s0 + $0x128] sm:$0xf]  ;;  %v3980_v46 = vld [vmem:[%s5564_s0 + $0x31c] sm:$0xf0]  ;;  %v3244_v50 = vld [vmem:[%s5564_s0 + $0x320] sm:$0xf0] }
  0x37   :  { %2142 = vmatpush.bf16.msrb.mxu1 %v4030_v61  ;;  %v3926_v61 = vld [vmem:[%s5564_s0 + $0x16c] sm:$0xf0] }
  0x38   :  { %2013 = vmatpush.bf16.msrb.mxu2 %v4006_v62  ;;  %2056 = vmatpush.bf16.msrb.mxu3 %v4014_v63  ;;  %v3917_v62 = vld [vmem:[%s5564_s0 + $0x12c] sm:$0xf]  ;;  %v2962_v63 = vld [vmem:[%s5564_s0 + $0xa0] sm:$0xf] }
  0x3a   :  { %2100 = vmatpush.bf16.msrb.mxu0 %v4021_v0  ;;  %v3909_v0 = vld [vmem:[%s5564_s0 + $0xe4] sm:$0xf0] }
  0x3b   :  { %2143 = vmatpush.bf16.msrb.mxu1 %v4029_v1  ;;  %v3028_v1 = vld [vmem:[%s5564_s0 + $0x170] sm:$0xf0] }
  0x3c   :  { %2014 = vmatpush.bf16.msrb.mxu2 %v4005_v3  ;;  %2057 = vmatpush.bf16.msrb.mxu3 %v4013_v4  ;;  %v2964_v3 = vld [vmem:[%s5564_s0 + $0xe8] sm:$0xf0]  ;;  %v3027_v4 = vor.u32 %v3926_v61, %v3026_v60  ;;  %v4052_v60 = vld [vmem:[%s5563_s1 + $0x200] sm:$0xff] }
  0x3d   :  { %v2967_v7 = vor.u32 %v3900_v2, %v2964_v3  ;;  %v4060_v2 = vld [vmem:[%s5563_s1 + $0x240] sm:$0xff] }
  0x3e   :  { %2101 = vmatpush.bf16.msrb.mxu0 %v4020_v5  ;;  %v2963_v5 = vor.u32 %v3909_v0, %v2962_v63 }
  0x3f   :  { %2144 = vmatpush.bf16.msrb.mxu1 %v4028_v6  ;;  %v3031_v6 = vor.u32 %v3917_v62, %v3028_v1  ;;  %v159_v1 = vld [vmem:[%s5564_s0 + $0x368] sm:$0xff] }
  0x40   :  { %2015 = vmatpush.bf16.msrb.mxu2 %v4004_v13  ;;  %2058 = vmatpush.bf16.msrb.mxu3 %v4012_v14  ;;  %v3944_v13 = vld [vmem:[%s5564_s0 + $0x1fc] sm:$0xf0]  ;;  %v3935_v14 = vld [vmem:[%s5564_s0 + $0x1bc] sm:$0xf] }
  0x41   :  { %1940 = vmatmul.bf16.gmra.mxu0 %v3019_v17  ;;  %1960 = vmatmul.bf16.gmra.mxu2 %v914_v18  ;;  %v3100_v17 = vld [vmem:[%s5564_s0 + $0x200] sm:$0xf0]  ;;  %v3918_v18 = vld [vmem:[%s5564_s0 + $0x134] sm:$0xf] }
  0x42   :  { %1983 = vmatmul.bf16.gmra.mxu1 %v3023_v19  ;;  %2266 = vmatpush.bf16.msra.mxu0 %v4059_v21  ;;  %v3036_v19 = vld [vmem:[%s5564_s0 + $0x178] sm:$0xf0] }
  0x43   :  { %2003 = vmatmul.bf16.gmra.mxu3 %v915_v20  ;;  %2309 = vmatpush.bf16.msra.mxu1 %v4067_v22  ;;  %v3099_v20 = vor.u32 %v3944_v13, %v3098_v12  ;;  %v3103_v22 = vor.u32 %v3935_v14, %v3100_v17  ;;  %v3252_v12 = vld [vmem:[%s5564_s0 + $0x328] sm:$0xf0] }
  0x44   :  { %2180 = vmatpush.bf16.msra.mxu2 %v4043_v15  ;;  %2223 = vmatpush.bf16.msra.mxu3 %v4051_v16  ;;  %v3034_v15 = vld [vmem:[%s5564_s0 + $0x130] sm:$0xf]  ;;  %v3927_v16 = vld [vmem:[%s5564_s0 + $0x174] sm:$0xf0] }
  0x45   :  { %v3035_v21 = vor.u32 %v3927_v16, %v3034_v15 }
  0x46   :  { %2267 = vmatpush.bf16.msra.mxu0 %v4058_v25  ;;  %v4054_v25 = vld [vmem:[%s5563_s1 + $0x210] sm:$0xff] }
  0x47   :  { %2310 = vmatpush.bf16.msra.mxu1 %v4066_v38  ;;  %v3175_v38 = vor.u32 %v3953_v30, %v3172_v33  ;;  %v4082_v33 = vld [vmem:[%s5563_s1 + $0x2f0] sm:$0xff] }
  0x48   :  { %2181 = vmatpush.bf16.msra.mxu2 %v4042_v23  ;;  %2224 = vmatpush.bf16.msra.mxu3 %v4050_v24  ;;  %v3039_v23 = vor.u32 %v3918_v18, %v3036_v19  ;;  %v4046_v24 = vld [vmem:[%s5563_s1 + $0x1d0] sm:$0xff] }
  0x4a   :  { %2268 = vmatpush.bf16.msra.mxu0 %v4057_v41  ;;  %v4053_v41 = vld [vmem:[%s5563_s1 + $0x208] sm:$0xff] }
  0x4b   :  { %2311 = vmatpush.bf16.msra.mxu1 %v4065_v42  ;;  %v4061_v42 = vld [vmem:[%s5563_s1 + $0x248] sm:$0xff] }
  0x4c   :  { %2182 = vmatpush.bf16.msra.mxu2 %v4041_v39  ;;  %2225 = vmatpush.bf16.msra.mxu3 %v4049_v40  ;;  %v4045_v40 = vld [vmem:[%s5563_s1 + $0x1c8] sm:$0xff] }
  0x4e   :  { %2269 = vmatpush.bf16.msra.mxu0 %v4056_v57 }
  0x4f   :  { %2312 = vmatpush.bf16.msra.mxu1 %v4064_v58 }
  0x50   :  { %2183 = vmatpush.bf16.msra.mxu2 %v4040_v55  ;;  %2226 = vmatpush.bf16.msra.mxu3 %v4048_v56  ;;  %v3247_v56 = vor.u32 %v3971_v47, %v3244_v50  ;;  %v4090_v50 = vld [vmem:[%s5563_s1 + $0x330] sm:$0xff] }
  0x51   :  { %1945 = vmatmul.bf16.gmra.mxu0 %v3091_v34  ;;  %2016 = vmatmul.bf16.vlgmr.msrb.gmra.mxu2 %v2883_v35  ;;  %v3936_v34 = vld [vmem:[%s5564_s0 + $0x1c4] sm:$0xf]  ;;  %v3108_v35 = vld [vmem:[%s5564_s0 + $0x208] sm:$0xf0] }
  0x52   :  { %1988 = vmatmul.bf16.gmra.mxu1 %v3095_v36  ;;  %2270 = vmatpush.bf16.msra.mxu0 %v4055_v9  ;;  %v3171_v36 = vor.u32 %v3962_v29, %v3170_v28  ;;  %v3111_v39 = vor.u32 %v3936_v34, %v3108_v35  ;;  %v3250_v9 = vld [vmem:[%s5564_s0 + $0x2e0] sm:$0xf]  ;;  %v160_v29 = vld [vmem:[%s5564_s0 + $0x370] sm:$0xff] }
  0x53   :  { %2059 = vmatmul.bf16.vlgmr.msrb.gmra.mxu3 %v2887_v37  ;;  %2313 = vmatpush.bf16.msra.mxu1 %v4063_v10  ;;  %v3107_v37 = vor.u32 %v3945_v32, %v3106_v31  ;;  %v3981_v10 = vld [vmem:[%s5564_s0 + $0x324] sm:$0xf0]  ;;  %v4074_v31 = vld [vmem:[%s5563_s1 + $0x2b0] sm:$0xff]  ;;  %v792_v34 = vunpack.c.l.b16 %v160_v29  ;;  %v793_v35 = vunpack.c.h.b16 %v160_v29 }
  0x54   :  { %2184 = vmatpush.bf16.msra.mxu2 %v4039_v59  ;;  %2227 = vmatpush.bf16.msra.mxu3 %v4047_v8  ;;  %v791_v8 = vunpack.c.h.b16 %v159_v1  ;;  %v3251_v16 = vor.u32 %v3981_v10, %v3250_v9 }
  0x56   :  { %2271 = vmatpush.bf16.msra.mxu0 %v4054_v25  ;;  %v917_v19 = vpack.c.b16 %v791_v8, %v791_v8 }
  0x57   :  { %2314 = vmatpush.bf16.msra.mxu1 %v4062_v26 }
  0x58   :  { %2185 = vmatpush.bf16.msra.mxu2 %v4038_v11  ;;  %2228 = vmatpush.bf16.msra.mxu3 %v4046_v24  ;;  %v3972_v11 = vld [vmem:[%s5564_s0 + $0x2e4] sm:$0xf]  ;;  %v4099_v24 = vld [vmem:[%s5563_s1 + $0x378] sm:$0xff] }
  0x5a   :  { %2272 = vmatpush.bf16.msra.mxu0 %v4053_v41 }
  0x5b   :  { %2315 = vmatpush.bf16.msra.mxu1 %v4061_v42  ;;  %v918_v42 = vpack.c.b16 %v792_v34, %v792_v34  ;;  %v2978_v34 = vld [vmem:[%s5564_s0 + $0xb0] sm:$0xf] }
  0x5c   :  { %2186 = vmatpush.bf16.msra.mxu2 %v4037_v27  ;;  %2229 = vmatpush.bf16.msra.mxu3 %v4045_v40 }
  0x5e   :  { %2273 = vmatpush.bf16.msra.mxu0 %v4052_v60 }
  0x5f   :  { %2316 = vmatpush.bf16.msra.mxu1 %v4060_v2  ;;  %v3893_v2 = vld [vmem:[%s5564_s0 + $0x64] sm:$0xf0] }
  0x60   :  { %2187 = vmatpush.bf16.msra.mxu2 %v4036_v43  ;;  %2230 = vmatpush.bf16.msra.mxu3 %v4044_v44 }
  0x61   :  { %2021 = vmatmul.bf16.gmra.mxu2 %v2955_v51  ;;  %2102 = vmatmul.bf16.vlgmr.msrb.gmra.mxu0 %v2891_v52  ;;  %v3954_v51 = vld [vmem:[%s5564_s0 + $0x254] sm:$0xf]  ;;  %v3180_v52 = vld [vmem:[%s5564_s0 + $0x298] sm:$0xf0] }
  0x62   :  { %2145 = vmatmul.bf16.vlgmr.msrb.gmra.mxu1 %v2895_v54  ;;  %v3179_v54 = vor.u32 %v3963_v49, %v3178_v48  ;;  %v3183_v57 = vor.u32 %v3954_v51, %v3180_v52  ;;  %v4098_v51 = vld [vmem:[%s5563_s1 + $0x370] sm:$0xff]  ;;  %v4073_v52 = vld [vmem:[%s5563_s1 + $0x2a8] sm:$0xff] }
  0x63   :  { %2064 = vmatmul.bf16.gmra.mxu3 %v2959_v53  ;;  %v3243_v53 = vor.u32 %v3980_v46, %v3242_v45  ;;  %2481 = vmatpush.bf16.msrb.mxu1 %v4099_v24  ;;  %v919_v46 = vpack.c.b16 %v793_v35, %v793_v35  ;;  %v3911_v35 = vld [vmem:[%s5564_s0 + $0xf4] sm:$0xf0] }
  0x67   :  { %2482 = vmatpush.bf16.msrb.mxu1 %v4098_v51 }
  0x71   :  { %2026 = vmatmul.bf16.gmra.mxu2 %v3027_v4  ;;  %2107 = vmatmul.bf16.gmra.mxu0 %v2963_v5  ;;  %v4075_v5 = vld [vmem:[%s5563_s1 + $0x2b8] sm:$0xff] }
  0x72   :  { %2150 = vmatmul.bf16.gmra.mxu1 %v2967_v7  ;;  %v790_v7 = vunpack.c.l.b16 %v159_v1  ;;  %2352 = vmatpush.bf16.msrb.mxu2 %v4075_v5  ;;  %v2906_v1 = vld [vmem:[%s5564_s0 + $0x20] sm:$0xf]  ;;  %v3884_v5 = vld [vmem:[%s5564_s0 + $0x24] sm:$0xf] }
  0x73   :  { %2069 = vmatmul.bf16.gmra.mxu3 %v3031_v6  ;;  %v4083_v6 = vld [vmem:[%s5563_s1 + $0x2f8] sm:$0xff]  ;;  %v2907_v10 = vor.u32 %v3893_v2, %v2906_v1  ;;  %v3114_v2 = vld [vmem:[%s5564_s0 + $0x1c8] sm:$0xf] }
  0x74   :  { %2395 = vmatpush.bf16.msrb.mxu3 %v4083_v6  ;;  %v916_v15 = vpack.c.b16 %v790_v7, %v790_v7  ;;  %v2908_v6 = vld [vmem:[%s5564_s0 + $0x68] sm:$0xf0] }
  0x76   :  { %2353 = vmatpush.bf16.msrb.mxu2 %v4074_v31  ;;  %v3928_v31 = vld [vmem:[%s5564_s0 + $0x17c] sm:$0xf0] }
  0x78   :  { %2396 = vmatpush.bf16.msrb.mxu3 %v4082_v33  ;;  %v4088_v33 = vld [vmem:[%s5563_s1 + $0x320] sm:$0xff] }
  0x7a   :  { %2354 = vmatpush.bf16.msrb.mxu2 %v4073_v52  ;;  %v4096_v52 = vld [vmem:[%s5563_s1 + $0x360] sm:$0xff] }
  0x81   :  { %2031 = vmatmul.bf16.gmra.mxu2 %v3099_v20  ;;  %2112 = vmatmul.bf16.gmra.mxu0 %v3035_v21  ;;  %v3255_v20 = vor.u32 %v3972_v11, %v3252_v12 }
  0x82   :  { %2155 = vmatmul.bf16.gmra.mxu1 %v3039_v23  ;;  %v4091_v23 = vld [vmem:[%s5563_s1 + $0x338] sm:$0xff] }
  0x83   :  { %2074 = vmatmul.bf16.gmra.mxu3 %v3103_v22  ;;  %2438 = vmatpush.bf16.msrb.mxu0 %v4091_v23 }
  0x87   :  { %2439 = vmatpush.bf16.msrb.mxu0 %v4090_v50 }
  0x91   :  { %2036 = vmatmul.bf16.gmra.mxu2 %v3171_v36  ;;  %2117 = vmatmul.bf16.gmra.mxu0 %v3107_v37  ;;  %v2898_v36 = vld [vmem:[%s5564_s0 + $0x18] sm:$0xf]  ;;  %v3892_v37 = vld [vmem:[%s5564_s0 + $0x5c] sm:$0xf0] }
  0x92   :  { %2160 = vmatmul.bf16.gmra.mxu1 %v3111_v39  ;;  %v2900_v39 = vld [vmem:[%s5564_s0 + $0x60] sm:$0xf0]  ;;  %v2899_v43 = vor.u32 %v3892_v37, %v2898_v36  ;;  %v3902_v37 = vld [vmem:[%s5564_s0 + $0xb4] sm:$0xf] }
  0x93   :  { %2079 = vmatmul.bf16.gmra.mxu3 %v3175_v38  ;;  %v3883_v38 = vld [vmem:[%s5564_s0 + $0x1c] sm:$0xf]  ;;  %v3044_v36 = vld [vmem:[%s5564_s0 + $0x180] sm:$0xf0] }
  0x94   :  { %v2903_v47 = vor.u32 %v3883_v38, %v2900_v39  ;;  %v2980_v38 = vld [vmem:[%s5564_s0 + $0xf8] sm:$0xf0] }
  0x9e   :  { %v1931_v55 = vpop.f32.mrf.mxu0 }
  0x9f   :  { %v1974_v58 = vpop.f32.mrf.mxu1 }
  0xa0   :  { %v4618_v59 = vadd.f32 %v1974_v58, %v1931_v55  ;;  %v4081_v58 = vld [vmem:[%s5563_s1 + $0x2e8] sm:$0xff] }
  0xa1   :  { %2041 = vmatmul.bf16.gmra.mxu2 %v3243_v53  ;;  %2122 = vmatmul.bf16.gmra.mxu0 %v3179_v54 }
  0xa2   :  { %2165 = vmatmul.bf16.gmra.mxu1 %v3183_v57  ;;  %2397 = vmatpush.bf16.msrb.mxu3 %v4081_v58 }
  0xa3   :  { %2084 = vmatmul.bf16.gmra.mxu3 %v3247_v56 }
  0xa4   :  { %v1951_v61 = vpop.f32.mrf.mxu2 }
  0xa6   :  { %v1994_v62 = vpop.f32.mrf.mxu3  ;;  %v1933_v0 = vpop.f32.mrf.mxu0 }
  0xa7   :  { %v4623_v63 = vadd.f32 %v1994_v62, %v1951_v61  ;;  %v1976_v3 = vpop.f32.mrf.mxu1  ;;  %v2970_v61 = vld [vmem:[%s5564_s0 + $0xa8] sm:$0xf]  ;;  %v3910_v62 = vld [vmem:[%s5564_s0 + $0xec] sm:$0xf0] }
  0xa8   :  { %v4631_v4 = vadd.f32 %v1976_v3, %v1933_v0  ;;  %v3901_v0 = vld [vmem:[%s5564_s0 + $0xac] sm:$0xf]  ;;  %v2972_v3 = vld [vmem:[%s5564_s0 + $0xf0] sm:$0xf0]  ;;  %v2971_v9 = vor.u32 %v3910_v62, %v2970_v61 }
  0xa9   :  { %v2975_v12 = vor.u32 %v3901_v0, %v2972_v3 }
  0xac   :  { %v1953_v13 = vpop.f32.mrf.mxu2 }
  0xae   :  { %v1996_v14 = vpop.f32.mrf.mxu3  ;;  %v1936_v18 = vpop.f32.mrf.mxu0 }
  0xaf   :  { %v4651_v17 = vadd.f32 %v1996_v14, %v1953_v13  ;;  %v1979_v21 = vpop.f32.mrf.mxu1  ;;  %v2911_v13 = vor.u32 %v3884_v5, %v2908_v6  ;;  %v3946_v5 = vld [vmem:[%s5564_s0 + $0x20c] sm:$0xf0]  ;;  %v4087_v6 = vld [vmem:[%s5563_s1 + $0x318] sm:$0xff] }
  0xb0   :  { %v4653_v22 = vadd.f32 %v1979_v21, %v1936_v18  ;;  %v4097_v18 = vld [vmem:[%s5563_s1 + $0x368] sm:$0xff] }
  0xb1   :  { %2046 = vmatmul.bf16.gmra.mxu2 %v916_v15  ;;  %2127 = vmatmul.bf16.gmra.mxu0 %v3251_v16  ;;  %v4089_v15 = vld [vmem:[%s5563_s1 + $0x328] sm:$0xff] }
  0xb2   :  { %2170 = vmatmul.bf16.gmra.mxu1 %v3255_v20  ;;  %v4080_v20 = vld [vmem:[%s5563_s1 + $0x2e0] sm:$0xff]  ;;  %2440 = vmatpush.bf16.msrb.mxu0 %v4089_v15 }
  0xb3   :  { %2089 = vmatmul.bf16.gmra.mxu3 %v917_v19  ;;  %v4072_v19 = vld [vmem:[%s5563_s1 + $0x2a0] sm:$0xff]  ;;  %2483 = vmatpush.bf16.msrb.mxu1 %v4097_v18  ;;  %v3115_v18 = vor.u32 %v3946_v5, %v3114_v2  ;;  %v4077_v2 = vld [vmem:[%s5563_s1 + $0x2c8] sm:$0xff] }
  0xb4   :  { %v1956_v25 = vpop.f32.mrf.mxu2  ;;  %2355 = vmatpush.bf16.msrb.mxu2 %v4072_v19  ;;  %2398 = vmatpush.bf16.msrb.mxu3 %v4080_v20 }
  0xb6   :  { %v1999_v26 = vpop.f32.mrf.mxu3  ;;  %v1938_v28 = vpop.f32.mrf.mxu0  ;;  %2441 = vmatpush.bf16.msrb.mxu0 %v4088_v33 }
  0xb7   :  { %v4661_v27 = vadd.f32 %v1999_v26, %v1956_v25  ;;  %v1981_v30 = vpop.f32.mrf.mxu1  ;;  %2484 = vmatpush.bf16.msrb.mxu1 %v4096_v52 }
  0xb8   :  { %v4669_v32 = vadd.f32 %v1981_v30, %v1938_v28  ;;  %v3042_v30 = vld [vmem:[%s5564_s0 + $0x138] sm:$0xf] }
  0xba   :  { %2442 = vmatpush.bf16.msrb.mxu0 %v4087_v6 }
  0xbc   :  { %v1958_v40 = vpop.f32.mrf.mxu2 }
  0xbe   :  { %v2001_v41 = vpop.f32.mrf.mxu3  ;;  %v1941_v45 = vpop.f32.mrf.mxu0 }
  0xbf   :  { %v4686_v44 = vadd.f32 %v2001_v41, %v1958_v40  ;;  %v1984_v48 = vpop.f32.mrf.mxu1 }
  0xc0   :  { %v4688_v49 = vadd.f32 %v1984_v48, %v1941_v45 }
  0xc1   :  { %2132 = vmatmul.bf16.gmra.mxu0 %v918_v42  ;;  %2188 = vmatmul.bf16.vlgmr.msra.gmra.mxu2 %v2899_v43  ;;  %v3043_v42 = vor.u32 %v3928_v31, %v3042_v30  ;;  %v2979_v43 = vor.u32 %v3911_v35, %v2978_v34 }
  0xc2   :  { %2175 = vmatmul.bf16.gmra.mxu1 %v919_v46 }
  0xc3   :  { %2231 = vmatmul.bf16.vlgmr.msra.gmra.mxu3 %v2903_v47  ;;  %v2983_v47 = vor.u32 %v3902_v37, %v2980_v38  ;;  %v3186_v38 = vld [vmem:[%s5564_s0 + $0x258] sm:$0xf] }
  0xc4   :  { %v1961_v53 = vpop.f32.mrf.mxu2 }
  0xc6   :  { %v2004_v54 = vpop.f32.mrf.mxu3  ;;  %v1943_v56 = vpop.f32.mrf.mxu0 }
  0xc7   :  { %v4699_v55 = vadd.f32 %v2004_v54, %v1961_v53  ;;  %v1986_v57 = vpop.f32.mrf.mxu1  ;;  %v4079_v54 = vld [vmem:[%s5563_s1 + $0x2d8] sm:$0xff] }
  0xc8   :  { %v4704_v60 = vadd.f32 %v1986_v57, %v1943_v56  ;;  %2399 = vmatpush.bf16.msrb.mxu3 %v4079_v54 }
  0xcc   :  { %v1963_v7 = vpop.f32.mrf.mxu2 }
  0xcd   :  { %v3937_v7 = vld [vmem:[%s5564_s0 + $0x1cc] sm:$0xf] }
  0xce   :  { %v2006_v8 = vpop.f32.mrf.mxu3  ;;  %v1946_v11 = vpop.f32.mrf.mxu0 }
  0xcf   :  { %v1989_v14 = vpop.f32.mrf.mxu1  ;;  %v3050_v8 = vld [vmem:[%s5564_s0 + $0x140] sm:$0xf] }
  0xd0   :  { %v4733_v16 = vadd.f32 %v1989_v14, %v1946_v11  ;;  %v3920_v11 = vld [vmem:[%s5564_s0 + $0x144] sm:$0xf] }
  0xd1   :  { %2193 = vmatmul.bf16.gmra.mxu2 %v2971_v9  ;;  %2274 = vmatmul.bf16.vlgmr.msra.gmra.mxu0 %v2907_v10  ;;  %v3929_v9 = vld [vmem:[%s5564_s0 + $0x184] sm:$0xf0]  ;;  %v3116_v10 = vld [vmem:[%s5564_s0 + $0x210] sm:$0xf0] }
  0xd2   :  { %2317 = vmatmul.bf16.vlgmr.msra.gmra.mxu1 %v2911_v13  ;;  %v3051_v19 = vor.u32 %v3929_v9, %v3050_v8 }
  0xd3   :  { %2236 = vmatmul.bf16.gmra.mxu3 %v2975_v12  ;;  %v3052_v12 = vld [vmem:[%s5564_s0 + $0x188] sm:$0xf0] }
  0xd4   :  { %v2017_v21 = vpop.f32.mrf.mxu2 }
  0xd5   :  { %v2018_v23 = vadd.f32 %v2017_v21, %v4618_v59  ;;  %v3919_v59 = vld [vmem:[%s5564_s0 + $0x13c] sm:$0xf]  ;;  %v3119_v21 = vor.u32 %v3937_v7, %v3116_v10 }
  0xd6   :  { %v2060_v24 = vpop.f32.mrf.mxu3  ;;  %v1948_v25 = vpop.f32.mrf.mxu0  ;;  %v3047_v46 = vor.u32 %v3919_v59, %v3044_v36 }
  0xd7   :  { %v2061_v26 = vadd.f32 %v2060_v24, %v2018_v23  ;;  %v1991_v28 = vpop.f32.mrf.mxu1  ;;  %v3055_v23 = vor.u32 %v3920_v11, %v3052_v12  ;;  %v4085_v11 = vld [vmem:[%s5563_s1 + $0x308] sm:$0xff] }
  0xd8   :  { %v4745_v29 = vadd.f32 %v1991_v28, %v1948_v25  ;;  %v4070_v28 = vld [vmem:[%s5563_s1 + $0x290] sm:$0xff]  ;;  %v3258_v12 = vld [vmem:[%s5564_s0 + $0x2e8] sm:$0xf] }
  0xdc   :  { %v2019_v39 = vpop.f32.mrf.mxu2 }
  0xdd   :  { %v2020_v40 = vadd.f32 %v2019_v39, %v4631_v4  ;;  %v4071_v4 = vld [vmem:[%s5563_s1 + $0x298] sm:$0xff]  ;;  %v3964_v39 = vld [vmem:[%s5564_s0 + $0x29c] sm:$0xf0] }
  0xde   :  { %v2062_v41 = vpop.f32.mrf.mxu3  ;;  %v2103_v45 = vpop.f32.mrf.mxu0  ;;  %2356 = vmatpush.bf16.msrb.mxu2 %v4071_v4  ;;  %v3187_v54 = vor.u32 %v3964_v39, %v3186_v38 }
  0xdf   :  { %v2063_v48 = vadd.f32 %v2062_v41, %v2020_v40  ;;  %v2104_v50 = vadd.f32 %v2103_v45, %v2061_v26  ;;  %v2146_v51 = vpop.f32.mrf.mxu1  ;;  %v4086_v41 = vld [vmem:[%s5563_s1 + $0x310] sm:$0xff] }
  0xe0   :  { %v3122_v45 = vld [vmem:[%s5564_s0 + $0x1d0] sm:$0xf]  ;;  %2443 = vmatpush.bf16.msrb.mxu0 %v4086_v41  ;;  %v4084_v41 = vld [vmem:[%s5563_s1 + $0x300] sm:$0xff] }
  0xe1   :  { %v4778_v53 = vadd.f32 %v2146_v51, %v2104_v50  ;;  %2198 = vmatmul.bf16.gmra.mxu2 %v3043_v42  ;;  %2279 = vmatmul.bf16.gmra.mxu0 %v2979_v43  ;;  %v4069_v42 = vld [vmem:[%s5563_s1 + $0x288] sm:$0xff]  ;;  %v3955_v43 = vld [vmem:[%s5564_s0 + $0x25c] sm:$0xf] }
  0xe2   :  { %2322 = vmatmul.bf16.gmra.mxu1 %v2983_v47  ;;  %2357 = vmatpush.bf16.msrb.mxu2 %v4070_v28  ;;  %v3188_v47 = vld [vmem:[%s5564_s0 + $0x2a0] sm:$0xf0]  ;;  %v3124_v50 = vld [vmem:[%s5564_s0 + $0x218] sm:$0xf0] }
  0xe3   :  { %2241 = vmatmul.bf16.gmra.mxu3 %v3047_v46  ;;  %v3947_v46 = vld [vmem:[%s5564_s0 + $0x214] sm:$0xf0] }
  0xe4   :  { %v2022_v56 = vpop.f32.mrf.mxu2  ;;  %2444 = vmatpush.bf16.msrb.mxu0 %v4085_v11 }
  0xe5   :  { %v2023_v57 = vadd.f32 %v2022_v56, %v4653_v22  ;;  %v4095_v22 = vld [vmem:[%s5563_s1 + $0x358] sm:$0xff]  ;;  %v3123_v56 = vor.u32 %v3947_v46, %v3122_v45 }
  0xe6   :  { %v2065_v58 = vpop.f32.mrf.mxu3  ;;  %v2105_v61 = vpop.f32.mrf.mxu0  ;;  %2485 = vmatpush.bf16.msrb.mxu1 %v4095_v22  ;;  %2358 = vmatpush.bf16.msrb.mxu2 %v4069_v42  ;;  %v161_v45 = vld [vmem:[%s5564_s0 + $0x378] sm:$0xff] }
  0xe7   :  { %v2066_v62 = vadd.f32 %v2065_v58, %v2023_v57  ;;  %v2106_v0 = vadd.f32 %v2105_v61, %v2063_v48  ;;  %v2148_v1 = vpop.f32.mrf.mxu1  ;;  %v3938_v48 = vld [vmem:[%s5564_s0 + $0x1d4] sm:$0xf]  ;;  %v3191_v58 = vor.u32 %v3955_v43, %v3188_v47 }
  0xe8   :  { %v3127_v61 = vor.u32 %v3938_v48, %v3124_v50  ;;  %2445 = vmatpush.bf16.msrb.mxu0 %v4084_v41  ;;  %v4092_v50 = vld [vmem:[%s5563_s1 + $0x340] sm:$0xff] }
  0xe9   :  { %v4790_v3 = vadd.f32 %v2148_v1, %v2106_v0 }
  0xec   :  { %v2024_v13 = vpop.f32.mrf.mxu2 }
  0xed   :  { %v2025_v14 = vadd.f32 %v2024_v13, %v4669_v32  ;;  %v4078_v32 = vld [vmem:[%s5563_s1 + $0x2d0] sm:$0xff] }
  0xee   :  { %v2067_v15 = vpop.f32.mrf.mxu3  ;;  %v2108_v20 = vpop.f32.mrf.mxu0  ;;  %2400 = vmatpush.bf16.msrb.mxu3 %v4078_v32  ;;  %v3982_v13 = vld [vmem:[%s5564_s0 + $0x32c] sm:$0xf0] }
  0xef   :  { %v2068_v24 = vadd.f32 %v2067_v15, %v2025_v14  ;;  %v2109_v25 = vadd.f32 %v2108_v20, %v2066_v62  ;;  %v2151_v26 = vpop.f32.mrf.mxu1  ;;  %v4068_v15 = vld [vmem:[%s5563_s1 + $0x280] sm:$0xff] }
  0xf0   :  { %v3194_v20 = vld [vmem:[%s5564_s0 + $0x260] sm:$0xf]  ;;  %2359 = vmatpush.bf16.msrb.mxu2 %v4068_v15 }
  0xf1   :  { %v4823_v30 = vadd.f32 %v2151_v26, %v2109_v25  ;;  %2203 = vmatmul.bf16.gmra.mxu2 %v3115_v18  ;;  %2284 = vmatmul.bf16.gmra.mxu0 %v3051_v19  ;;  %v4076_v18 = vld [vmem:[%s5563_s1 + $0x2c0] sm:$0xff]  ;;  %v3973_v19 = vld [vmem:[%s5564_s0 + $0x2ec] sm:$0xf] }
  0xf2   :  { %2327 = vmatmul.bf16.gmra.mxu1 %v3055_v23  ;;  %2401 = vmatpush.bf16.msrb.mxu3 %v4077_v2  ;;  %v3260_v23 = vld [vmem:[%s5564_s0 + $0x330] sm:$0xf0]  ;;  %v3196_v25 = vld [vmem:[%s5564_s0 + $0x2a8] sm:$0xf0] }
  0xf3   :  { %2246 = vmatmul.bf16.gmra.mxu3 %v3119_v21  ;;  %v3965_v21 = vld [vmem:[%s5564_s0 + $0x2a4] sm:$0xf0] }
  0xf4   :  { %v2027_v31 = vpop.f32.mrf.mxu2 }
  0xf5   :  { %v2028_v33 = vadd.f32 %v2027_v31, %v4688_v49  ;;  %v4094_v49 = vld [vmem:[%s5563_s1 + $0x350] sm:$0xff]  ;;  %v3259_v31 = vor.u32 %v3982_v13, %v3258_v12  ;;  %v4123_v12 = vld [vmem:[%s5563_s1 + $0x438] sm:$0xff] }
  0xf6   :  { %v2070_v59 = vpop.f32.mrf.mxu3  ;;  %v2110_v34 = vpop.f32.mrf.mxu0  ;;  %2486 = vmatpush.bf16.msrb.mxu1 %v4094_v49  ;;  %2402 = vmatpush.bf16.msrb.mxu3 %v4076_v18 }
  0xf7   :  { %v2071_v35 = vadd.f32 %v2070_v59, %v2028_v33  ;;  %v2111_v36 = vadd.f32 %v2110_v34, %v2068_v24  ;;  %v2153_v37 = vpop.f32.mrf.mxu1  ;;  %v3956_v24 = vld [vmem:[%s5564_s0 + $0x264] sm:$0xf]  ;;  %v3195_v33 = vor.u32 %v3965_v21, %v3194_v20  ;;  %v3263_v34 = vor.u32 %v3973_v19, %v3260_v23  ;;  %2610 = vmatpush.bf16.msra.mxu0 %v4123_v12 }
  0xf8   :  { %v162_v19 = vld [vmem:[%s5564_s0 + $0x380] sm:$0xff] }
  0xf9   :  { %v4835_v40 = vadd.f32 %v2153_v37, %v2111_v36 }
  0xfc   :  { %v2029_v51 = vpop.f32.mrf.mxu2 }
  0xfd   :  { %v2030_v52 = vadd.f32 %v2029_v51, %v4704_v60 }
  0xfe   :  { %v2072_v4 = vpop.f32.mrf.mxu3  ;;  %v2113_v57 = vpop.f32.mrf.mxu0 }
  0xff   :  { %v2073_v62 = vadd.f32 %v2072_v4, %v2030_v52  ;;  %v2114_v0 = vadd.f32 %v2113_v57, %v2071_v35  ;;  %v2156_v1 = vpop.f32.mrf.mxu1  ;;  %v3199_v35 = vor.u32 %v3956_v24, %v3196_v25  ;;  %v794_v52 = vunpack.c.l.b16 %v161_v45  ;;  %v4115_v4 = vld [vmem:[%s5563_s1 + $0x3f8] sm:$0xff]  ;;  %v4106_v24 = vld [vmem:[%s5563_s1 + $0x3b0] sm:$0xff] }
 0x100   :  { %v3983_v57 = vld [vmem:[%s5564_s0 + $0x334] sm:$0xf0]  ;;  %2567 = vmatpush.bf16.msra.mxu3 %v4115_v4  ;;  %v4114_v25 = vld [vmem:[%s5563_s1 + $0x3f0] sm:$0xff] }
 0x101   :  { %v4868_v5 = vadd.f32 %v2156_v1, %v2114_v0  ;;  %2208 = vmatmul.bf16.gmra.mxu2 %v3187_v54  ;;  %2289 = vmatmul.bf16.gmra.mxu0 %v3123_v56  ;;  %v795_v54 = vunpack.c.h.b16 %v161_v45  ;;  %v3266_v56 = vld [vmem:[%s5564_s0 + $0x2f0] sm:$0xf]  ;;  %v920_v2 = vpack.c.b16 %v794_v52, %v794_v52 }
 0x102   :  { %2332 = vmatmul.bf16.gmra.mxu1 %v3127_v61  ;;  %v3268_v61 = vld [vmem:[%s5564_s0 + $0x338] sm:$0xf0] }
 0x103   :  { %2251 = vmatmul.bf16.gmra.mxu3 %v3191_v58  ;;  %v3974_v58 = vld [vmem:[%s5564_s0 + $0x2f4] sm:$0xf] }
 0x104   :  { %v2032_v60 = vpop.f32.mrf.mxu2  ;;  %2568 = vmatpush.bf16.msra.mxu3 %v4114_v25 }
 0x105   :  { %v2033_v6 = vadd.f32 %v2032_v60, %v4733_v16  ;;  %v4093_v16 = vld [vmem:[%s5563_s1 + $0x348] sm:$0xff]  ;;  %v3267_v60 = vor.u32 %v3983_v57, %v3266_v56 }
 0x106   :  { %v2075_v22 = vpop.f32.mrf.mxu3  ;;  %v2115_v7 = vpop.f32.mrf.mxu0  ;;  %2487 = vmatpush.bf16.msrb.mxu1 %v4093_v16 }
 0x107   :  { %v2076_v8 = vadd.f32 %v2075_v22, %v2033_v6  ;;  %v2116_v9 = vadd.f32 %v2115_v7, %v2073_v62  ;;  %v2158_v10 = vpop.f32.mrf.mxu1  ;;  %v921_v22 = vpack.c.b16 %v795_v54, %v795_v54  ;;  %v3271_v7 = vor.u32 %v3974_v58, %v3268_v61  ;;  %v4113_v58 = vld [vmem:[%s5563_s1 + $0x3e8] sm:$0xff] }
 0x108   :  { %2569 = vmatpush.bf16.msra.mxu3 %v4113_v58 }
 0x109   :  { %v4880_v14 = vadd.f32 %v2158_v10, %v2116_v9 }
 0x10a   :  { %2488 = vmatpush.bf16.msrb.mxu1 %v4092_v50 }
 0x10c   :  { %v2034_v26 = vpop.f32.mrf.mxu2 }
 0x10d   :  { %v2035_v28 = vadd.f32 %v2034_v26, %v4745_v29 }
 0x10e   :  { %v2077_v32 = vpop.f32.mrf.mxu3  ;;  %v2118_v59 = vpop.f32.mrf.mxu0 }
 0x10f   :  { %v2078_v36 = vadd.f32 %v2077_v32, %v2035_v28  ;;  %v2119_v37 = vadd.f32 %v2118_v59, %v2076_v8  ;;  %v2161_v38 = vpop.f32.mrf.mxu1  ;;  %v797_v28 = vunpack.c.h.b16 %v162_v19  ;;  %v2914_v32 = vld [vmem:[%s5564_s0 + $0x28] sm:$0xf]  ;;  %v2916_v59 = vld [vmem:[%s5564_s0 + $0x70] sm:$0xf0] }
 0x111   :  { %v4910_v39 = vadd.f32 %v2161_v38, %v2119_v37  ;;  %2213 = vmatmul.bf16.gmra.mxu2 %v3259_v31  ;;  %2294 = vmatmul.bf16.gmra.mxu0 %v3195_v33  ;;  %v3894_v31 = vld [vmem:[%s5564_s0 + $0x6c] sm:$0xf0]  ;;  %v3885_v33 = vld [vmem:[%s5564_s0 + $0x2c] sm:$0xf] }
 0x112   :  { %2337 = vmatmul.bf16.gmra.mxu1 %v3199_v35  ;;  %v2915_v38 = vor.u32 %v3894_v31, %v2914_v32 }
 0x113   :  { %2256 = vmatmul.bf16.gmra.mxu3 %v3263_v34 }
 0x114   :  { %v2037_v29 = vpop.f32.mrf.mxu2 }
 0x115   :  { %v2038_v49 = vadd.f32 %v2037_v29, %v4623_v63  ;;  %v4107_v63 = vld [vmem:[%s5563_s1 + $0x3b8] sm:$0xff]  ;;  %v923_v29 = vpack.c.b16 %v797_v28, %v797_v28 }
 0x116   :  { %v2080_v42 = vpop.f32.mrf.mxu3  ;;  %v2120_v43 = vpop.f32.mrf.mxu0  ;;  %2524 = vmatpush.bf16.msra.mxu2 %v4107_v63 }
 0x117   :  { %v2081_v46 = vadd.f32 %v2080_v42, %v2038_v49  ;;  %v2121_v47 = vadd.f32 %v2120_v43, %v2078_v36  ;;  %v2163_v48 = vpop.f32.mrf.mxu1  ;;  %v2919_v49 = vor.u32 %v3885_v33, %v2916_v59  ;;  %v3058_v33 = vld [vmem:[%s5564_s0 + $0x148] sm:$0xf]  ;;  %v3930_v59 = vld [vmem:[%s5564_s0 + $0x18c] sm:$0xf0] }
 0x119   :  { %v4922_v51 = vadd.f32 %v2163_v48, %v2121_v47  ;;  %v4122_v47 = vld [vmem:[%s5563_s1 + $0x430] sm:$0xff]  ;;  %v4105_v48 = vld [vmem:[%s5563_s1 + $0x3a8] sm:$0xff] }
 0x11a   :  { %2525 = vmatpush.bf16.msra.mxu2 %v4106_v24  ;;  %2611 = vmatpush.bf16.msra.mxu0 %v4122_v47 }
 0x11c   :  { %v2039_v62 = vpop.f32.mrf.mxu2 }
 0x11d   :  { %v2040_v0 = vadd.f32 %v2039_v62, %v4651_v17  ;;  %v4131_v17 = vld [vmem:[%s5563_s1 + $0x478] sm:$0xff] }
 0x11e   :  { %v2082_v1 = vpop.f32.mrf.mxu3  ;;  %v2123_v6 = vpop.f32.mrf.mxu0  ;;  %2653 = vmatpush.bf16.msra.mxu1 %v4131_v17  ;;  %2526 = vmatpush.bf16.msra.mxu2 %v4105_v48  ;;  %v2986_v62 = vld [vmem:[%s5564_s0 + $0xb8] sm:$0xf] }
 0x11f   :  { %v2083_v8 = vadd.f32 %v2082_v1, %v2040_v0  ;;  %v2124_v9 = vadd.f32 %v2123_v6, %v2081_v46  ;;  %v2166_v10 = vpop.f32.mrf.mxu1  ;;  %v3912_v0 = vld [vmem:[%s5564_s0 + $0xfc] sm:$0xf0]  ;;  %v2922_v1 = vld [vmem:[%s5564_s0 + $0x30] sm:$0xf]  ;;  %v3886_v6 = vld [vmem:[%s5564_s0 + $0x34] sm:$0xf] }
 0x121   :  { %v4943_v11 = vadd.f32 %v2166_v10, %v2124_v9  ;;  %2218 = vmatmul.bf16.gmra.mxu2 %v920_v2  ;;  %2299 = vmatmul.bf16.gmra.mxu0 %v3267_v60  ;;  %v3895_v2 = vld [vmem:[%s5564_s0 + $0x74] sm:$0xf0]  ;;  %v2988_v60 = vld [vmem:[%s5564_s0 + $0x100] sm:$0xf0]  ;;  %v2987_v9 = vor.u32 %v3912_v0, %v2986_v62 }
 0x122   :  { %2342 = vmatmul.bf16.gmra.mxu1 %v3271_v7  ;;  %v2923_v10 = vor.u32 %v3895_v2, %v2922_v1 }
 0x123   :  { %2261 = vmatmul.bf16.gmra.mxu3 %v921_v22  ;;  %v2924_v22 = vld [vmem:[%s5564_s0 + $0x78] sm:$0xf0] }
 0x124   :  { %v2042_v13 = vpop.f32.mrf.mxu2 }
 0x125   :  { %v2043_v16 = vadd.f32 %v2042_v13, %v4661_v27  ;;  %v796_v27 = vunpack.c.l.b16 %v162_v19  ;;  %v2927_v13 = vor.u32 %v3886_v6, %v2924_v22  ;;  %v3948_v22 = vld [vmem:[%s5564_s0 + $0x21c] sm:$0xf0] }
 0x126   :  { %v2085_v15 = vpop.f32.mrf.mxu3  ;;  %v2125_v18 = vpop.f32.mrf.mxu0 }
 0x127   :  { %v2086_v20 = vadd.f32 %v2085_v15, %v2043_v16  ;;  %v2126_v21 = vadd.f32 %v2125_v18, %v2083_v8  ;;  %v2168_v23 = vpop.f32.mrf.mxu1  ;;  %v922_v37 = vpack.c.b16 %v796_v27, %v796_v27  ;;  %v4121_v18 = vld [vmem:[%s5563_s1 + $0x428] sm:$0xff] }
 0x128   :  { %2612 = vmatpush.bf16.msra.mxu0 %v4121_v18 }
 0x129   :  { %v4961_v26 = vadd.f32 %v2168_v23, %v2126_v21  ;;  %v4104_v21 = vld [vmem:[%s5563_s1 + $0x3a0] sm:$0xff] }
 0x12a   :  { %v4112_v23 = vld [vmem:[%s5563_s1 + $0x3e0] sm:$0xff]  ;;  %2527 = vmatpush.bf16.msra.mxu2 %v4104_v21 }
 0x12b   :  { %2570 = vmatpush.bf16.msra.mxu3 %v4112_v23 }
 0x12c   :  { %v2044_v34 = vpop.f32.mrf.mxu2 }
 0x12d   :  { %v2045_v35 = vadd.f32 %v2044_v34, %v4686_v44  ;;  %v4130_v44 = vld [vmem:[%s5563_s1 + $0x470] sm:$0xff]  ;;  %v4120_v34 = vld [vmem:[%s5563_s1 + $0x420] sm:$0xff] }
 0x12e   :  { %v2087_v36 = vpop.f32.mrf.mxu3  ;;  %v2128_v41 = vpop.f32.mrf.mxu0  ;;  %2654 = vmatpush.bf16.msra.mxu1 %v4130_v44  ;;  %2613 = vmatpush.bf16.msra.mxu0 %v4120_v34 }
 0x12f   :  { %v2088_v42 = vadd.f32 %v2087_v36, %v2045_v35  ;;  %v2129_v43 = vadd.f32 %v2128_v41, %v2086_v20  ;;  %v2171_v45 = vpop.f32.mrf.mxu1  ;;  %v4129_v20 = vld [vmem:[%s5563_s1 + $0x468] sm:$0xff]  ;;  %v2994_v35 = vld [vmem:[%s5564_s0 + $0xc0] sm:$0xf] }
 0x130   :  { %v3913_v36 = vld [vmem:[%s5564_s0 + $0x104] sm:$0xf0]  ;;  %v2996_v41 = vld [vmem:[%s5564_s0 + $0x108] sm:$0xf0] }
 0x131   :  { %v4976_v46 = vadd.f32 %v2171_v45, %v2129_v43  ;;  %2304 = vmatmul.bf16.gmra.mxu0 %v922_v37  ;;  %2360 = vmatmul.bf16.vlgmr.msrb.gmra.mxu2 %v2915_v38  ;;  %v3060_v37 = vld [vmem:[%s5564_s0 + $0x190] sm:$0xf0]  ;;  %v3904_v38 = vld [vmem:[%s5564_s0 + $0xc4] sm:$0xf]  ;;  %v3059_v43 = vor.u32 %v3930_v59, %v3058_v33  ;;  %v2995_v45 = vor.u32 %v3913_v36, %v2994_v35 }
 0x132   :  { %2347 = vmatmul.bf16.gmra.mxu1 %v923_v29  ;;  %v2999_v48 = vor.u32 %v3904_v38, %v2996_v41  ;;  %v3202_v41 = vld [vmem:[%s5564_s0 + $0x268] sm:$0xf] }
 0x133   :  { %2403 = vmatmul.bf16.vlgmr.msrb.gmra.mxu3 %v2919_v49  ;;  %2655 = vmatpush.bf16.msra.mxu1 %v4129_v20 }
 0x134   :  { %v2047_v50 = vpop.f32.mrf.mxu2 }
 0x135   :  { %v2048_v52 = vadd.f32 %v2047_v50, %v4699_v55  ;;  %v3903_v55 = vld [vmem:[%s5564_s0 + $0xbc] sm:$0xf] }
 0x136   :  { %v2090_v63 = vpop.f32.mrf.mxu3  ;;  %v2130_v4 = vpop.f32.mrf.mxu0  ;;  %v2991_v17 = vor.u32 %v3903_v55, %v2988_v60  ;;  %v3130_v60 = vld [vmem:[%s5564_s0 + $0x1d8] sm:$0xf] }
 0x137   :  { %v2091_v54 = vadd.f32 %v2090_v63, %v2048_v52  ;;  %v2131_v56 = vadd.f32 %v2130_v4, %v2088_v42  ;;  %v2173_v57 = vpop.f32.mrf.mxu1  ;;  %v4128_v4 = vld [vmem:[%s5563_s1 + $0x460] sm:$0xff]  ;;  %v3131_v20 = vor.u32 %v3948_v22, %v3130_v60  ;;  %v4109_v60 = vld [vmem:[%s5563_s1 + $0x3c8] sm:$0xff] }
 0x138   :  { %2656 = vmatpush.bf16.msra.mxu1 %v4128_v4 }
 0x139   :  { %v4991_v61 = vadd.f32 %v2173_v57, %v2131_v56  ;;  %v4111_v56 = vld [vmem:[%s5563_s1 + $0x3d8] sm:$0xff] }
 0x13a   :  { %2571 = vmatpush.bf16.msra.mxu3 %v4111_v56 }
 0x13c   :  { %v2049_v7 = vpop.f32.mrf.mxu2 }
 0x13d   :  { %v4119_v7 = vld [vmem:[%s5563_s1 + $0x418] sm:$0xff] }
 0x13e   :  { %v2092_v8 = vpop.f32.mrf.mxu3  ;;  %v2133_v12 = vpop.f32.mrf.mxu0  ;;  %2614 = vmatpush.bf16.msra.mxu0 %v4119_v7 }
 0x13f   :  { %v2134_v16 = vadd.f32 %v2133_v12, %v2091_v54  ;;  %v2176_v15 = vpop.f32.mrf.mxu1  ;;  %v3939_v8 = vld [vmem:[%s5564_s0 + $0x1dc] sm:$0xf]  ;;  %v3132_v12 = vld [vmem:[%s5564_s0 + $0x220] sm:$0xf0] }
 0x141   :  { %v5020_v19 = vadd.f32 %v2176_v15, %v2134_v16  ;;  %2365 = vmatmul.bf16.gmra.mxu2 %v2987_v9  ;;  %2446 = vmatmul.bf16.vlgmr.msrb.gmra.mxu0 %v2923_v10  ;;  %v3066_v9 = vld [vmem:[%s5564_s0 + $0x150] sm:$0xf]  ;;  %v3931_v10 = vld [vmem:[%s5564_s0 + $0x194] sm:$0xf0] }
 0x142   :  { %2489 = vmatmul.bf16.vlgmr.msrb.gmra.mxu1 %v2927_v13  ;;  %v3068_v13 = vld [vmem:[%s5564_s0 + $0x198] sm:$0xf0]  ;;  %v3067_v21 = vor.u32 %v3931_v10, %v3066_v9 }
 0x143   :  { %2408 = vmatmul.bf16.gmra.mxu3 %v2991_v17  ;;  %v3922_v17 = vld [vmem:[%s5564_s0 + $0x154] sm:$0xf] }
 0x144   :  { %v2189_v24 = vpop.f32.mrf.mxu2 }
 0x145   :  { %v2190_v25 = vadd.f32 %v2189_v24, %v4778_v53  ;;  %v3921_v53 = vld [vmem:[%s5564_s0 + $0x14c] sm:$0xf]  ;;  %v3135_v24 = vor.u32 %v3939_v8, %v3132_v12 }
 0x146   :  { %v2232_v27 = vpop.f32.mrf.mxu3  ;;  %v2135_v28 = vpop.f32.mrf.mxu0  ;;  %v3063_v44 = vor.u32 %v3921_v53, %v3060_v37 }
 0x147   :  { %v2233_v32 = vadd.f32 %v2232_v27, %v2190_v25  ;;  %v2178_v31 = vpop.f32.mrf.mxu1  ;;  %v3071_v25 = vor.u32 %v3922_v17, %v3068_v13  ;;  %v4117_v17 = vld [vmem:[%s5563_s1 + $0x408] sm:$0xff]  ;;  %v3274_v13 = vld [vmem:[%s5564_s0 + $0x2f8] sm:$0xf] }
 0x148   :  { %v4102_v31 = vld [vmem:[%s5563_s1 + $0x390] sm:$0xff] }
 0x14c   :  { %v2191_v29 = vpop.f32.mrf.mxu2 }
 0x14d   :  { %v2192_v49 = vadd.f32 %v2191_v29, %v4790_v3  ;;  %v4103_v3 = vld [vmem:[%s5563_s1 + $0x398] sm:$0xff]  ;;  %v3966_v29 = vld [vmem:[%s5564_s0 + $0x2ac] sm:$0xf0] }
 0x14e   :  { %v2234_v42 = vpop.f32.mrf.mxu3  ;;  %v2275_v47 = vpop.f32.mrf.mxu0  ;;  %2528 = vmatpush.bf16.msra.mxu2 %v4103_v3  ;;  %v3203_v56 = vor.u32 %v3966_v29, %v3202_v41 }
 0x14f   :  { %v2235_v50 = vadd.f32 %v2234_v42, %v2192_v49  ;;  %v2276_v52 = vadd.f32 %v2275_v47, %v2233_v32  ;;  %v2318_v63 = vpop.f32.mrf.mxu1  ;;  %v4118_v42 = vld [vmem:[%s5563_s1 + $0x410] sm:$0xff]  ;;  %v3138_v47 = vld [vmem:[%s5564_s0 + $0x1e0] sm:$0xf] }
 0x150   :  { %2615 = vmatpush.bf16.msra.mxu0 %v4118_v42  ;;  %v4116_v42 = vld [vmem:[%s5563_s1 + $0x400] sm:$0xff] }
 0x151   :  { %v5063_v54 = vadd.f32 %v2318_v63, %v2276_v52  ;;  %2370 = vmatmul.bf16.gmra.mxu2 %v3059_v43  ;;  %2451 = vmatmul.bf16.gmra.mxu0 %v2995_v45  ;;  %v4101_v43 = vld [vmem:[%s5563_s1 + $0x388] sm:$0xff] }
 0x152   :  { %2494 = vmatmul.bf16.gmra.mxu1 %v2999_v48  ;;  %2529 = vmatpush.bf16.msra.mxu2 %v4102_v31  ;;  %v3957_v45 = vld [vmem:[%s5564_s0 + $0x26c] sm:$0xf]  ;;  %v3204_v48 = vld [vmem:[%s5564_s0 + $0x2b0] sm:$0xf0] }
 0x153   :  { %2413 = vmatmul.bf16.gmra.mxu3 %v3063_v44  ;;  %v3949_v44 = vld [vmem:[%s5564_s0 + $0x224] sm:$0xf0]  ;;  %v3140_v52 = vld [vmem:[%s5564_s0 + $0x228] sm:$0xf0] }
 0x154   :  { %v2194_v57 = vpop.f32.mrf.mxu2  ;;  %2616 = vmatpush.bf16.msra.mxu0 %v4117_v17 }
 0x155   :  { %v2195_v58 = vadd.f32 %v2194_v57, %v4823_v30  ;;  %v4127_v30 = vld [vmem:[%s5563_s1 + $0x458] sm:$0xff]  ;;  %v3139_v57 = vor.u32 %v3949_v44, %v3138_v47  ;;  %v163_v47 = vld [vmem:[%s5564_s0 + $0x388] sm:$0xff] }
 0x156   :  { %v2237_v62 = vpop.f32.mrf.mxu3  ;;  %v2277_v0 = vpop.f32.mrf.mxu0  ;;  %2657 = vmatpush.bf16.msra.mxu1 %v4127_v30  ;;  %2530 = vmatpush.bf16.msra.mxu2 %v4101_v43 }
 0x157   :  { %v2238_v55 = vadd.f32 %v2237_v62, %v2195_v58  ;;  %v2278_v1 = vadd.f32 %v2277_v0, %v2235_v50  ;;  %v2320_v2 = vpop.f32.mrf.mxu1  ;;  %v3940_v50 = vld [vmem:[%s5564_s0 + $0x1e4] sm:$0xf]  ;;  %v3207_v62 = vor.u32 %v3957_v45, %v3204_v48 }
 0x158   :  { %v3143_v0 = vor.u32 %v3940_v50, %v3140_v52  ;;  %2617 = vmatpush.bf16.msra.mxu0 %v4116_v42  ;;  %v4124_v52 = vld [vmem:[%s5563_s1 + $0x440] sm:$0xff] }
 0x159   :  { %v5075_v6 = vadd.f32 %v2320_v2, %v2278_v1 }
 0x15c   :  { %v2196_v16 = vpop.f32.mrf.mxu2 }
 0x15d   :  { %v2197_v15 = vadd.f32 %v2196_v16, %v4835_v40  ;;  %v4110_v40 = vld [vmem:[%s5563_s1 + $0x3d0] sm:$0xff]  ;;  %v3984_v16 = vld [vmem:[%s5564_s0 + $0x33c] sm:$0xf0] }
 0x15e   :  { %v2239_v18 = vpop.f32.mrf.mxu3  ;;  %v2280_v23 = vpop.f32.mrf.mxu0  ;;  %2572 = vmatpush.bf16.msra.mxu3 %v4110_v40 }
 0x15f   :  { %v2240_v27 = vadd.f32 %v2239_v18, %v2197_v15  ;;  %v2281_v28 = vadd.f32 %v2280_v23, %v2238_v55  ;;  %v2323_v32 = vpop.f32.mrf.mxu1  ;;  %v4100_v18 = vld [vmem:[%s5563_s1 + $0x380] sm:$0xff]  ;;  %v3210_v23 = vld [vmem:[%s5564_s0 + $0x270] sm:$0xf] }
 0x160   :  { %2531 = vmatpush.bf16.msra.mxu2 %v4100_v18 }
 0x161   :  { %v5108_v33 = vadd.f32 %v2323_v32, %v2281_v28  ;;  %2375 = vmatmul.bf16.gmra.mxu2 %v3131_v20  ;;  %2456 = vmatmul.bf16.gmra.mxu0 %v3067_v21  ;;  %v4108_v20 = vld [vmem:[%s5563_s1 + $0x3c0] sm:$0xff]  ;;  %v3975_v21 = vld [vmem:[%s5564_s0 + $0x2fc] sm:$0xf] }
 0x162   :  { %2499 = vmatmul.bf16.gmra.mxu1 %v3071_v25  ;;  %2573 = vmatpush.bf16.msra.mxu3 %v4109_v60  ;;  %v3276_v25 = vld [vmem:[%s5564_s0 + $0x340] sm:$0xf0]  ;;  %v3212_v28 = vld [vmem:[%s5564_s0 + $0x2b8] sm:$0xf0] }
 0x163   :  { %2418 = vmatmul.bf16.gmra.mxu3 %v3135_v24  ;;  %v3967_v24 = vld [vmem:[%s5564_s0 + $0x2b4] sm:$0xf0] }
 0x164   :  { %v2199_v59 = vpop.f32.mrf.mxu2 }
 0x165   :  { %v2200_v34 = vadd.f32 %v2199_v59, %v4868_v5  ;;  %v4126_v5 = vld [vmem:[%s5563_s1 + $0x450] sm:$0xff]  ;;  %v3275_v59 = vor.u32 %v3984_v16, %v3274_v13 }
 0x166   :  { %v2242_v53 = vpop.f32.mrf.mxu3  ;;  %v2282_v35 = vpop.f32.mrf.mxu0  ;;  %2658 = vmatpush.bf16.msra.mxu1 %v4126_v5  ;;  %2574 = vmatpush.bf16.msra.mxu3 %v4108_v20  ;;  %v164_v16 = vld [vmem:[%s5564_s0 + $0x390] sm:$0xff] }
 0x167   :  { %v2243_v36 = vadd.f32 %v2242_v53, %v2200_v34  ;;  %v2283_v37 = vadd.f32 %v2282_v35, %v2240_v27  ;;  %v2325_v38 = vpop.f32.mrf.mxu1  ;;  %v3958_v27 = vld [vmem:[%s5564_s0 + $0x274] sm:$0xf]  ;;  %v3211_v34 = vor.u32 %v3967_v24, %v3210_v23  ;;  %v3279_v35 = vor.u32 %v3975_v21, %v3276_v25  ;;  %v2930_v25 = vld [vmem:[%s5564_s0 + $0x38] sm:$0xf] }
 0x168   :  { %v800_v23 = vunpack.c.l.b16 %v164_v16  ;;  %v801_v24 = vunpack.c.h.b16 %v164_v16  ;;  %v3074_v16 = vld [vmem:[%s5564_s0 + $0x158] sm:$0xf] }
 0x169   :  { %v5120_v49 = vadd.f32 %v2325_v38, %v2283_v37 }
 0x16c   :  { %v2201_v63 = vpop.f32.mrf.mxu2 }
 0x16d   :  { %v2202_v4 = vadd.f32 %v2201_v63, %v4880_v14 }
 0x16e   :  { %v2244_v3 = vpop.f32.mrf.mxu3  ;;  %v2285_v58 = vpop.f32.mrf.mxu0 }
 0x16f   :  { %v2245_v55 = vadd.f32 %v2244_v3, %v2202_v4  ;;  %v2286_v1 = vadd.f32 %v2285_v58, %v2243_v36  ;;  %v2328_v2 = vpop.f32.mrf.mxu1  ;;  %v3215_v36 = vor.u32 %v3958_v27, %v3212_v28  ;;  %v798_v4 = vunpack.c.l.b16 %v163_v47  ;;  %v3284_v58 = vld [vmem:[%s5564_s0 + $0x348] sm:$0xf0]  ;;  %v3887_v27 = vld [vmem:[%s5564_s0 + $0x3c] sm:$0xf]  ;;  %v2932_v28 = vld [vmem:[%s5564_s0 + $0x80] sm:$0xf0] }
 0x170   :  { %v799_v3 = vunpack.c.h.b16 %v163_v47 }
 0x171   :  { %v5153_v22 = vadd.f32 %v2328_v2, %v2286_v1  ;;  %2380 = vmatmul.bf16.gmra.mxu2 %v3203_v56  ;;  %2461 = vmatmul.bf16.gmra.mxu0 %v3139_v57  ;;  %v3985_v56 = vld [vmem:[%s5564_s0 + $0x344] sm:$0xf0]  ;;  %v3976_v57 = vld [vmem:[%s5564_s0 + $0x304] sm:$0xf]  ;;  %v924_v1 = vpack.c.b16 %v798_v4, %v798_v4  ;;  %v3905_v4 = vld [vmem:[%s5564_s0 + $0xcc] sm:$0xf] }
 0x172   :  { %2504 = vmatmul.bf16.gmra.mxu1 %v3143_v0 }
 0x173   :  { %2423 = vmatmul.bf16.gmra.mxu3 %v3207_v62 }
 0x174   :  { %v2204_v14 = vpop.f32.mrf.mxu2 }
 0x175   :  { %v2205_v7 = vadd.f32 %v2204_v14, %v4910_v39  ;;  %v4125_v39 = vld [vmem:[%s5563_s1 + $0x448] sm:$0xff]  ;;  %v925_v14 = vpack.c.b16 %v799_v3, %v799_v3 }
 0x176   :  { %v2247_v30 = vpop.f32.mrf.mxu3  ;;  %v2287_v8 = vpop.f32.mrf.mxu0  ;;  %2659 = vmatpush.bf16.msra.mxu1 %v4125_v39  ;;  %v3897_v3 = vld [vmem:[%s5564_s0 + $0x84] sm:$0xf0] }
 0x177   :  { %v2248_v9 = vadd.f32 %v2247_v30, %v2205_v7  ;;  %v2288_v10 = vadd.f32 %v2287_v8, %v2245_v55  ;;  %v2330_v12 = vpop.f32.mrf.mxu1  ;;  %v3287_v7 = vor.u32 %v3976_v57, %v3284_v58  ;;  %v2940_v57 = vld [vmem:[%s5564_s0 + $0x88] sm:$0xf0] }
 0x179   :  { %v5165_v15 = vadd.f32 %v2330_v12, %v2288_v10 }
 0x17a   :  { %2660 = vmatpush.bf16.msra.mxu1 %v4124_v52  ;;  %v3914_v52 = vld [vmem:[%s5564_s0 + $0x10c] sm:$0xf0] }
 0x17c   :  { %v2206_v32 = vpop.f32.mrf.mxu2 }
 0x17d   :  { %v2207_v31 = vadd.f32 %v2206_v32, %v4922_v51 }
 0x17e   :  { %v2249_v40 = vpop.f32.mrf.mxu3  ;;  %v2290_v53 = vpop.f32.mrf.mxu0 }
 0x17f   :  { %v2250_v37 = vadd.f32 %v2249_v40, %v2207_v31  ;;  %v2291_v38 = vadd.f32 %v2290_v53, %v2248_v9  ;;  %v2333_v41 = vpop.f32.mrf.mxu1 }
 0x181   :  { %v5195_v29 = vadd.f32 %v2333_v41, %v2291_v38  ;;  %2385 = vmatmul.bf16.gmra.mxu2 %v3275_v59  ;;  %2466 = vmatmul.bf16.gmra.mxu0 %v3211_v34  ;;  %v926_v59 = vpack.c.b16 %v800_v23, %v800_v23  ;;  %v3076_v23 = vld [vmem:[%s5564_s0 + $0x1a0] sm:$0xf0] }
 0x182   :  { %2509 = vmatmul.bf16.gmra.mxu1 %v3215_v36  ;;  %v2935_v36 = vor.u32 %v3887_v27, %v2932_v28 }
 0x183   :  { %2428 = vmatmul.bf16.gmra.mxu3 %v3279_v35  ;;  %v927_v35 = vpack.c.b16 %v801_v24, %v801_v24  ;;  %v3906_v24 = vld [vmem:[%s5564_s0 + $0xd4] sm:$0xf] }
 0x184   :  { %v2209_v51 = vpop.f32.mrf.mxu2 }
 0x185   :  { %v2210_v5 = vadd.f32 %v2209_v51, %v4943_v11  ;;  %v3282_v11 = vld [vmem:[%s5564_s0 + $0x300] sm:$0xf] }
 0x186   :  { %v2252_v43 = vpop.f32.mrf.mxu3  ;;  %v2292_v45 = vpop.f32.mrf.mxu0  ;;  %v3283_v2 = vor.u32 %v3985_v56, %v3282_v11  ;;  %v3004_v11 = vld [vmem:[%s5564_s0 + $0x110] sm:$0xf0]  ;;  %v3888_v56 = vld [vmem:[%s5564_s0 + $0x44] sm:$0xf] }
 0x187   :  { %v2253_v44 = vadd.f32 %v2252_v43, %v2210_v5  ;;  %v2293_v48 = vadd.f32 %v2292_v45, %v2250_v37  ;;  %v2335_v50 = vpop.f32.mrf.mxu1 }
 0x189   :  { %v5207_v63 = vadd.f32 %v2335_v50, %v2293_v48  ;;  %v3002_v50 = vld [vmem:[%s5564_s0 + $0xc8] sm:$0xf] }
 0x18c   :  { %v2211_v62 = vpop.f32.mrf.mxu2 }
 0x18d   :  { %v2212_v0 = vadd.f32 %v2211_v62, %v4961_v26 }
 0x18e   :  { %v2254_v55 = vpop.f32.mrf.mxu3  ;;  %v2295_v60 = vpop.f32.mrf.mxu0 }
 0x18f   :  { %v2255_v30 = vadd.f32 %v2254_v55, %v2212_v0  ;;  %v2296_v8 = vadd.f32 %v2295_v60, %v2253_v44  ;;  %v2338_v9 = vpop.f32.mrf.mxu1  ;;  %v3003_v0 = vor.u32 %v3914_v52, %v3002_v50  ;;  %v2943_v60 = vor.u32 %v3888_v56, %v2940_v57  ;;  %v3941_v50 = vld [vmem:[%s5564_s0 + $0x1ec] sm:$0xf]  ;;  %v3933_v52 = vld [vmem:[%s5564_s0 + $0x1a4] sm:$0xf0] }
 0x191   :  { %v5222_v10 = vadd.f32 %v2338_v9, %v2296_v8  ;;  %2390 = vmatmul.bf16.gmra.mxu2 %v924_v1  ;;  %2471 = vmatmul.bf16.gmra.mxu0 %v3283_v2  ;;  %v3007_v2 = vor.u32 %v3905_v4, %v3004_v11  ;;  %v3148_v4 = vld [vmem:[%s5564_s0 + $0x230] sm:$0xf0] }
 0x192   :  { %2514 = vmatmul.bf16.gmra.mxu1 %v3287_v7 }
 0x193   :  { %2433 = vmatmul.bf16.gmra.mxu3 %v925_v14 }
 0x194   :  { %v2214_v12 = vpop.f32.mrf.mxu2 }
 0x195   :  { %v2215_v17 = vadd.f32 %v2214_v12, %v4976_v46  ;;  %v3896_v46 = vld [vmem:[%s5564_s0 + $0x7c] sm:$0xf0] }
 0x196   :  { %v2257_v13 = vpop.f32.mrf.mxu3  ;;  %v2297_v26 = vpop.f32.mrf.mxu0  ;;  %v2931_v34 = vor.u32 %v3896_v46, %v2930_v25  ;;  %v3012_v25 = vld [vmem:[%s5564_s0 + $0x118] sm:$0xf0] }
 0x197   :  { %v2258_v39 = vadd.f32 %v2257_v13, %v2215_v17  ;;  %v2298_v18 = vadd.f32 %v2297_v26, %v2255_v30  ;;  %v2340_v20 = vpop.f32.mrf.mxu1 }
 0x199   :  { %v5228_v21 = vadd.f32 %v2340_v20, %v2298_v18  ;;  %v3923_v18 = vld [vmem:[%s5564_s0 + $0x15c] sm:$0xf]  ;;  %v3915_v20 = vld [vmem:[%s5564_s0 + $0x114] sm:$0xf0] }
 0x19c   :  { %v2216_v32 = vpop.f32.mrf.mxu2 }
 0x19d   :  { %v2217_v31 = vadd.f32 %v2216_v32, %v4991_v61 }
 0x19e   :  { %v2259_v40 = vpop.f32.mrf.mxu3  ;;  %v2300_v53 = vpop.f32.mrf.mxu0 }
 0x19f   :  { %v2260_v37 = vadd.f32 %v2259_v40, %v2217_v31  ;;  %v2301_v38 = vadd.f32 %v2300_v53, %v2258_v39  ;;  %v2343_v41 = vpop.f32.mrf.mxu1  ;;  %v3932_v39 = vld [vmem:[%s5564_s0 + $0x19c] sm:$0xf0] }
 0x1a0   :  { %v3075_v32 = vor.u32 %v3932_v39, %v3074_v16  ;;  %v3218_v39 = vld [vmem:[%s5564_s0 + $0x278] sm:$0xf] }
 0x1a1   :  { %v5243_v42 = vadd.f32 %v2343_v41, %v2301_v38  ;;  %2476 = vmatmul.bf16.gmra.mxu0 %v926_v59  ;;  %2532 = vmatmul.bf16.vlgmr.msra.gmra.mxu2 %v2931_v34  ;;  %v3079_v59 = vor.u32 %v3923_v18, %v3076_v23  ;;  %v3015_v34 = vor.u32 %v3906_v24, %v3012_v25  ;;  %v3968_v18 = vld [vmem:[%s5564_s0 + $0x2bc] sm:$0xf0]  ;;  %v3220_v23 = vld [vmem:[%s5564_s0 + $0x2c0] sm:$0xf0]  ;;  %v3942_v24 = vld [vmem:[%s5564_s0 + $0x1f4] sm:$0xf] }
 0x1a2   :  { %2519 = vmatmul.bf16.gmra.mxu1 %v927_v35  ;;  %v3156_v25 = vld [vmem:[%s5564_s0 + $0x238] sm:$0xf0] }
 0x1a3   :  { %2575 = vmatmul.bf16.vlgmr.msra.gmra.mxu3 %v2935_v36 }
 0x1a4   :  { %v2219_v51 = vpop.f32.mrf.mxu2 }
 0x1a5   :  { %v2220_v5 = vadd.f32 %v2219_v51, %v5020_v19  ;;  %v2938_v19 = vld [vmem:[%s5564_s0 + $0x40] sm:$0xf] }
 0x1a6   :  { %v2262_v43 = vpop.f32.mrf.mxu3  ;;  %v2302_v61 = vpop.f32.mrf.mxu0  ;;  %v2939_v55 = vor.u32 %v3897_v3, %v2938_v19  ;;  %v3924_v19 = vld [vmem:[%s5564_s0 + $0x164] sm:$0xf]  ;;  %v3084_v3 = vld [vmem:[%s5564_s0 + $0x1a8] sm:$0xf0] }
 0x1a7   :  { %v2263_v45 = vadd.f32 %v2262_v43, %v2220_v5  ;;  %v2303_v47 = vadd.f32 %v2302_v61, %v2260_v37  ;;  %v2345_v44 = vpop.f32.mrf.mxu1 }
 0x1a9   :  { %v5246_v48 = vadd.f32 %v2345_v44, %v2303_v47  ;;  %v3146_v47 = vld [vmem:[%s5564_s0 + $0x1e8] sm:$0xf]  ;;  %v3950_v44 = vld [vmem:[%s5564_s0 + $0x22c] sm:$0xf0] }
 0x1ac   :  { %v2221_v58 = vpop.f32.mrf.mxu2 }
 0x1ad   :  { %v3147_v58 = vor.u32 %v3950_v44, %v3146_v47  ;;  %v3290_v44 = vld [vmem:[%s5564_s0 + $0x308] sm:$0xf] }
 0x1ae   :  { %v2264_v62 = vpop.f32.mrf.mxu3  ;;  %v2305_v1 = vpop.f32.mrf.mxu0 }
 0x1af   :  { %v2306_v14 = vadd.f32 %v2305_v1, %v2263_v45  ;;  %v2348_v7 = vpop.f32.mrf.mxu1  ;;  %v3087_v1 = vor.u32 %v3924_v19, %v3084_v3  ;;  %v3960_v19 = vld [vmem:[%s5564_s0 + $0x284] sm:$0xf]  ;;  %v3228_v3 = vld [vmem:[%s5564_s0 + $0x2c8] sm:$0xf0] }
 0x1b1   :  { %v5272_v30 = vadd.f32 %v2348_v7, %v2306_v14  ;;  %2537 = vmatmul.bf16.gmra.mxu2 %v3003_v0  ;;  %2618 = vmatmul.bf16.vlgmr.msra.gmra.mxu0 %v2939_v55  ;;  %v3151_v55 = vor.u32 %v3941_v50, %v3148_v4  ;;  %v3986_v50 = vld [vmem:[%s5564_s0 + $0x34c] sm:$0xf0]  ;;  %v3292_v4 = vld [vmem:[%s5564_s0 + $0x350] sm:$0xf0] }
 0x1b2   :  { %2661 = vmatmul.bf16.vlgmr.msra.gmra.mxu1 %v2943_v60 }
 0x1b3   :  { %2580 = vmatmul.bf16.gmra.mxu3 %v3007_v2 }
 0x1b4   :  { %v2361_v8 = vpop.f32.mrf.mxu2 }
 0x1b5   :  { %v2362_v9 = vadd.f32 %v2361_v8, %v5063_v54  ;;  %v3010_v54 = vld [vmem:[%s5564_s0 + $0xd0] sm:$0xf] }
 0x1b6   :  { %v2404_v12 = vpop.f32.mrf.mxu3  ;;  %v2307_v17 = vpop.f32.mrf.mxu0  ;;  %v3011_v31 = vor.u32 %v3915_v20, %v3010_v54  ;;  %v3959_v54 = vld [vmem:[%s5564_s0 + $0x27c] sm:$0xf]  ;;  %v3951_v20 = vld [vmem:[%s5564_s0 + $0x234] sm:$0xf0] }
 0x1b7   :  { %v2405_v13 = vadd.f32 %v2404_v12, %v2362_v9  ;;  %v2350_v26 = vpop.f32.mrf.mxu1 }
 0x1bc   :  { %v2363_v46 = vpop.f32.mrf.mxu2 }
 0x1bd   :  { %v2364_v27 = vadd.f32 %v2363_v46, %v5075_v6 }
 0x1be   :  { %v2406_v28 = vpop.f32.mrf.mxu3  ;;  %v2447_v40 = vpop.f32.mrf.mxu0 }
 0x1bf   :  { %v2407_v53 = vadd.f32 %v2406_v28, %v2364_v27  ;;  %v2448_v35 = vadd.f32 %v2447_v40, %v2405_v13  ;;  %v2490_v36 = vpop.f32.mrf.mxu1 }
 0x1c1   :  { %v5300_v37 = vadd.f32 %v2490_v36, %v2448_v35  ;;  %2542 = vmatmul.bf16.gmra.mxu2 %v3075_v32  ;;  %2623 = vmatmul.bf16.gmra.mxu0 %v3011_v31  ;;  %v3219_v32 = vor.u32 %v3968_v18, %v3218_v39 }
 0x1c2   :  { %2666 = vmatmul.bf16.gmra.mxu1 %v3015_v34  ;;  %v3159_v34 = vor.u32 %v3942_v24, %v3156_v25  ;;  %v3300_v24 = vld [vmem:[%s5564_s0 + $0x358] sm:$0xf0] }
 0x1c3   :  { %2585 = vmatmul.bf16.gmra.mxu3 %v3079_v59  ;;  %v3223_v59 = vor.u32 %v3959_v54, %v3220_v23  ;;  %v3978_v23 = vld [vmem:[%s5564_s0 + $0x314] sm:$0xf] }
 0x1c4   :  { %v2366_v38 = vpop.f32.mrf.mxu2 }
 0x1c5   :  { %v2367_v41 = vadd.f32 %v2366_v38, %v5108_v33  ;;  %v3082_v33 = vld [vmem:[%s5564_s0 + $0x160] sm:$0xf] }
 0x1c6   :  { %v2409_v51 = vpop.f32.mrf.mxu3  ;;  %v2449_v6 = vpop.f32.mrf.mxu0  ;;  %v3083_v62 = vor.u32 %v3933_v52, %v3082_v33  ;;  %v3977_v33 = vld [vmem:[%s5564_s0 + $0x30c] sm:$0xf]  ;;  %v3969_v52 = vld [vmem:[%s5564_s0 + $0x2c4] sm:$0xf0] }
 0x1c7   :  { %v2410_v5 = vadd.f32 %v2409_v51, %v2367_v41  ;;  %v2450_v43 = vadd.f32 %v2449_v6, %v2407_v53  ;;  %v2492_v61 = vpop.f32.mrf.mxu1 }
 0x1c9   :  { %v5303_v45 = vadd.f32 %v2492_v61, %v2450_v43 }
 0x1cc   :  { %v2368_v11 = vpop.f32.mrf.mxu2 }
 0x1cd   :  { %v2369_v56 = vadd.f32 %v2368_v11, %v5120_v49 }
 0x1ce   :  { %v2411_v57 = vpop.f32.mrf.mxu3  ;;  %v2452_v0 = vpop.f32.mrf.mxu0 }
 0x1cf   :  { %v2412_v2 = vadd.f32 %v2411_v57, %v2369_v56  ;;  %v2453_v60 = vadd.f32 %v2452_v0, %v2410_v5  ;;  %v2495_v14 = vpop.f32.mrf.mxu1 }
 0x1d1   :  { %v5330_v7 = vadd.f32 %v2495_v14, %v2453_v60  ;;  %2547 = vmatmul.bf16.gmra.mxu2 %v3147_v58  ;;  %2628 = vmatmul.bf16.gmra.mxu0 %v3083_v62  ;;  %v3291_v58 = vor.u32 %v3986_v50, %v3290_v44 }
 0x1d2   :  { %2671 = vmatmul.bf16.gmra.mxu1 %v3087_v1  ;;  %v3231_v1 = vor.u32 %v3960_v19, %v3228_v3 }
 0x1d3   :  { %2590 = vmatmul.bf16.gmra.mxu3 %v3151_v55  ;;  %v3295_v55 = vor.u32 %v3977_v33, %v3292_v4 }
 0x1d4   :  { %v2371_v8 = vpop.f32.mrf.mxu2 }
 0x1d5   :  { %v2372_v9 = vadd.f32 %v2371_v8, %v5153_v22  ;;  %v3154_v22 = vld [vmem:[%s5564_s0 + $0x1f0] sm:$0xf] }
 0x1d6   :  { %v2414_v12 = vpop.f32.mrf.mxu3  ;;  %v2454_v49 = vpop.f32.mrf.mxu0  ;;  %v3155_v31 = vor.u32 %v3951_v20, %v3154_v22  ;;  %v3298_v20 = vld [vmem:[%s5564_s0 + $0x310] sm:$0xf] }
 0x1d7   :  { %v2415_v17 = vadd.f32 %v2414_v12, %v2372_v9  ;;  %v2455_v13 = vadd.f32 %v2454_v49, %v2412_v2  ;;  %v2497_v26 = vpop.f32.mrf.mxu1 }
 0x1d9   :  { %v5333_v16 = vadd.f32 %v2497_v26, %v2455_v13 }
 0x1dc   :  { %v2373_v46 = vpop.f32.mrf.mxu2 }
 0x1dd   :  { %v2374_v27 = vadd.f32 %v2373_v46, %v5165_v15 }
 0x1de   :  { %v2416_v28 = vpop.f32.mrf.mxu3  ;;  %v2457_v40 = vpop.f32.mrf.mxu0 }
 0x1df   :  { %v2417_v53 = vadd.f32 %v2416_v28, %v2374_v27  ;;  %v2458_v35 = vadd.f32 %v2457_v40, %v2415_v17  ;;  %v2500_v36 = vpop.f32.mrf.mxu1  ;;  %v165_v17 = vld [vmem:[%s5564_s0 + $0x398] sm:$0xff] }
 0x1e0   :  { %v802_v54 = vunpack.c.l.b16 %v165_v17  ;;  %v803_v22 = vunpack.c.h.b16 %v165_v17 }
 0x1e1   :  { %v5360_v38 = vadd.f32 %v2500_v36, %v2458_v35  ;;  %2552 = vmatmul.bf16.gmra.mxu2 %v3219_v32  ;;  %2633 = vmatmul.bf16.gmra.mxu0 %v3155_v31 }
 0x1e2   :  { %2676 = vmatmul.bf16.gmra.mxu1 %v3159_v34  ;;  %v928_v28 = vpack.c.b16 %v802_v54, %v802_v54  ;;  %v929_v40 = vpack.c.b16 %v803_v22, %v803_v22 }
 0x1e3   :  { %2595 = vmatmul.bf16.gmra.mxu3 %v3223_v59  ;;  %v3303_v59 = vor.u32 %v3978_v23, %v3300_v24 }
 0x1e4   :  { %v2376_v41 = vpop.f32.mrf.mxu2 }
 0x1e5   :  { %v2377_v51 = vadd.f32 %v2376_v41, %v5195_v29  ;;  %v3226_v29 = vld [vmem:[%s5564_s0 + $0x280] sm:$0xf] }
 0x1e6   :  { %v2419_v6 = vpop.f32.mrf.mxu3  ;;  %v2459_v15 = vpop.f32.mrf.mxu0  ;;  %v3227_v62 = vor.u32 %v3969_v52, %v3226_v29 }
 0x1e7   :  { %v2420_v5 = vadd.f32 %v2419_v6, %v2377_v51  ;;  %v2460_v43 = vadd.f32 %v2459_v15, %v2417_v53  ;;  %v2502_v61 = vpop.f32.mrf.mxu1  ;;  %v166_v15 = vld [vmem:[%s5564_s0 + $0x3a0] sm:$0xff] }
 0x1e8   :  { %v804_v50 = vunpack.c.l.b16 %v166_v15  ;;  %v805_v33 = vunpack.c.h.b16 %v166_v15 }
 0x1e9   :  { %v5363_v47 = vadd.f32 %v2502_v61, %v2460_v43 }
 0x1ea   :  { %v930_v19 = vpack.c.b16 %v804_v50, %v804_v50 }
 0x1ec   :  { %v2378_v11 = vpop.f32.mrf.mxu2 }
 0x1ed   :  { %v2379_v56 = vadd.f32 %v2378_v11, %v5207_v63 }
 0x1ee   :  { %v2421_v57 = vpop.f32.mrf.mxu3  ;;  %v2462_v0 = vpop.f32.mrf.mxu0 }
 0x1ef   :  { %v2422_v2 = vadd.f32 %v2421_v57, %v2379_v56  ;;  %v2463_v60 = vadd.f32 %v2462_v0, %v2420_v5  ;;  %v2505_v14 = vpop.f32.mrf.mxu1 }
 0x1f1   :  { %v5390_v8 = vadd.f32 %v2505_v14, %v2463_v60  ;;  %2557 = vmatmul.bf16.gmra.mxu2 %v3291_v58  ;;  %2638 = vmatmul.bf16.gmra.mxu0 %v3227_v62 }
 0x1f2   :  { %2681 = vmatmul.bf16.gmra.mxu1 %v3231_v1 }
 0x1f3   :  { %2600 = vmatmul.bf16.gmra.mxu3 %v3295_v55 }
 0x1f4   :  { %v2381_v9 = vpop.f32.mrf.mxu2 }
 0x1f5   :  { %v2382_v12 = vadd.f32 %v2381_v9, %v5222_v10  ;;  %v3987_v10 = vld [vmem:[%s5564_s0 + $0x354] sm:$0xf0] }
 0x1f6   :  { %v2424_v49 = vpop.f32.mrf.mxu3  ;;  %v2464_v63 = vpop.f32.mrf.mxu0  ;;  %v3299_v32 = vor.u32 %v3987_v10, %v3298_v20 }
 0x1f7   :  { %v2425_v13 = vadd.f32 %v2424_v49, %v2382_v12  ;;  %v2465_v26 = vadd.f32 %v2464_v63, %v2422_v2  ;;  %v2507_v39 = vpop.f32.mrf.mxu1 }
 0x1f9   :  { %v5396_v18 = vadd.f32 %v2507_v39, %v2465_v26 }
 0x1fc   :  { %v2383_v25 = vpop.f32.mrf.mxu2 }
 0x1fd   :  { %v2384_v46 = vadd.f32 %v2383_v25, %v5228_v21 }
 0x1fe   :  { %v2426_v27 = vpop.f32.mrf.mxu3  ;;  %v2467_v31 = vpop.f32.mrf.mxu0 }
 0x1ff   :  { %v2427_v34 = vadd.f32 %v2426_v27, %v2384_v46  ;;  %v2468_v53 = vadd.f32 %v2467_v31, %v2425_v13  ;;  %v2510_v35 = vpop.f32.mrf.mxu1 }
 0x201   :  { %v5411_v36 = vadd.f32 %v2510_v35, %v2468_v53  ;;  %2562 = vmatmul.bf16.gmra.mxu2 %v928_v28  ;;  %2643 = vmatmul.bf16.gmra.mxu0 %v3299_v32 }
 0x202   :  { %2686 = vmatmul.bf16.gmra.mxu1 %v3303_v59 }
 0x203   :  { %2605 = vmatmul.bf16.gmra.mxu3 %v929_v40 }
 0x204   :  { %v2386_v41 = vpop.f32.mrf.mxu2 }
 0x205   :  { %v2387_v51 = vadd.f32 %v2386_v41, %v5243_v42  ;;  %v931_v42 = vpack.c.b16 %v805_v33, %v805_v33 }
 0x206   :  { %v2429_v6 = vpop.f32.mrf.mxu3  ;;  %v2469_v21 = vpop.f32.mrf.mxu0 }
 0x207   :  { %v2430_v5 = vadd.f32 %v2429_v6, %v2387_v51  ;;  %v2470_v43 = vadd.f32 %v2469_v21, %v2427_v34  ;;  %v2512_v61 = vpop.f32.mrf.mxu1 }
 0x209   :  { %v5417_v44 = vadd.f32 %v2512_v61, %v2470_v43 }
 0x20c   :  { %v2388_v29 = vpop.f32.mrf.mxu2 }
 0x20d   :  { %v2389_v52 = vadd.f32 %v2388_v29, %v5246_v48 }
 0x20e   :  { %v2431_v4 = vpop.f32.mrf.mxu3  ;;  %v2472_v3 = vpop.f32.mrf.mxu0 }
 0x20f   :  { %v2432_v11 = vadd.f32 %v2431_v4, %v2389_v52  ;;  %v2473_v56 = vadd.f32 %v2472_v3, %v2430_v5  ;;  %v2515_v57 = vpop.f32.mrf.mxu1 }
 0x211   :  { %v5420_v58 = vadd.f32 %v2515_v57, %v2473_v56  ;;  %2648 = vmatmul.bf16.gmra.mxu0 %v930_v19 }
 0x212   :  { %2691 = vmatmul.bf16.gmra.mxu1 %v931_v42 }
 0x214   :  { %v2391_v62 = vpop.f32.mrf.mxu2 }
 0x215   :  { %v2392_v0 = vadd.f32 %v2391_v62, %v5272_v30 }
 0x216   :  { %v2434_v55 = vpop.f32.mrf.mxu3  ;;  %v2474_v1 = vpop.f32.mrf.mxu0 }
 0x217   :  { %v2435_v2 = vadd.f32 %v2434_v55, %v2392_v0  ;;  %v2475_v60 = vadd.f32 %v2474_v1, %v2432_v11  ;;  %v2517_v14 = vpop.f32.mrf.mxu1 }
 0x219   :  { %v5423_v48 = vadd.f32 %v2517_v14, %v2475_v60 }
 0x21c   :  { %v2393_v9 = vpop.f32.mrf.mxu2 }
 0x21e   :  { %v2436_v12 = vpop.f32.mrf.mxu3  ;;  %v2477_v49 = vpop.f32.mrf.mxu0 }
 0x21f   :  { %v2478_v63 = vadd.f32 %v2477_v49, %v2435_v2  ;;  %v2520_v17 = vpop.f32.mrf.mxu1  ;;  %v4151_v49 = vmov 0.0  }
 0x220   :  { %48 = vst [vmem:[#allocation2] sm:$0x1] %v4151_v49 }
 0x221   :  { %v5425_v13 = vadd.f32 %v2520_v17, %v2478_v63  ;;  %49 = vst [vmem:[#allocation3] sm:$0x1] %v4151_v49 }
 0x224   :  { %v2533_v26 = vpop.f32.mrf.mxu2 }
 0x225   :  { %v2534_v39 = vadd.f32 %v2533_v26, %v5300_v37 }
 0x226   :  { %v2576_v54 = vpop.f32.mrf.mxu3  ;;  %v2479_v22 = vpop.f32.mrf.mxu0 }
 0x227   :  { %v2577_v30 = vadd.f32 %v2576_v54, %v2534_v39  ;;  %v2522_v20 = vpop.f32.mrf.mxu1 }
 0x22c   :  { %v2535_v10 = vpop.f32.mrf.mxu2 }
 0x22d   :  { %v2536_v23 = vadd.f32 %v2535_v10, %v5303_v45 }
 0x22e   :  { %v2578_v24 = vpop.f32.mrf.mxu3  ;;  %v2619_v25 = vpop.f32.mrf.mxu0 }
 0x22f   :  { %v2579_v46 = vadd.f32 %v2578_v24, %v2536_v23  ;;  %v2620_v27 = vadd.f32 %v2619_v25, %v2577_v30  ;;  %v2662_v28 = vpop.f32.mrf.mxu1 }
 0x231   :  { %v5429_v32 = vadd.f32 %v2662_v28, %v2620_v27 }
 0x234   :  { %v2538_v31 = vpop.f32.mrf.mxu2 }
 0x235   :  { %v2539_v40 = vadd.f32 %v2538_v31, %v5330_v7 }
 0x236   :  { %v2581_v59 = vpop.f32.mrf.mxu3  ;;  %v2621_v34 = vpop.f32.mrf.mxu0 }
 0x237   :  { %v2582_v37 = vadd.f32 %v2581_v59, %v2539_v40  ;;  %v2622_v53 = vadd.f32 %v2621_v34, %v2579_v46  ;;  %v2664_v35 = vpop.f32.mrf.mxu1 }
 0x239   :  { %v5432_v41 = vadd.f32 %v2664_v35, %v2622_v53 }
 0x23c   :  { %v2540_v51 = vpop.f32.mrf.mxu2 }
 0x23d   :  { %v2541_v12 = vadd.f32 %v2540_v51, %v5333_v16 }
 0x23e   :  { %v2583_v6 = vpop.f32.mrf.mxu3  ;;  %v2624_v45 = vpop.f32.mrf.mxu0 }
 0x23f   :  { %v2667_v21 = vpop.f32.mrf.mxu1  ;;  %v2584_v17 = vadd.f32 %v2583_v6, %v2541_v12  ;;  %v2625_v26 = vadd.f32 %v2624_v45, %v2582_v37 }
 0x241   :  { %v5438_v25 = vadd.f32 %v2667_v21, %v2625_v26 }
 0x243   :  { %v2720_v59 = vmul.f32 %v5438_v25, %v5438_v25 }
 0x244   :  { %v2543_v15 = vpop.f32.mrf.mxu2 }
 0x245   :  { %v2544_v63 = vadd.f32 %v2543_v15, %v5360_v38  ;;  %v2719_v38 = vmul.f32 %v5432_v41, %v5432_v41 }
 0x246   :  { %v2586_v5 = vpop.f32.mrf.mxu3  ;;  %v2626_v43 = vpop.f32.mrf.mxu0 }
 0x247   :  { %v2669_v61 = vpop.f32.mrf.mxu1  ;;  %v2587_v30 = vadd.f32 %v2586_v5, %v2544_v63  ;;  %v2627_v20 = vadd.f32 %v2626_v43, %v2584_v17 }
 0x249   :  { %v5443_v28 = vadd.f32 %v2669_v61, %v2627_v20 }
 0x24c   :  { %v2545_v50 = vpop.f32.mrf.mxu2 }
 0x24d   :  { %v2546_v39 = vadd.f32 %v2545_v50, %v5363_v47 }
 0x24e   :  { %v2588_v33 = vpop.f32.mrf.mxu3  ;;  %v2629_v29 = vpop.f32.mrf.mxu0 }
 0x24f   :  { %v2672_v52 = vpop.f32.mrf.mxu1  ;;  %v2589_v16 = vadd.f32 %v2588_v33, %v2546_v39  ;;  %v2630_v46 = vadd.f32 %v2629_v29, %v2587_v30 }
 0x251   :  { %v5450_v34 = vadd.f32 %v2672_v52, %v2630_v46 }
 0x253   :  { %v2722_v52 = vmul.f32 %v5450_v34, %v5450_v34 }
 0x254   :  { %v2548_v7 = vpop.f32.mrf.mxu2 }
 0x255   :  { %v2549_v10 = vadd.f32 %v2548_v7, %v5390_v8  ;;  %v2718_v8 = vmul.f32 %v5429_v32, %v5429_v32 }
 0x256   :  { %v2591_v4 = vpop.f32.mrf.mxu3  ;;  %v2631_v19 = vpop.f32.mrf.mxu0 }
 0x257   :  { %v2674_v3 = vpop.f32.mrf.mxu1  ;;  %v2592_v47 = vadd.f32 %v2591_v4, %v2549_v10  ;;  %v2632_v31 = vadd.f32 %v2631_v19, %v2589_v16  ;;  %v2731_v45 = vadd.f32 %v2719_v38, %v2718_v8 }
 0x259   :  { %v5457_v21 = vadd.f32 %v2674_v3, %v2632_v31  ;;  %v2732_v29 = vadd.f32 %v2731_v45, %v2720_v59 }
 0x25c   :  { %v2550_v42 = vpop.f32.mrf.mxu2 }
 0x25d   :  { %v2551_v27 = vadd.f32 %v2550_v42, %v5396_v18  ;;  %v2697_v18 = vadd.f32 %v5432_v41, %v5429_v32 }
 0x25e   :  { %v2593_v11 = vpop.f32.mrf.mxu3  ;;  %v2634_v56 = vpop.f32.mrf.mxu0 }
 0x25f   :  { %v2677_v57 = vpop.f32.mrf.mxu1  ;;  %v2635_v37 = vadd.f32 %v2634_v56, %v2592_v47  ;;  %v2594_v35 = vadd.f32 %v2593_v11, %v2551_v27  ;;  %v2698_v5 = vadd.f32 %v2697_v18, %v5438_v25  ;;  %v2723_v11 = vmul.f32 %v5457_v21, %v5457_v21 }
 0x261   :  { %v2699_v7 = vadd.f32 %v2698_v5, %v5443_v28 }
 0x263   :  { %v2700_v56 = vadd.f32 %v2699_v7, %v5450_v34 }
 0x264   :  { %v2553_v62 = vpop.f32.mrf.mxu2 }
 0x265   :  { %v2554_v40 = vadd.f32 %v2553_v62, %v5411_v36  ;;  %v2721_v36 = vmul.f32 %v5443_v28, %v5443_v28 }
 0x266   :  { %v2596_v0 = vpop.f32.mrf.mxu3  ;;  %v2636_v55 = vpop.f32.mrf.mxu0 }
 0x267   :  { %v2679_v1 = vpop.f32.mrf.mxu1  ;;  %v2597_v43 = vadd.f32 %v2596_v0, %v2554_v40  ;;  %v2637_v61 = vadd.f32 %v2636_v55, %v2594_v35  ;;  %v2733_v42 = vadd.f32 %v2732_v29, %v2721_v36 }
 0x269   :  { %v2734_v55 = vadd.f32 %v2733_v42, %v2722_v52 }
 0x26b   :  { %v2735_v63 = vadd.f32 %v2734_v55, %v2723_v11 }
 0x26c   :  { %v2555_v2 = vpop.f32.mrf.mxu2 }
 0x26d   :  { %v2556_v51 = vadd.f32 %v2555_v2, %v5417_v44  ;;  %v5463_v44 = vadd.f32 %v2677_v57, %v2635_v37 }
 0x26e   :  { %v2598_v60 = vpop.f32.mrf.mxu3  ;;  %v2639_v14 = vpop.f32.mrf.mxu0 }
 0x26f   :  { %v2682_v9 = vpop.f32.mrf.mxu1  ;;  %v2599_v4 = vadd.f32 %v2598_v60, %v2556_v51  ;;  %v2640_v19 = vadd.f32 %v2639_v14, %v2597_v43  ;;  %v2724_v57 = vmul.f32 %v5463_v44, %v5463_v44  ;;  %v2701_v60 = vadd.f32 %v2700_v56, %v5457_v21 }
 0x271   :  { %v5475_v14 = vadd.f32 %v2682_v9, %v2640_v19  ;;  %v2702_v26 = vadd.f32 %v2701_v60, %v5463_v44  ;;  %v2736_v30 = vadd.f32 %v2735_v63, %v2724_v57  ;;  %v2717_v57 = vld [vmem:[#allocation3] sm:$0x1] }
 0x273   :  { %v2726_v9 = vmul.f32 %v5475_v14, %v5475_v14 }
 0x274   :  { %v2558_v54 = vpop.f32.mrf.mxu2 }
 0x275   :  { %v2559_v50 = vadd.f32 %v2558_v54, %v5420_v58  ;;  %v5470_v58 = vadd.f32 %v2679_v1, %v2637_v61 }
 0x276   :  { %v2601_v22 = vpop.f32.mrf.mxu3  ;;  %v2641_v23 = vpop.f32.mrf.mxu0 }
 0x277   :  { %v2684_v24 = vpop.f32.mrf.mxu1  ;;  %v2602_v62 = vadd.f32 %v2601_v22, %v2559_v50  ;;  %v2642_v0 = vadd.f32 %v2641_v23, %v2599_v4  ;;  %v2725_v1 = vmul.f32 %v5470_v58, %v5470_v58  ;;  %v2703_v20 = vadd.f32 %v2702_v26, %v5470_v58 }
 0x279   :  { %v5480_v39 = vadd.f32 %v2684_v24, %v2642_v0  ;;  %v2737_v16 = vadd.f32 %v2736_v30, %v2725_v1  ;;  %v2704_v46 = vadd.f32 %v2703_v20, %v5475_v14 }
 0x27b   :  { %v2727_v27 = vmul.f32 %v5480_v39, %v5480_v39  ;;  %v2738_v47 = vadd.f32 %v2737_v16, %v2726_v9  ;;  %v2705_v31 = vadd.f32 %v2704_v46, %v5480_v39  ;;  %v2775_v16 = vld [vmem:[%s5565_s2] sm:$0x1] }
 0x27c   :  { %v2560_v53 = vpop.f32.mrf.mxu2 }
 0x27d   :  { %v2561_v3 = vadd.f32 %v2560_v53, %v5423_v48  ;;  %v2739_v53 = vadd.f32 %v2738_v47, %v2727_v27  ;;  %v2788_v47 = vld [vmem:[%s5566_s3] sm:$0x1] }
 0x27e   :  { %v2603_v6 = vpop.f32.mrf.mxu3  ;;  %v2644_v15 = vpop.f32.mrf.mxu0 }
 0x27f   :  { %v2687_v33 = vpop.f32.mrf.mxu1  ;;  %v2604_v48 = vadd.f32 %v2603_v6, %v2561_v3  ;;  %v2645_v12 = vadd.f32 %v2644_v15, %v2602_v62  ;;  %v2696_v62 = vld [vmem:[#allocation2] sm:$0x1] }
 0x281   :  { %v5485_v10 = vadd.f32 %v2687_v33, %v2645_v12 }
 0x283   :  { %v2728_v40 = vmul.f32 %v5485_v10, %v5485_v10 }
 0x284   :  { %v2563_v2 = vpop.f32.mrf.mxu2 }
 0x285   :  { %v2564_v23 = vadd.f32 %v2563_v2, %v5425_v13  ;;  %v2706_v13 = vadd.f32 %v2705_v31, %v5485_v10  ;;  %v2740_v6 = vadd.f32 %v2739_v53, %v2728_v40 }
 0x286   :  { %v2606_v49 = vpop.f32.mrf.mxu3  ;;  %v2646_v17 = vpop.f32.mrf.mxu0 }
 0x287   :  { %v2647_v54 = vadd.f32 %v2646_v17, %v2604_v48  ;;  %v2689_v22 = vpop.f32.mrf.mxu1  ;;  %v2607_v8 = vadd.f32 %v2606_v49, %v2564_v23 }
 0x289   :  { %v5491_v24 = vadd.f32 %v2689_v22, %v2647_v54 }
 0x28b   :  { %v2729_v18 = vmul.f32 %v5491_v24, %v5491_v24  ;;  %v2707_v45 = vadd.f32 %v2706_v13, %v5491_v24 }
 0x28c   :  { %v2565_v38 = vpop.f32.mrf.mxu2 }
 0x28d   :  { %v2741_v15 = vadd.f32 %v2740_v6, %v2729_v18 }
 0x28e   :  { %v2608_v59 = vpop.f32.mrf.mxu3  ;;  %v2649_v37 = vpop.f32.mrf.mxu0 }
 0x28f   :  { %v2650_v35 = vadd.f32 %v2649_v37, %v2607_v8  ;;  %v2692_v51 = vpop.f32.mrf.mxu1 }
 0x291   :  { %v5500_v36 = vadd.f32 %v2692_v51, %v2650_v35 }
 0x293   :  { %v2708_v5 = vadd.f32 %v2707_v45, %v5500_v36  ;;  %v2730_v43 = vmul.f32 %v5500_v36, %v5500_v36 }
 0x295   :  { %v2709_v61 = vrot.slane %v2708_v5, 4  ;;  %v2742_v50 = vadd.f32 %v2741_v15, %v2730_v43 }
 0x296   :  { %v2651_v33 = vpop.f32.mrf.mxu0 }
 0x297   :  { %v2710_v29 = vadd.f32 %v2709_v61, %v2708_v5  ;;  %v2743_v52 = vrot.slane %v2742_v50, 4  ;;  %v2694_v7 = vpop.f32.mrf.mxu1 }
 0x299   :  { %v2711_v4 = vrot.slane %v2710_v29, 2  ;;  %v2744_v19 = vadd.f32 %v2743_v52, %v2742_v50 }
 0x29b   :  { %v2712_v3 = vadd.f32 %v2711_v4, %v2710_v29  ;;  %v2745_v42 = vrot.slane %v2744_v19, 2 }
 0x29d   :  { %v2713_v11 = vrot.slane %v2712_v3, 1  ;;  %v2746_v56 = vadd.f32 %v2745_v42, %v2744_v19 }
 0x29f   :  { %v2714_v0 = vadd.f32 %v2713_v11, %v2712_v3  ;;  %v2747_v55 = vrot.slane %v2746_v56, 1 }
 0x2a1   :  { %v2715_v2 = vadd.f32 %v2714_v0, %v2696_v62  ;;  %v2748_v60 = vadd.f32 %v2747_v55, %v2746_v56 }
 0x2a3   :  { %2716 = vst [vmem:[#allocation2] sm:$0x1] %v2715_v2  ;;  %v2749_v48 = vadd.f32 %v2748_v60, %v2717_v57 }
 0x2a5   :  { %2750 = vst [vmem:[#allocation3] sm:$0x1] %v2749_v48 }
 0x2aa   :  { %v2769_v12 = vld [vmem:[#allocation2] sm:$0x1] }
 0x2ab   :  { %v2770_v49 = vmul.f32 0.010204081, %v2769_v12 }
 0x2ac   :  { %v2771_v63 = vld [vmem:[#allocation3] sm:$0x1] }
 0x2ad   :  { %v2772_v17 = vmul.f32 0.010204081, %v2771_v63  ;;  %v2773_v26 = vmul.f32 %v2770_v49, %v2770_v49 }
 0x2af   :  { %v2774_v1 = vsub.f32 %v2772_v17, %v2773_v26 }
 0x2b1   :  { %v2776_v54 = vadd.f32 1e-05, %v2774_v1 }
 0x2b3   :  { %4149 = vrsqrt.f32 %v2776_v54  ;;  %vm2783_vm1 = vweird.f32 %v2776_v54 }
 0x2b9   :  { %v4150_v22 = vpop.eup %4149 }
 0x2ba   :  { %v2778_v30 = vmul.f32 %v4150_v22, %v2776_v54  ;;  %vm2784_vm0 = vweird.f32 %v4150_v22 }
 0x2bb   :  { %vm2785_vm2 = vmor %vm2783_vm1, %vm2784_vm0 }
 0x2bc   :  { %v2779_v20 = vmul.f32 %v4150_v22, %v2778_v30 }
 0x2be   :  { %v2780_v9 = vmul.f32 0.5, %v2779_v20 }
 0x2c0   :  { %v2781_v23 = vsub.f32 1.5, %v2780_v9 }
 0x2c2   :  { %v2782_v46 = vmul.f32 %v4150_v22, %v2781_v23 }
 0x2c4   :  { %v2786_v27 = vsel %vm2785_vm2, %v4150_v22, %v2782_v46 }
 0x2c5   :  { %v2787_v38 = vmul.f32 %v2786_v27, %v2775_v16 }
 0x2c7   :  { %v2789_v31 = vmul.f32 %v2787_v38, %v2770_v49  ;;  %v2805_v40 = vperm.slane %v2787_v38, 0 }
 0x2c9   :  { %v2790_v8 = vsub.f32 %v2788_v47, %v2789_v31  ;;  %v2807_v59 = vmul.f32 %v2805_v40, %v5429_v32  ;;  %v2808_v37 = vmul.f32 %v2805_v40, %v5432_v41  ;;  %v2809_v53 = vmul.f32 %v2805_v40, %v5438_v25 }
 0x2ca   :  { %v2810_v13 = vmul.f32 %v2805_v40, %v5443_v28  ;;  %v2811_v35 = vmul.f32 %v2805_v40, %v5450_v34  ;;  %v2812_v51 = vmul.f32 %v2805_v40, %v5457_v21  ;;  %v2813_v43 = vmul.f32 %v2805_v40, %v5463_v44 }
 0x2cb   :  { %v2821_v18 = vperm.slane %v2790_v8, 0  ;;  %v2814_v32 = vmul.f32 %v2805_v40, %v5470_v58  ;;  %v2815_v41 = vmul.f32 %v2805_v40, %v5475_v14  ;;  %v2816_v34 = vmul.f32 %v2805_v40, %v5480_v39 }
 0x2cc   :  { %v2817_v7 = vmul.f32 %v2805_v40, %v5485_v10  ;;  %v2818_v44 = vmul.f32 %v2805_v40, %v5491_v24  ;;  %v2819_v39 = vmul.f32 %v2805_v40, %v5500_v36 }
 0x2cd   :  { %v2823_v6 = vadd.f32 %v2821_v18, %v2807_v59  ;;  %v2824_v45 = vadd.f32 %v2821_v18, %v2808_v37  ;;  %v2825_v15 = vadd.f32 %v2821_v18, %v2809_v53  ;;  %v2826_v5 = vadd.f32 %v2821_v18, %v2810_v13 }
 0x2ce   :  { %v2827_v61 = vadd.f32 %v2821_v18, %v2811_v35  ;;  %v2828_v50 = vadd.f32 %v2821_v18, %v2812_v51  ;;  %v2829_v25 = vadd.f32 %v2821_v18, %v2813_v43  ;;  %v2830_v52 = vadd.f32 %v2821_v18, %v2814_v32 }
 0x2cf   :  { %v2836_v33 = vmax.f32 %v2823_v6, 0.0  ;;  %v2837_v28 = vmax.f32 %v2824_v45, 0.0  ;;  %v2838_v29 = vmax.f32 %v2825_v15, 0.0  ;;  %v2839_v21 = vmax.f32 %v2826_v5, 0.0 }
 0x2d0   :  { %v2831_v4 = vadd.f32 %v2821_v18, %v2815_v41  ;;  %v2840_v19 = vmax.f32 %v2827_v61, 0.0  ;;  %v2832_v58 = vadd.f32 %v2821_v18, %v2816_v34  ;;  %v2841_v14 = vmax.f32 %v2828_v50, 0.0 }
 0x2d1   :  { %2849 = vst [vmem:[%s5567_s4] sm:$0xff] %v2836_v33  ;;  %v2833_v3 = vadd.f32 %v2821_v18, %v2817_v7  ;;  %v2842_v42 = vmax.f32 %v2829_v25, 0.0  ;;  %v2834_v10 = vadd.f32 %v2821_v18, %v2818_v44  ;;  %v2843_v11 = vmax.f32 %v2830_v52, 0.0 }
 0x2d2   :  { %2850 = vst [vmem:[%s5567_s4 + $0x8] sm:$0xff] %v2837_v28  ;;  %v2835_v24 = vadd.f32 %v2821_v18, %v2819_v39  ;;  %v2844_v56 = vmax.f32 %v2831_v4, 0.0  ;;  %v2845_v62 = vmax.f32 %v2832_v58, 0.0 }
 0x2d3   :  { %2851 = vst [vmem:[%s5567_s4 + $0x10] sm:$0xff] %v2838_v29  ;;  %v2846_v36 = vmax.f32 %v2833_v3, 0.0  ;;  %v2847_v0 = vmax.f32 %v2834_v10, 0.0 }
 0x2d4   :  { %2852 = vst [vmem:[%s5567_s4 + $0x18] sm:$0xff] %v2839_v21  ;;  %v2848_v55 = vmax.f32 %v2835_v24, 0.0 }
 0x2d5   :  { %2853 = vst [vmem:[%s5567_s4 + $0x20] sm:$0xff] %v2840_v19 }
 0x2d6   :  { %2854 = vst [vmem:[%s5567_s4 + $0x28] sm:$0xff] %v2841_v14 }
 0x2d7   :  { %2855 = vst [vmem:[%s5567_s4 + $0x30] sm:$0xff] %v2842_v42 }
 0x2d8   :  { %2856 = vst [vmem:[%s5567_s4 + $0x38] sm:$0xff] %v2843_v11 }
 0x2d9   :  { %2857 = vst [vmem:[%s5567_s4 + $0x40] sm:$0xff] %v2844_v56 }
 0x2da   :  { %2858 = vst [vmem:[%s5567_s4 + $0x48] sm:$0xff] %v2845_v62 }
 0x2db   :  { %2859 = vst [vmem:[%s5567_s4 + $0x50] sm:$0xff] %v2846_v36 }
 0x2dc   :  { %2860 = vst [vmem:[%s5567_s4 + $0x58] sm:$0xff] %v2847_v0 }
 0x2dd   :  { %2861 = vst [vmem:[%s5567_s4 + $0x60] sm:$0xff] %v2848_v55 }

// kernel: generator_forward.6
= control target key start
LH: loop header
LB: loop body
LE: loop exit
PB: predicated region body
PF: predicated region fallthrough
CT: control target
= control target key end

     0   :  { %s1640_s15 = smov 0   ;;  %s1642_s16 = smov 0   ;;  %s2310_s0 = inlined_call_operand.vmem [shape: bf16[416,512], index: 0, kind: input, shape index: {}]   ;;  %s2311_s1 = inlined_call_operand.vmem [shape: bf16[4,512,64], index: 1, kind: input, shape index: {}]   ;;  %s2312_s2 = inlined_call_operand.vmem [shape: f32[1,64], index: 2, kind: input, shape index: {}]   ;;  %s2313_s3 = inlined_call_operand.vmem [shape: f32[1,64], index: 3, kind: input, shape index: {}]   ;;  %s2314_s4 = inlined_call_operand.vmem [shape: f32[416,64], index: 4, kind: output, shape index: {}]  }
   0x1   :  { %s1644_s17 = smov 0  }
   0x2 LB: > { %s26_s18 = sadd.s32 1, %s1608_s16  ;;  %p1270_p0 = scmp.ge.s32.totalorder %s1612_s17, 1  ;;  %s1612_s17 = sphi %s1644_s17, %s14_s17   ;;  %s1608_s16 = sphi %s1642_s16, %s2316_s16   ;;  %s1604_s15 = sphi %s1640_s15, %s2315_s15  }
   0x3   : > { %p28_p1 = scmp.ge.s32.totalorder %s26_s18, 4  ;;  %p185_p2 = scmp.lt.s32.totalorder %s1612_s17, 5 }
   0x5   : > { %s2318_s18 = smov (%p28_p1, %s26_s18), 0  ;;  %p186_p3 = pnand %p1270_p0, %p185_p2 }
   0x6   : > { %s214_s19 = smul.u32 (!%p186_p3), 13, %s1604_s15  ;;  %p222_p4 = scmp.lt.s32.totalorder (!%p186_p3), %s1604_s15, 3 }
   0x7   : > { %189 = sbr.rel (%p186_p3) target bundleno = 399 (0x18f), region = 36  ;;  %p227_p5 = scmp.eq.s32.totalorder (!%p186_p3), %s1604_s15, 0 }
   0x8   : > { %p215_p6 = scmp.lt.s32.totalorder (!%p186_p3), %s214_s19, 51 }
   0xc   : > { %s223_s20 = scalar_select %p222_p4, %s1604_s15, 3  ;;  %vm233_vm0 = vcmask (%p227_p5), 516096   ;;  %v1614_v0 = vmov (%p227_p5), 0.0  }
   0xd   : > { %s2320_s19 = smov (!%p215_p6, %s214_s19), 51  ;;  %232 = sbr.rel (!%p227_p5) target bundleno = 18 (0x12), region = 40  ;;  %234 = vst.msk [vmem:[#allocation2] sm:$0x1] (%p227_p5), %vm233_vm0, %v1614_v0 }
   0xe   : > { %s1504_s21 = sshll.u32 %s223_s20, 8  ;;  %s1503_s22 = sshll.u32 %s2320_s19, 4  ;;  %235 = vst.msk [vmem:[#allocation3] sm:$0x1] (%p227_p5), %vm233_vm0, %v1614_v0 }
   0xf   : > { %s1667_s25 = scalar_lea.vmem %s2311_s1, %s1504_s21  ;;  %s1672_s28 = scalar_lea.vmem %s2310_s0, %s1503_s22 }
  0x12 PF: > { %v1537_v1 = vld [vmem:[%s1667_s25 + $0x38] sm:$0xff]  ;;  %v1536_v5 = vld [vmem:[%s1667_s25 + $0x30] sm:$0xff]  ;;  %v1535_v9 = vld [vmem:[%s1667_s25 + $0x28] sm:$0xff]  ;;  %p923_p7 = scmp.eq.s32.totalorder %s1604_s15, 3  ;;  %s908_s29 = smul.u32 104, %s1604_s15  ;;  %vm825_vm1 = vcmask 523264  }
  0x13   : > { %v1545_v2 = vld [vmem:[%s1667_s25 + $0x78] sm:$0xff]  ;;  %652 = vmatpush.bf16.msra.mxu0 %v1537_v1  ;;  %v1544_v6 = vld [vmem:[%s1667_s25 + $0x70] sm:$0xff]  ;;  %v1543_v10 = vld [vmem:[%s1667_s25 + $0x68] sm:$0xff]  ;;  %vm858_vm2 = vcmask 516096  }
  0x14   : > { %v1553_v3 = vld [vmem:[%s1667_s25 + $0xb8] sm:$0xff]  ;;  %695 = vmatpush.bf16.msra.mxu1 %v1545_v2  ;;  %v1552_v7 = vld [vmem:[%s1667_s25 + $0xb0] sm:$0xff]  ;;  %v1551_v11 = vld [vmem:[%s1667_s25 + $0xa8] sm:$0xff]  ;;  %s1761_s6 = scalar_lea.vmem %s2314_s4, %s908_s29 }
  0x15   : > { %v1561_v4 = vld [vmem:[%s1667_s25 + $0xf8] sm:$0xff]  ;;  %738 = vmatpush.bf16.msra.mxu2 %v1553_v3  ;;  %v1560_v8 = vld [vmem:[%s1667_s25 + $0xf0] sm:$0xff]  ;;  %v1559_v12 = vld [vmem:[%s1667_s25 + $0xe8] sm:$0xff] }
  0x16   : > { %781 = vmatpush.bf16.msra.mxu3 %v1561_v4  ;;  %v1534_v13 = vld [vmem:[%s1667_s25 + $0x20] sm:$0xff]  ;;  %v1533_v17 = vld [vmem:[%s1667_s25 + $0x18] sm:$0xff]  ;;  %v1532_v21 = vld [vmem:[%s1667_s25 + $0x10] sm:$0xff] }
  0x17   : > { %653 = vmatpush.bf16.msra.mxu0 %v1536_v5  ;;  %v1542_v14 = vld [vmem:[%s1667_s25 + $0x60] sm:$0xff]  ;;  %v1541_v18 = vld [vmem:[%s1667_s25 + $0x58] sm:$0xff]  ;;  %v1540_v22 = vld [vmem:[%s1667_s25 + $0x50] sm:$0xff] }
  0x18   : > { %696 = vmatpush.bf16.msra.mxu1 %v1544_v6  ;;  %v1550_v15 = vld [vmem:[%s1667_s25 + $0xa0] sm:$0xff]  ;;  %v1549_v19 = vld [vmem:[%s1667_s25 + $0x98] sm:$0xff]  ;;  %v1548_v23 = vld [vmem:[%s1667_s25 + $0x90] sm:$0xff] }
  0x19   : > { %739 = vmatpush.bf16.msra.mxu2 %v1552_v7  ;;  %v1558_v16 = vld [vmem:[%s1667_s25 + $0xe0] sm:$0xff]  ;;  %v1557_v20 = vld [vmem:[%s1667_s25 + $0xd8] sm:$0xff]  ;;  %v1556_v24 = vld [vmem:[%s1667_s25 + $0xd0] sm:$0xff] }
  0x1a   : > { %782 = vmatpush.bf16.msra.mxu3 %v1560_v8  ;;  %v1531_v25 = vld [vmem:[%s1667_s25 + $0x8] sm:$0xff]  ;;  %v1530_v29 = vld [vmem:[%s1667_s25] sm:$0xff]  ;;  %v1508_v34 = vld [vmem:[%s1672_s28 + $0xc] sm:$0xf0] }
  0x1b   : > { %654 = vmatpush.bf16.msra.mxu0 %v1535_v9  ;;  %v1539_v26 = vld [vmem:[%s1667_s25 + $0x48] sm:$0xff]  ;;  %v1538_v30 = vld [vmem:[%s1667_s25 + $0x40] sm:$0xff]  ;;  %v1280_v36 = vld [vmem:[%s1672_s28 + $0x10] sm:$0xf0] }
  0x1c   : > { %697 = vmatpush.bf16.msra.mxu1 %v1543_v10  ;;  %v1547_v27 = vld [vmem:[%s1667_s25 + $0x88] sm:$0xff]  ;;  %v1546_v31 = vld [vmem:[%s1667_s25 + $0x80] sm:$0xff]  ;;  %v1509_v38 = vld [vmem:[%s1672_s28 + $0x14] sm:$0xf0] }
  0x1d   : > { %740 = vmatpush.bf16.msra.mxu2 %v1551_v11  ;;  %v1555_v28 = vld [vmem:[%s1667_s25 + $0xc8] sm:$0xff]  ;;  %v1554_v32 = vld [vmem:[%s1667_s25 + $0xc0] sm:$0xff]  ;;  %v1288_v40 = vld [vmem:[%s1672_s28 + $0x18] sm:$0xf0] }
  0x1e   : > { %783 = vmatpush.bf16.msra.mxu3 %v1559_v12  ;;  %v1278_v33 = vld [vmem:[%s1672_s28] sm:$0xf]  ;;  %v1506_v35 = vld [vmem:[%s1672_s28 + $0x4] sm:$0xf]  ;;  %v1286_v37 = vld [vmem:[%s1672_s28 + $0x8] sm:$0xf] }
  0x1f   : > { %655 = vmatpush.bf16.msra.mxu0 %v1534_v13  ;;  %v1507_v39 = vld [vmem:[%s1672_s28 + $0xc] sm:$0xf]  ;;  %v1279_v41 = vor.u32 %v1508_v34, %v1278_v33  ;;  %v1283_v42 = vor.u32 %v1506_v35, %v1280_v36  ;;  %v1287_v43 = vor.u32 %v1509_v38, %v1286_v37  ;;  %v1294_v45 = vld [vmem:[%s1672_s28 + $0x20] sm:$0xf]  ;;  %v1512_v46 = vld [vmem:[%s1672_s28 + $0x2c] sm:$0xf0] }
  0x20   : > { %698 = vmatpush.bf16.msra.mxu1 %v1542_v14  ;;  %v1291_v44 = vor.u32 %v1507_v39, %v1288_v40  ;;  %v1510_v47 = vld [vmem:[%s1672_s28 + $0x24] sm:$0xf]  ;;  %v1296_v48 = vld [vmem:[%s1672_s28 + $0x30] sm:$0xf0]  ;;  %v1302_v49 = vld [vmem:[%s1672_s28 + $0x28] sm:$0xf]  ;;  %v1295_v53 = vor.u32 %v1512_v46, %v1294_v45 }
  0x21   : > { %741 = vmatpush.bf16.msra.mxu2 %v1550_v15  ;;  %v1513_v50 = vld [vmem:[%s1672_s28 + $0x34] sm:$0xf0]  ;;  %v1511_v51 = vld [vmem:[%s1672_s28 + $0x2c] sm:$0xf]  ;;  %v1304_v52 = vld [vmem:[%s1672_s28 + $0x38] sm:$0xf0]  ;;  %v1299_v54 = vor.u32 %v1510_v47, %v1296_v48 }
  0x22   : > { %784 = vmatpush.bf16.msra.mxu3 %v1558_v16  ;;  %v1303_v55 = vor.u32 %v1513_v50, %v1302_v49  ;;  %v1307_v56 = vor.u32 %v1511_v51, %v1304_v52  ;;  %v1310_v57 = vld [vmem:[%s1672_s28 + $0x40] sm:$0xf]  ;;  %v1516_v58 = vld [vmem:[%s1672_s28 + $0x4c] sm:$0xf0]  ;;  %v1514_v59 = vld [vmem:[%s1672_s28 + $0x44] sm:$0xf] }
  0x23   : > { %656 = vmatpush.bf16.msra.mxu0 %v1533_v17  ;;  %v1312_v60 = vld [vmem:[%s1672_s28 + $0x50] sm:$0xf0]  ;;  %v1318_v61 = vld [vmem:[%s1672_s28 + $0x48] sm:$0xf]  ;;  %v1517_v62 = vld [vmem:[%s1672_s28 + $0x54] sm:$0xf0]  ;;  %v1311_v1 = vor.u32 %v1516_v58, %v1310_v57 }
  0x24   : > { %699 = vmatpush.bf16.msra.mxu1 %v1541_v18  ;;  %v1515_v63 = vld [vmem:[%s1672_s28 + $0x4c] sm:$0xf]  ;;  %v1320_v0 = vld [vmem:[%s1672_s28 + $0x58] sm:$0xf0]  ;;  %v1315_v2 = vor.u32 %v1514_v59, %v1312_v60  ;;  %v1319_v3 = vor.u32 %v1517_v62, %v1318_v61  ;;  %v1326_v5 = vld [vmem:[%s1672_s28 + $0x60] sm:$0xf] }
  0x25   : > { %742 = vmatpush.bf16.msra.mxu2 %v1549_v19  ;;  %v1323_v4 = vor.u32 %v1515_v63, %v1320_v0  ;;  %v1520_v6 = vld [vmem:[%s1672_s28 + $0x6c] sm:$0xf0]  ;;  %v1518_v7 = vld [vmem:[%s1672_s28 + $0x64] sm:$0xf]  ;;  %v1328_v8 = vld [vmem:[%s1672_s28 + $0x70] sm:$0xf0] }
  0x26   : > { %785 = vmatpush.bf16.msra.mxu3 %v1557_v20  ;;  %v1334_v9 = vld [vmem:[%s1672_s28 + $0x68] sm:$0xf]  ;;  %v1521_v10 = vld [vmem:[%s1672_s28 + $0x74] sm:$0xf0]  ;;  %v1519_v11 = vld [vmem:[%s1672_s28 + $0x6c] sm:$0xf]  ;;  %v1327_v13 = vor.u32 %v1520_v6, %v1326_v5  ;;  %v1331_v14 = vor.u32 %v1518_v7, %v1328_v8 }
  0x27   : > { %657 = vmatpush.bf16.msra.mxu0 %v1532_v21  ;;  %v1336_v12 = vld [vmem:[%s1672_s28 + $0x78] sm:$0xf0]  ;;  %v1335_v15 = vor.u32 %v1521_v10, %v1334_v9  ;;  %v1342_v17 = vld [vmem:[%s1672_s28 + $0x80] sm:$0xf]  ;;  %v1524_v18 = vld [vmem:[%s1672_s28 + $0x8c] sm:$0xf0] }
  0x28   : > { %700 = vmatpush.bf16.msra.mxu1 %v1540_v22  ;;  %v1339_v16 = vor.u32 %v1519_v11, %v1336_v12  ;;  %v1522_v19 = vld [vmem:[%s1672_s28 + $0x84] sm:$0xf]  ;;  %v1344_v20 = vld [vmem:[%s1672_s28 + $0x90] sm:$0xf0]  ;;  %v1350_v21 = vld [vmem:[%s1672_s28 + $0x88] sm:$0xf] }
  0x29   : > { %743 = vmatpush.bf16.msra.mxu2 %v1548_v23  ;;  %v1525_v22 = vld [vmem:[%s1672_s28 + $0x94] sm:$0xf0]  ;;  %v1523_v23 = vld [vmem:[%s1672_s28 + $0x8c] sm:$0xf]  ;;  %v1366_v33 = vld [vmem:[%s1672_s28 + $0xa8] sm:$0xf] }
  0x2a   : > { %786 = vmatpush.bf16.msra.mxu3 %v1556_v24  ;;  %v1352_v24 = vld [vmem:[%s1672_s28 + $0x98] sm:$0xf0]  ;;  %v1529_v34 = vld [vmem:[%s1672_s28 + $0xb4] sm:$0xf0]  ;;  %v1527_v35 = vld [vmem:[%s1672_s28 + $0xac] sm:$0xf] }
  0x2b   : > { %658 = vmatpush.bf16.msra.mxu0 %v1531_v25  ;;  %v1343_v25 = vor.u32 %v1524_v18, %v1342_v17  ;;  %v1368_v36 = vld [vmem:[%s1672_s28 + $0xb8] sm:$0xf0]  ;;  %v1367_v39 = vor.u32 %v1529_v34, %v1366_v33 }
  0x2c   : > { %701 = vmatpush.bf16.msra.mxu1 %v1539_v26  ;;  %v1347_v26 = vor.u32 %v1522_v19, %v1344_v20  ;;  %v1371_v40 = vor.u32 %v1527_v35, %v1368_v36 }
  0x2d   : > { %744 = vmatpush.bf16.msra.mxu2 %v1547_v27  ;;  %v1351_v27 = vor.u32 %v1525_v22, %v1350_v21 }
  0x2e   : > { %787 = vmatpush.bf16.msra.mxu3 %v1555_v28  ;;  %v1355_v28 = vor.u32 %v1523_v23, %v1352_v24 }
  0x2f   : > { %659 = vmatpush.bf16.msra.mxu0 %v1530_v29  ;;  %v1358_v29 = vld [vmem:[%s1672_s28 + $0xa0] sm:$0xf] }
  0x30   : > { %702 = vmatpush.bf16.msra.mxu1 %v1538_v30  ;;  %v1528_v30 = vld [vmem:[%s1672_s28 + $0xac] sm:$0xf0] }
  0x31   : > { %745 = vmatpush.bf16.msra.mxu2 %v1546_v31  ;;  %v1526_v31 = vld [vmem:[%s1672_s28 + $0xa4] sm:$0xf]  ;;  %v1359_v37 = vor.u32 %v1528_v30, %v1358_v29 }
  0x32   : > { %788 = vmatpush.bf16.msra.mxu3 %v1554_v32  ;;  %660 = vmatmul.bf16.vlgmr.msra.gmra.mxu0 %v1279_v41  ;;  %v1360_v32 = vld [vmem:[%s1672_s28 + $0xb0] sm:$0xf0]  ;;  %v260_v41 = vld [vmem:[%s1672_s28 + $0xc0] sm:$0xff] }
  0x33   : > { %703 = vmatmul.bf16.vlgmr.msra.gmra.mxu1 %v1283_v42  ;;  %v1363_v38 = vor.u32 %v1526_v31, %v1360_v32  ;;  %v261_v42 = vld [vmem:[%s1672_s28 + $0xc8] sm:$0xff] }
  0x34   : > { %746 = vmatmul.bf16.vlgmr.msra.gmra.mxu2 %v1287_v43  ;;  %v400_v43 = vunpack.c.l.b16 %v260_v41  ;;  %v402_v45 = vunpack.c.l.b16 %v261_v42  ;;  %v403_v46 = vunpack.c.h.b16 %v261_v42 }
  0x35   : > { %789 = vmatmul.bf16.vlgmr.msra.gmra.mxu3 %v1291_v44  ;;  %v401_v44 = vunpack.c.h.b16 %v260_v41 }
  0x36   : > { %v428_v47 = vpack.c.b16 %v400_v43, %v400_v43  ;;  %v430_v49 = vpack.c.b16 %v402_v45, %v402_v45  ;;  %v431_v50 = vpack.c.b16 %v403_v46, %v403_v46 }
  0x37   : > { %v429_v48 = vpack.c.b16 %v401_v44, %v401_v44 }
  0x42   : > { %665 = vmatmul.bf16.gmra.mxu0 %v1295_v53 }
  0x43   : > { %708 = vmatmul.bf16.gmra.mxu1 %v1299_v54 }
  0x44   : > { %751 = vmatmul.bf16.gmra.mxu2 %v1303_v55 }
  0x45   : > { %794 = vmatmul.bf16.gmra.mxu3 %v1307_v56 }
  0x52   : > { %670 = vmatmul.bf16.gmra.mxu0 %v1311_v1 }
  0x53   : > { %713 = vmatmul.bf16.gmra.mxu1 %v1315_v2 }
  0x54   : > { %756 = vmatmul.bf16.gmra.mxu2 %v1319_v3 }
  0x55   : > { %799 = vmatmul.bf16.gmra.mxu3 %v1323_v4 }
  0x62   : > { %675 = vmatmul.bf16.gmra.mxu0 %v1327_v13 }
  0x63   : > { %718 = vmatmul.bf16.gmra.mxu1 %v1331_v14 }
  0x64   : > { %761 = vmatmul.bf16.gmra.mxu2 %v1335_v15 }
  0x65   : > { %804 = vmatmul.bf16.gmra.mxu3 %v1339_v16 }
  0x72   : > { %680 = vmatmul.bf16.gmra.mxu0 %v1343_v25 }
  0x73   : > { %723 = vmatmul.bf16.gmra.mxu1 %v1347_v26 }
  0x74   : > { %766 = vmatmul.bf16.gmra.mxu2 %v1351_v27 }
  0x75   : > { %809 = vmatmul.bf16.gmra.mxu3 %v1355_v28 }
  0x82   : > { %685 = vmatmul.bf16.gmra.mxu0 %v1359_v37 }
  0x83   : > { %728 = vmatmul.bf16.gmra.mxu1 %v1363_v38 }
  0x84   : > { %771 = vmatmul.bf16.gmra.mxu2 %v1367_v39 }
  0x85   : > { %814 = vmatmul.bf16.gmra.mxu3 %v1371_v40 }
  0x92   : > { %690 = vmatmul.bf16.gmra.mxu0 %v428_v47 }
  0x93   : > { %733 = vmatmul.bf16.gmra.mxu1 %v429_v48 }
  0x94   : > { %776 = vmatmul.bf16.gmra.mxu2 %v430_v49 }
  0x95   : > { %819 = vmatmul.bf16.gmra.mxu3 %v431_v50 }
  0xaf   : > { %v661_v51 = vpop.f32.mrf.mxu0 }
  0xb0   : > { %v704_v52 = vpop.f32.mrf.mxu1 }
  0xb1   : > { %v705_v53 = vadd.f32 %v704_v52, %v661_v51 }
  0xb7   : > { %v747_v54 = vpop.f32.mrf.mxu2  ;;  %v663_v57 = vpop.f32.mrf.mxu0 }
  0xb8   : > { %v790_v55 = vpop.f32.mrf.mxu3  ;;  %v748_v56 = vadd.f32 %v747_v54, %v705_v53  ;;  %v706_v58 = vpop.f32.mrf.mxu1 }
  0xb9   : > { %v707_v60 = vadd.f32 %v706_v58, %v663_v57 }
  0xba   : > { %v791_v59 = vadd.f32 %v790_v55, %v748_v56 }
  0xbc   : > { %910 = vst.msk [vmem:[%s1761_s6] sm:$0xff] %vm825_vm1, %v791_v59  ;;  %v861_v2 = vmul.f32 %v791_v59, %v791_v59  ;;  %v826_v4 = vsel %vm825_vm1, %v791_v59, 0.0 }
  0xbe   : > { %v874_v9 = vsel %vm825_vm1, %v861_v2, 0.0 }
  0xbf   : > { %v749_v61 = vpop.f32.mrf.mxu2  ;;  %v666_v0 = vpop.f32.mrf.mxu0 }
  0xc0   : > { %v792_v62 = vpop.f32.mrf.mxu3  ;;  %v750_v63 = vadd.f32 %v749_v61, %v707_v60  ;;  %v709_v1 = vpop.f32.mrf.mxu1 }
  0xc1   : > { %v710_v7 = vadd.f32 %v709_v1, %v666_v0 }
  0xc2   : > { %v793_v3 = vadd.f32 %v792_v62, %v750_v63 }
  0xc4   : > { %v827_v5 = vsel %vm825_vm1, %v793_v3, 0.0  ;;  %v862_v6 = vmul.f32 %v793_v3, %v793_v3  ;;  %911 = vst.msk [vmem:[%s1761_s6 + $0x8] sm:$0xff] %vm825_vm1, %v793_v3 }
  0xc5   : > { %v1769_v8 = vadd.f32 %v827_v5, %v826_v4 }
  0xc6   : > { %v875_v10 = vsel %vm825_vm1, %v862_v6, 0.0 }
  0xc7   : > { %v1773_v11 = vadd.f32 %v875_v10, %v874_v9  ;;  %v752_v12 = vpop.f32.mrf.mxu2  ;;  %v668_v15 = vpop.f32.mrf.mxu0 }
  0xc8   : > { %v795_v13 = vpop.f32.mrf.mxu3  ;;  %v753_v14 = vadd.f32 %v752_v12, %v710_v7  ;;  %v711_v16 = vpop.f32.mrf.mxu1 }
  0xc9   : > { %v712_v18 = vadd.f32 %v711_v16, %v668_v15 }
  0xca   : > { %v796_v17 = vadd.f32 %v795_v13, %v753_v14 }
  0xcc   : > { %912 = vst.msk [vmem:[%s1761_s6 + $0x10] sm:$0xff] %vm825_vm1, %v796_v17  ;;  %v863_v3 = vmul.f32 %v796_v17, %v796_v17  ;;  %v829_v5 = vsel %vm825_vm1, %v796_v17, 0.0 }
  0xce   : > { %v877_v10 = vsel %vm825_vm1, %v863_v3, 0.0 }
  0xcf   : > { %v754_v19 = vpop.f32.mrf.mxu2  ;;  %v671_v22 = vpop.f32.mrf.mxu0 }
  0xd0   : > { %v797_v20 = vpop.f32.mrf.mxu3  ;;  %v755_v21 = vadd.f32 %v754_v19, %v712_v18  ;;  %v714_v23 = vpop.f32.mrf.mxu1  ;;  %v830_v18 = vadd.f32 %v829_v5, %v1769_v8 }
  0xd1   : > { %v715_v25 = vadd.f32 %v714_v23, %v671_v22  ;;  %v878_v22 = vadd.f32 %v877_v10, %v1773_v11 }
  0xd2   : > { %v798_v24 = vadd.f32 %v797_v20, %v755_v21 }
  0xd4   : > { %913 = vst.msk [vmem:[%s1761_s6 + $0x18] sm:$0xff] %vm825_vm1, %v798_v24  ;;  %v864_v6 = vmul.f32 %v798_v24, %v798_v24  ;;  %v831_v12 = vsel %vm825_vm1, %v798_v24, 0.0 }
  0xd5   : > { %v832_v23 = vadd.f32 %v831_v12, %v830_v18 }
  0xd6   : > { %v879_v19 = vsel %vm825_vm1, %v864_v6, 0.0 }
  0xd7   : > { %v757_v26 = vpop.f32.mrf.mxu2  ;;  %v673_v29 = vpop.f32.mrf.mxu0 }
  0xd8   : > { %v800_v27 = vpop.f32.mrf.mxu3  ;;  %v758_v28 = vadd.f32 %v757_v26, %v715_v25  ;;  %v716_v30 = vpop.f32.mrf.mxu1 }
  0xd9   : > { %v717_v32 = vadd.f32 %v716_v30, %v673_v29 }
  0xda   : > { %v801_v31 = vadd.f32 %v800_v27, %v758_v28  ;;  %v880_v27 = vadd.f32 %v879_v19, %v878_v22 }
  0xdc   : > { %914 = vst.msk [vmem:[%s1761_s6 + $0x20] sm:$0xff] %vm825_vm1, %v801_v31  ;;  %v865_v13 = vmul.f32 %v801_v31, %v801_v31  ;;  %v833_v20 = vsel %vm825_vm1, %v801_v31, 0.0 }
  0xdd   : > { %v834_v28 = vadd.f32 %v833_v20, %v832_v23 }
  0xde   : > { %v881_v25 = vsel %vm825_vm1, %v865_v13, 0.0 }
  0xdf   : > { %v759_v33 = vpop.f32.mrf.mxu2  ;;  %v676_v36 = vpop.f32.mrf.mxu0 }
  0xe0   : > { %v802_v34 = vpop.f32.mrf.mxu3  ;;  %v760_v35 = vadd.f32 %v759_v33, %v717_v32  ;;  %v719_v37 = vpop.f32.mrf.mxu1  ;;  %v882_v32 = vadd.f32 %v881_v25, %v880_v27 }
  0xe1   : > { %v720_v39 = vadd.f32 %v719_v37, %v676_v36 }
  0xe2   : > { %v803_v38 = vadd.f32 %v802_v34, %v760_v35 }
  0xe4   : > { %915 = vst.msk [vmem:[%s1761_s6 + $0x28] sm:$0xff] %vm825_vm1, %v803_v38  ;;  %v866_v21 = vmul.f32 %v803_v38, %v803_v38  ;;  %v835_v26 = vsel %vm825_vm1, %v803_v38, 0.0 }
  0xe5   : > { %v836_v33 = vadd.f32 %v835_v26, %v834_v28  ;;  %v824_v28 = vld [vmem:[#allocation2] sm:$0x1] }
  0xe6   : > { %v883_v8 = vsel %vm825_vm1, %v866_v21, 0.0 }
  0xe7   : > { %v762_v40 = vpop.f32.mrf.mxu2  ;;  %v678_v43 = vpop.f32.mrf.mxu0 }
  0xe8   : > { %v805_v41 = vpop.f32.mrf.mxu3  ;;  %v763_v42 = vadd.f32 %v762_v40, %v720_v39  ;;  %v721_v44 = vpop.f32.mrf.mxu1 }
  0xe9   : > { %v722_v46 = vadd.f32 %v721_v44, %v678_v43 }
  0xea   : > { %v806_v45 = vadd.f32 %v805_v41, %v763_v42  ;;  %v884_v41 = vadd.f32 %v883_v8, %v882_v32 }
  0xec   : > { %916 = vst.msk [vmem:[%s1761_s6 + $0x30] sm:$0xff] %vm825_vm1, %v806_v45  ;;  %v867_v24 = vmul.f32 %v806_v45, %v806_v45  ;;  %v837_v29 = vsel %vm825_vm1, %v806_v45, 0.0 }
  0xed   : > { %v838_v42 = vadd.f32 %v837_v29, %v836_v33 }
  0xee   : > { %v885_v35 = vsel %vm825_vm1, %v867_v24, 0.0 }
  0xef   : > { %v764_v47 = vpop.f32.mrf.mxu2  ;;  %v681_v50 = vpop.f32.mrf.mxu0 }
  0xf0   : > { %v807_v48 = vpop.f32.mrf.mxu3  ;;  %v765_v49 = vadd.f32 %v764_v47, %v722_v46  ;;  %v724_v51 = vpop.f32.mrf.mxu1  ;;  %v886_v47 = vadd.f32 %v885_v35, %v884_v41 }
  0xf1   : > { %v725_v53 = vadd.f32 %v724_v51, %v681_v50 }
  0xf2   : > { %v808_v52 = vadd.f32 %v807_v48, %v765_v49 }
  0xf4   : > { %917 = vst.msk [vmem:[%s1761_s6 + $0x38] sm:$0xff] %vm825_vm1, %v808_v52  ;;  %v868_v30 = vmul.f32 %v808_v52, %v808_v52  ;;  %v839_v36 = vsel %vm825_vm1, %v808_v52, 0.0 }
  0xf5   : > { %v840_v48 = vadd.f32 %v839_v36, %v838_v42 }
  0xf6   : > { %v887_v43 = vsel %vm825_vm1, %v868_v30, 0.0  ;;  %v860_v30 = vld [vmem:[#allocation3] sm:$0x1] }
  0xf7   : > { %v767_v54 = vpop.f32.mrf.mxu2  ;;  %v683_v57 = vpop.f32.mrf.mxu0 }
  0xf8   : > { %v810_v55 = vpop.f32.mrf.mxu3  ;;  %v768_v56 = vadd.f32 %v767_v54, %v725_v53  ;;  %v726_v58 = vpop.f32.mrf.mxu1  ;;  %v888_v53 = vadd.f32 %v887_v43, %v886_v47 }
  0xf9   : > { %v727_v60 = vadd.f32 %v726_v58, %v683_v57 }
  0xfa   : > { %v811_v59 = vadd.f32 %v810_v55, %v768_v56 }
  0xfc   : > { %918 = vst.msk [vmem:[%s1761_s6 + $0x40] sm:$0xff] %vm825_vm1, %v811_v59  ;;  %v869_v37 = vmul.f32 %v811_v59, %v811_v59  ;;  %v841_v44 = vsel %vm825_vm1, %v811_v59, 0.0 }
  0xfd   : > { %v842_v54 = vadd.f32 %v841_v44, %v840_v48 }
  0xfe   : > { %v889_v49 = vsel %vm825_vm1, %v869_v37, 0.0 }
  0xff   : > { %v769_v61 = vpop.f32.mrf.mxu2  ;;  %v686_v0 = vpop.f32.mrf.mxu0  ;;  %v890_v58 = vadd.f32 %v889_v49, %v888_v53  ;;  %v947_v49 = vld [vmem:[%s2313_s3] sm:$0x1] (%p923_p7) }
 0x100   : > { %v812_v62 = vpop.f32.mrf.mxu3  ;;  %v770_v63 = vadd.f32 %v769_v61, %v727_v60  ;;  %v729_v1 = vpop.f32.mrf.mxu1 }
 0x101   : > { %v730_v4 = vadd.f32 %v729_v1, %v686_v0 }
 0x102   : > { %v813_v2 = vadd.f32 %v812_v62, %v770_v63 }
 0x104   : > { %919 = vst.msk [vmem:[%s1761_s6 + $0x48] sm:$0xff] %vm825_vm1, %v813_v2  ;;  %v870_v45 = vmul.f32 %v813_v2, %v813_v2  ;;  %v843_v50 = vsel %vm825_vm1, %v813_v2, 0.0 }
 0x105   : > { %v844_v59 = vadd.f32 %v843_v50, %v842_v54 }
 0x106   : > { %v891_v55 = vsel %vm825_vm1, %v870_v45, 0.0  ;;  %v934_v45 = vld [vmem:[%s2312_s2] sm:$0x1] (%p923_p7) }
 0x107   : > { %v772_v7 = vpop.f32.mrf.mxu2  ;;  %v688_v15 = vpop.f32.mrf.mxu0  ;;  %v892_v3 = vadd.f32 %v891_v55, %v890_v58 }
 0x108   : > { %v815_v9 = vpop.f32.mrf.mxu3  ;;  %v773_v14 = vadd.f32 %v772_v7, %v730_v4  ;;  %v731_v16 = vpop.f32.mrf.mxu1 }
 0x109   : > { %v732_v31 = vadd.f32 %v731_v16, %v688_v15 }
 0x10a   : > { %v816_v17 = vadd.f32 %v815_v9, %v773_v14 }
 0x10c   : > { %920 = vst.msk [vmem:[%s1761_s6 + $0x50] sm:$0xff] %vm825_vm1, %v816_v17  ;;  %v871_v51 = vmul.f32 %v816_v17, %v816_v17  ;;  %v845_v56 = vsel %vm825_vm1, %v816_v17, 0.0 }
 0x10d   : > { %v846_v4 = vadd.f32 %v845_v56, %v844_v59 }
 0x10e   : > { %v893_v62 = vsel %vm825_vm1, %v871_v51, 0.0 }
 0x10f   : > { %v774_v34 = vpop.f32.mrf.mxu2  ;;  %v691_v39 = vpop.f32.mrf.mxu0  ;;  %v894_v7 = vadd.f32 %v893_v62, %v892_v3 }
 0x110   : > { %v817_v11 = vpop.f32.mrf.mxu3  ;;  %v775_v38 = vadd.f32 %v774_v34, %v732_v31  ;;  %v734_v40 = vpop.f32.mrf.mxu1 }
 0x111   : > { %v735_v52 = vadd.f32 %v734_v40, %v691_v39 }
 0x112   : > { %v818_v46 = vadd.f32 %v817_v11, %v775_v38 }
 0x114   : > { %921 = vst.msk [vmem:[%s1761_s6 + $0x58] sm:$0xff] %vm825_vm1, %v818_v46  ;;  %v872_v57 = vmul.f32 %v818_v46, %v818_v46  ;;  %v847_v63 = vsel %vm825_vm1, %v818_v46, 0.0 }
 0x115   : > { %v848_v9 = vadd.f32 %v847_v63, %v846_v4 }
 0x116   : > { %v895_v5 = vsel %vm825_vm1, %v872_v57, 0.0 }
 0x117   : > { %v777_v60 = vpop.f32.mrf.mxu2  ;;  %v693_v1 = vpop.f32.mrf.mxu0  ;;  %v896_v13 = vadd.f32 %v895_v5, %v894_v7 }
 0x118   : > { %v820_v61 = vpop.f32.mrf.mxu3  ;;  %v778_v0 = vadd.f32 %v777_v60, %v735_v52  ;;  %v736_v2 = vpop.f32.mrf.mxu1 }
 0x11a   : > { %v821_v6 = vadd.f32 %v820_v61, %v778_v0 }
 0x11c   : > { %v849_v10 = vsel %vm825_vm1, %v821_v6, 0.0  ;;  %v873_v12 = vmul.f32 %v821_v6, %v821_v6  ;;  %922 = vst.msk [vmem:[%s1761_s6 + $0x60] sm:$0xff] %vm825_vm1, %v821_v6 }
 0x11d   : > { %v850_v14 = vadd.f32 %v849_v10, %v848_v9 }
 0x11e   : > { %v897_v15 = vsel %vm825_vm1, %v873_v12, 0.0 }
 0x11f   : > { %v851_v16 = vrot.slane %v850_v14, 4  ;;  %v898_v18 = vadd.f32 %v897_v15, %v896_v13  ;;  %v779_v19 = vpop.f32.mrf.mxu2 }
 0x120   : > { %v822_v20 = vpop.f32.mrf.mxu3 }
 0x121   : > { %v852_v21 = vadd.f32 %v851_v16, %v850_v14  ;;  %v899_v17 = vrot.slane %v898_v18, 4 }
 0x123   : > { %v853_v22 = vrot.slane %v852_v21, 2  ;;  %v900_v23 = vadd.f32 %v899_v17, %v898_v18  ;;  %v950_v50 = vld [vmem:[%s2314_s4] sm:$0xff] (%p923_p7)  ;;  %v951_v51 = vld [vmem:[%s2314_s4 + $0x8] sm:$0xff] (%p923_p7)  ;;  %v952_v52 = vld [vmem:[%s2314_s4 + $0x10] sm:$0xff] (%p923_p7) }
 0x124   : > { %v953_v55 = vld [vmem:[%s2314_s4 + $0x18] sm:$0xff] (%p923_p7)  ;;  %v954_v56 = vld [vmem:[%s2314_s4 + $0x20] sm:$0xff] (%p923_p7)  ;;  %v955_v57 = vld [vmem:[%s2314_s4 + $0x28] sm:$0xff] (%p923_p7) }
 0x125   : > { %v854_v25 = vadd.f32 %v853_v22, %v852_v21  ;;  %v901_v26 = vrot.slane %v900_v23, 2  ;;  %v956_v58 = vld [vmem:[%s2314_s4 + $0x30] sm:$0xff] (%p923_p7)  ;;  %v957_v63 = vld [vmem:[%s2314_s4 + $0x38] sm:$0xff] (%p923_p7)  ;;  %v958_v0 = vld [vmem:[%s2314_s4 + $0x40] sm:$0xff] (%p923_p7) }
 0x126   : > { %v959_v6 = vld [vmem:[%s2314_s4 + $0x48] sm:$0xff] (%p923_p7)  ;;  %v960_v7 = vld [vmem:[%s2314_s4 + $0x50] sm:$0xff] (%p923_p7)  ;;  %v961_v16 = vld [vmem:[%s2314_s4 + $0x58] sm:$0xff] (%p923_p7) }
 0x127   : > { %v855_v24 = vrot.slane %v854_v25, 1  ;;  %v902_v27 = vadd.f32 %v901_v26, %v900_v23  ;;  %v962_v17 = vld [vmem:[%s2314_s4 + $0x60] sm:$0xff] (%p923_p7) }
 0x129   : > { %v856_v8 = vadd.f32 %v855_v24, %v854_v25  ;;  %v903_v29 = vrot.slane %v902_v27, 1  ;;  %v963_v24 = vld [vmem:[%s2314_s4 + $0x68] sm:$0xff] (%p923_p7) }
 0x12b   : > { %v857_v31 = vadd.f32 %v856_v8, %v824_v28  ;;  %v904_v32 = vadd.f32 %v903_v29, %v902_v27  ;;  %927 = sbr.rel (!%p923_p7) target bundleno = 399 (0x18f), region = 44  ;;  %v964_v29 = vld [vmem:[%s2314_s4 + $0x70] sm:$0xff] (%p923_p7) }
 0x12d   : > { %859 = vst.msk [vmem:[#allocation2] sm:$0x1] %vm858_vm2, %v857_v31  ;;  %v905_v33 = vadd.f32 %v904_v32, %v860_v30 }
 0x12f   : > { %906 = vst.msk [vmem:[#allocation3] sm:$0x1] %vm858_vm2, %v905_v33  ;;  %v965_v33 = vld [vmem:[%s2314_s4 + $0x78] sm:$0xff] (%p923_p7) }
 0x134   : > { %v928_v34 = vld [vmem:[#allocation2] sm:$0x1] }
 0x135   : > { %v929_v35 = vmul.f32 0.0025510204, %v928_v34 }
 0x136   : > { %v930_v11 = vld [vmem:[#allocation3] sm:$0x1] }
 0x137   : > { %v931_v36 = vmul.f32 0.0025510204, %v930_v11  ;;  %v932_v37 = vmul.f32 %v929_v35, %v929_v35 }
 0x139   : > { %v933_v38 = vsub.f32 %v931_v36, %v932_v37  ;;  %v966_v36 = vld [vmem:[%s2314_s4 + $0x80] sm:$0xff] }
 0x13b   : > { %v935_v39 = vadd.f32 1e-05, %v933_v38 }
 0x13d   : > { %1588 = vrsqrt.f32 %v935_v39  ;;  %vm942_vm3 = vweird.f32 %v935_v39 }
 0x143   : > { %v1589_v40 = vpop.eup %1588 }
 0x144   : > { %v937_v41 = vmul.f32 %v1589_v40, %v935_v39  ;;  %vm943_vm4 = vweird.f32 %v1589_v40 }
 0x145   : > { %vm944_vm5 = vmor %vm942_vm3, %vm943_vm4 }
 0x146   : > { %v938_v42 = vmul.f32 %v1589_v40, %v937_v41 }
 0x148   : > { %v939_v43 = vmul.f32 0.5, %v938_v42 }
 0x14a   : > { %v940_v44 = vsub.f32 1.5, %v939_v43 }
 0x14c   : > { %v941_v46 = vmul.f32 %v1589_v40, %v940_v44  ;;  %v968_v44 = vld [vmem:[%s2314_s4 + $0x90] sm:$0xff] }
 0x14e   : > { %v945_v47 = vsel %vm944_vm5, %v1589_v40, %v941_v46  ;;  %v967_v40 = vld [vmem:[%s2314_s4 + $0x88] sm:$0xff] }
 0x14f   : > { %v946_v48 = vmul.f32 %v945_v47, %v934_v45 }
 0x151   : > { %v948_v53 = vmul.f32 %v946_v48, %v929_v35  ;;  %v1838_v54 = vperm.slane %v946_v48, 0  ;;  %v969_v48 = vld [vmem:[%s2314_s4 + $0x98] sm:$0xff] }
 0x153   : > { %v949_v59 = vsub.f32 %v947_v49, %v948_v53  ;;  %v1005_v60 = vmul.f32 %v1838_v54, %v950_v50  ;;  %v1006_v61 = vmul.f32 %v1838_v54, %v951_v51  ;;  %v1007_v62 = vmul.f32 %v1838_v54, %v952_v52  ;;  %v970_v52 = vld [vmem:[%s2314_s4 + $0xa0] sm:$0xff] }
 0x154   : > { %v1008_v1 = vmul.f32 %v1838_v54, %v953_v55  ;;  %v1009_v2 = vmul.f32 %v1838_v54, %v954_v56  ;;  %v1010_v3 = vmul.f32 %v1838_v54, %v955_v57  ;;  %v1011_v5 = vmul.f32 %v1838_v54, %v956_v58  ;;  %v971_v57 = vld [vmem:[%s2314_s4 + $0xa8] sm:$0xff] }
 0x155   : > { %v1864_v4 = vperm.slane %v949_v59, 0  ;;  %v1012_v9 = vmul.f32 %v1838_v54, %v957_v63  ;;  %v1013_v10 = vmul.f32 %v1838_v54, %v958_v0  ;;  %v1014_v20 = vmul.f32 %v1838_v54, %v959_v6  ;;  %v974_v6 = vld [vmem:[%s2314_s4 + $0xc0] sm:$0xff] }
 0x156   : > { %v1015_v21 = vmul.f32 %v1838_v54, %v960_v7  ;;  %v1016_v8 = vmul.f32 %v1838_v54, %v961_v16  ;;  %v1017_v32 = vmul.f32 %v1838_v54, %v962_v17  ;;  %v1018_v35 = vmul.f32 %v1838_v54, %v963_v24  ;;  %v976_v16 = vld [vmem:[%s2314_s4 + $0xd0] sm:$0xff] }
 0x157   : > { %v1060_v12 = vadd.f32 %v1864_v4, %v1005_v60  ;;  %v1061_v13 = vadd.f32 %v1864_v4, %v1006_v61  ;;  %v1062_v14 = vadd.f32 %v1864_v4, %v1007_v62  ;;  %v1063_v15 = vadd.f32 %v1864_v4, %v1008_v1  ;;  %v972_v61 = vld [vmem:[%s2314_s4 + $0xb0] sm:$0xff]  ;;  %v973_v1 = vld [vmem:[%s2314_s4 + $0xb8] sm:$0xff] }
 0x158   : > { %v1064_v18 = vadd.f32 %v1864_v4, %v1009_v2  ;;  %v1065_v19 = vadd.f32 %v1864_v4, %v1010_v3  ;;  %v1066_v26 = vadd.f32 %v1864_v4, %v1011_v5  ;;  %v1067_v28 = vadd.f32 %v1864_v4, %v1012_v9 }
 0x159   : > { %v1112_v22 = vmax.f32 %v1060_v12, 0.0  ;;  %v1113_v23 = vmax.f32 %v1061_v13, 0.0  ;;  %v1114_v25 = vmax.f32 %v1062_v14, 0.0  ;;  %v1115_v27 = vmax.f32 %v1063_v15, 0.0  ;;  %v975_v12 = vld [vmem:[%s2314_s4 + $0xc8] sm:$0xff] }
 0x15a   : > { %v1116_v30 = vmax.f32 %v1064_v18, 0.0  ;;  %v1068_v31 = vadd.f32 %v1864_v4, %v1013_v10  ;;  %v1117_v34 = vmax.f32 %v1065_v19, 0.0  ;;  %v1069_v11 = vadd.f32 %v1864_v4, %v1014_v20 }
 0x15b   : > { %1164 = vst.msk [vmem:[%s2314_s4] sm:$0xff] %vm825_vm1, %v1112_v22  ;;  %v1118_v37 = vmax.f32 %v1066_v26, 0.0  ;;  %v1070_v38 = vadd.f32 %v1864_v4, %v1015_v21  ;;  %v1019_v39 = vmul.f32 %v1838_v54, %v964_v29  ;;  %v1119_v41 = vmax.f32 %v1067_v28, 0.0  ;;  %v977_v21 = vld [vmem:[%s2314_s4 + $0xd8] sm:$0xff]  ;;  %v979_v28 = vld [vmem:[%s2314_s4 + $0xe8] sm:$0xff] }
 0x15c   : > { %1165 = vst.msk [vmem:[%s2314_s4 + $0x8] sm:$0xff] %vm825_vm1, %v1113_v23  ;;  %v1071_v42 = vadd.f32 %v1864_v4, %v1016_v8  ;;  %v1020_v43 = vmul.f32 %v1838_v54, %v965_v33  ;;  %v1120_v45 = vmax.f32 %v1068_v31, 0.0  ;;  %v1072_v46 = vadd.f32 %v1864_v4, %v1017_v32  ;;  %v980_v31 = vld [vmem:[%s2314_s4 + $0xf0] sm:$0xff] }
 0x15d   : > { %1166 = vst.msk [vmem:[%s2314_s4 + $0x10] sm:$0xff] %vm825_vm1, %v1114_v25  ;;  %v1021_v47 = vmul.f32 %v1838_v54, %v966_v36  ;;  %v1121_v49 = vmax.f32 %v1069_v11, 0.0  ;;  %v1073_v50 = vadd.f32 %v1864_v4, %v1018_v35  ;;  %v1022_v51 = vmul.f32 %v1838_v54, %v967_v40  ;;  %v978_v25 = vld [vmem:[%s2314_s4 + $0xe0] sm:$0xff]  ;;  %v981_v11 = vld [vmem:[%s2314_s4 + $0xf8] sm:$0xff] }
 0x15e   : > { %1167 = vst.msk [vmem:[%s2314_s4 + $0x18] sm:$0xff] %vm825_vm1, %v1115_v27  ;;  %v1122_v53 = vmax.f32 %v1070_v38, 0.0  ;;  %v1074_v55 = vadd.f32 %v1864_v4, %v1019_v39  ;;  %v1023_v56 = vmul.f32 %v1838_v54, %v968_v44  ;;  %v1123_v58 = vmax.f32 %v1071_v42, 0.0  ;;  %v982_v38 = vld [vmem:[%s2314_s4 + $0x100] sm:$0xff]  ;;  %v983_v42 = vld [vmem:[%s2314_s4 + $0x108] sm:$0xff] }
 0x15f   : > { %1168 = vst.msk [vmem:[%s2314_s4 + $0x20] sm:$0xff] %vm825_vm1, %v1116_v30  ;;  %v1075_v59 = vadd.f32 %v1864_v4, %v1020_v43  ;;  %v1024_v60 = vmul.f32 %v1838_v54, %v969_v48  ;;  %v1124_v62 = vmax.f32 %v1072_v46, 0.0  ;;  %v1076_v63 = vadd.f32 %v1864_v4, %v1021_v47  ;;  %v984_v46 = vld [vmem:[%s2314_s4 + $0x110] sm:$0xff] }
 0x160   : > { %1169 = vst.msk [vmem:[%s2314_s4 + $0x28] sm:$0xff] %vm825_vm1, %v1117_v34  ;;  %v1025_v0 = vmul.f32 %v1838_v54, %v970_v52  ;;  %v1125_v2 = vmax.f32 %v1073_v50, 0.0  ;;  %v1077_v3 = vadd.f32 %v1864_v4, %v1022_v51  ;;  %v1026_v5 = vmul.f32 %v1838_v54, %v971_v57  ;;  %v985_v50 = vld [vmem:[%s2314_s4 + $0x118] sm:$0xff] }
 0x161   : > { %1170 = vst.msk [vmem:[%s2314_s4 + $0x30] sm:$0xff] %vm825_vm1, %v1118_v37  ;;  %v1126_v7 = vmax.f32 %v1074_v55, 0.0  ;;  %v1078_v9 = vadd.f32 %v1864_v4, %v1023_v56  ;;  %v1027_v10 = vmul.f32 %v1838_v54, %v972_v61  ;;  %v1127_v13 = vmax.f32 %v1075_v59, 0.0  ;;  %v986_v55 = vld [vmem:[%s2314_s4 + $0x120] sm:$0xff]  ;;  %v987_v59 = vld [vmem:[%s2314_s4 + $0x128] sm:$0xff] }
 0x162   : > { %1171 = vst.msk [vmem:[%s2314_s4 + $0x38] sm:$0xff] %vm825_vm1, %v1119_v41  ;;  %v1079_v14 = vadd.f32 %v1864_v4, %v1024_v60  ;;  %v1028_v15 = vmul.f32 %v1838_v54, %v973_v1  ;;  %v1128_v18 = vmax.f32 %v1076_v63, 0.0  ;;  %v1080_v19 = vadd.f32 %v1864_v4, %v1025_v0  ;;  %v988_v63 = vld [vmem:[%s2314_s4 + $0x130] sm:$0xff] }
 0x163   : > { %1172 = vst.msk [vmem:[%s2314_s4 + $0x40] sm:$0xff] %vm825_vm1, %v1120_v45  ;;  %v1029_v20 = vmul.f32 %v1838_v54, %v974_v6  ;;  %v1129_v17 = vmax.f32 %v1077_v3, 0.0  ;;  %v1081_v22 = vadd.f32 %v1864_v4, %v1026_v5  ;;  %v1030_v23 = vmul.f32 %v1838_v54, %v975_v12  ;;  %v989_v3 = vld [vmem:[%s2314_s4 + $0x138] sm:$0xff] }
 0x164   : > { %1173 = vst.msk [vmem:[%s2314_s4 + $0x48] sm:$0xff] %vm825_vm1, %v1121_v49  ;;  %v1130_v26 = vmax.f32 %v1078_v9, 0.0  ;;  %v1082_v24 = vadd.f32 %v1864_v4, %v1027_v10  ;;  %v1031_v27 = vmul.f32 %v1838_v54, %v976_v16  ;;  %v1131_v8 = vmax.f32 %v1079_v14, 0.0  ;;  %v990_v9 = vld [vmem:[%s2314_s4 + $0x140] sm:$0xff]  ;;  %v991_v14 = vld [vmem:[%s2314_s4 + $0x148] sm:$0xff] }
 0x165   : > { %1174 = vst.msk [vmem:[%s2314_s4 + $0x50] sm:$0xff] %vm825_vm1, %v1122_v53  ;;  %v1083_v29 = vadd.f32 %v1864_v4, %v1028_v15  ;;  %v1032_v30 = vmul.f32 %v1838_v54, %v977_v21  ;;  %v1132_v32 = vmax.f32 %v1080_v19, 0.0  ;;  %v1084_v33 = vadd.f32 %v1864_v4, %v1029_v20  ;;  %v992_v19 = vld [vmem:[%s2314_s4 + $0x150] sm:$0xff] }
 0x166   : > { %1175 = vst.msk [vmem:[%s2314_s4 + $0x58] sm:$0xff] %vm825_vm1, %v1123_v58  ;;  %v1033_v34 = vmul.f32 %v1838_v54, %v978_v25  ;;  %v1133_v35 = vmax.f32 %v1081_v22, 0.0  ;;  %v1085_v36 = vadd.f32 %v1864_v4, %v1030_v23  ;;  %v1034_v37 = vmul.f32 %v1838_v54, %v979_v28  ;;  %v993_v22 = vld [vmem:[%s2314_s4 + $0x158] sm:$0xff] }
 0x167   : > { %1176 = vst.msk [vmem:[%s2314_s4 + $0x60] sm:$0xff] %vm825_vm1, %v1124_v62  ;;  %v1134_v39 = vmax.f32 %v1082_v24, 0.0  ;;  %v1086_v40 = vadd.f32 %v1864_v4, %v1031_v27  ;;  %v1035_v41 = vmul.f32 %v1838_v54, %v980_v31  ;;  %v1135_v43 = vmax.f32 %v1083_v29, 0.0  ;;  %v994_v24 = vld [vmem:[%s2314_s4 + $0x160] sm:$0xff]  ;;  %v995_v29 = vld [vmem:[%s2314_s4 + $0x168] sm:$0xff] }
 0x168   : > { %1177 = vst.msk [vmem:[%s2314_s4 + $0x68] sm:$0xff] %vm825_vm1, %v1125_v2  ;;  %v1087_v44 = vadd.f32 %v1864_v4, %v1032_v30  ;;  %v1036_v45 = vmul.f32 %v1838_v54, %v981_v11  ;;  %v1136_v47 = vmax.f32 %v1084_v33, 0.0  ;;  %v1088_v48 = vadd.f32 %v1864_v4, %v1033_v34  ;;  %v996_v33 = vld [vmem:[%s2314_s4 + $0x170] sm:$0xff] }
 0x169   : > { %1178 = vst.msk [vmem:[%s2314_s4 + $0x70] sm:$0xff] %vm825_vm1, %v1126_v7  ;;  %v1037_v49 = vmul.f32 %v1838_v54, %v982_v38  ;;  %v1137_v51 = vmax.f32 %v1085_v36, 0.0  ;;  %v1089_v52 = vadd.f32 %v1864_v4, %v1034_v37  ;;  %v1038_v53 = vmul.f32 %v1838_v54, %v983_v42  ;;  %v997_v36 = vld [vmem:[%s2314_s4 + $0x178] sm:$0xff] }
 0x16a   : > { %1179 = vst.msk [vmem:[%s2314_s4 + $0x78] sm:$0xff] %vm825_vm1, %v1127_v13  ;;  %v1138_v56 = vmax.f32 %v1086_v40, 0.0  ;;  %v1090_v57 = vadd.f32 %v1864_v4, %v1035_v41  ;;  %v1039_v58 = vmul.f32 %v1838_v54, %v984_v46  ;;  %v1139_v60 = vmax.f32 %v1087_v44, 0.0  ;;  %v998_v40 = vld [vmem:[%s2314_s4 + $0x180] sm:$0xff]  ;;  %v999_v44 = vld [vmem:[%s2314_s4 + $0x188] sm:$0xff] }
 0x16b   : > { %1180 = vst.msk [vmem:[%s2314_s4 + $0x80] sm:$0xff] %vm825_vm1, %v1128_v18  ;;  %v1091_v61 = vadd.f32 %v1864_v4, %v1036_v45  ;;  %v1040_v62 = vmul.f32 %v1838_v54, %v985_v50  ;;  %v1140_v0 = vmax.f32 %v1088_v48, 0.0  ;;  %v1092_v1 = vadd.f32 %v1864_v4, %v1037_v49  ;;  %v1000_v48 = vld [vmem:[%s2314_s4 + $0x190] sm:$0xff] }
 0x16c   : > { %1181 = vst.msk [vmem:[%s2314_s4 + $0x88] sm:$0xff] %vm825_vm1, %v1129_v17  ;;  %v1041_v2 = vmul.f32 %v1838_v54, %v986_v55  ;;  %v1141_v5 = vmax.f32 %v1089_v52, 0.0  ;;  %v1093_v6 = vadd.f32 %v1864_v4, %v1038_v53  ;;  %v1042_v7 = vmul.f32 %v1838_v54, %v987_v59  ;;  %v1001_v52 = vld [vmem:[%s2314_s4 + $0x198] sm:$0xff] }
 0x16d   : > { %1182 = vst.msk [vmem:[%s2314_s4 + $0x90] sm:$0xff] %vm825_vm1, %v1130_v26  ;;  %v1142_v10 = vmax.f32 %v1090_v57, 0.0  ;;  %v1094_v12 = vadd.f32 %v1864_v4, %v1039_v58  ;;  %v1043_v13 = vmul.f32 %v1838_v54, %v988_v63  ;;  %v1143_v15 = vmax.f32 %v1091_v61, 0.0 }
 0x16e   : > { %1183 = vst.msk [vmem:[%s2314_s4 + $0x98] sm:$0xff] %vm825_vm1, %v1131_v8  ;;  %v1095_v16 = vadd.f32 %v1864_v4, %v1040_v62  ;;  %v1044_v18 = vmul.f32 %v1838_v54, %v989_v3  ;;  %v1144_v20 = vmax.f32 %v1092_v1, 0.0  ;;  %v1096_v21 = vadd.f32 %v1864_v4, %v1041_v2 }
 0x16f   : > { %1184 = vst.msk [vmem:[%s2314_s4 + $0xa0] sm:$0xff] %vm825_vm1, %v1132_v32  ;;  %v1045_v17 = vmul.f32 %v1838_v54, %v990_v9  ;;  %v1145_v23 = vmax.f32 %v1093_v6, 0.0  ;;  %v1097_v25 = vadd.f32 %v1864_v4, %v1042_v7  ;;  %v1046_v26 = vmul.f32 %v1838_v54, %v991_v14 }
 0x170   : > { %1185 = vst.msk [vmem:[%s2314_s4 + $0xa8] sm:$0xff] %vm825_vm1, %v1133_v35  ;;  %v1146_v27 = vmax.f32 %v1094_v12, 0.0  ;;  %v1098_v28 = vadd.f32 %v1864_v4, %v1043_v13  ;;  %v1047_v8 = vmul.f32 %v1838_v54, %v992_v19  ;;  %v1147_v30 = vmax.f32 %v1095_v16, 0.0 }
 0x171   : > { %1186 = vst.msk [vmem:[%s2314_s4 + $0xb0] sm:$0xff] %vm825_vm1, %v1134_v39  ;;  %v1099_v31 = vadd.f32 %v1864_v4, %v1044_v18  ;;  %v1048_v32 = vmul.f32 %v1838_v54, %v993_v22  ;;  %v1148_v34 = vmax.f32 %v1096_v21, 0.0  ;;  %v1100_v11 = vadd.f32 %v1864_v4, %v1045_v17 }
 0x172   : > { %1187 = vst.msk [vmem:[%s2314_s4 + $0xb8] sm:$0xff] %vm825_vm1, %v1135_v43  ;;  %v1049_v35 = vmul.f32 %v1838_v54, %v994_v24  ;;  %v1149_v37 = vmax.f32 %v1097_v25, 0.0  ;;  %v1101_v38 = vadd.f32 %v1864_v4, %v1046_v26  ;;  %v1050_v39 = vmul.f32 %v1838_v54, %v995_v29 }
 0x173   : > { %1188 = vst.msk [vmem:[%s2314_s4 + $0xc0] sm:$0xff] %vm825_vm1, %v1136_v47  ;;  %v1150_v41 = vmax.f32 %v1098_v28, 0.0  ;;  %v1102_v42 = vadd.f32 %v1864_v4, %v1047_v8  ;;  %v1051_v43 = vmul.f32 %v1838_v54, %v996_v33  ;;  %v1151_v45 = vmax.f32 %v1099_v31, 0.0 }
 0x174   : > { %1189 = vst.msk [vmem:[%s2314_s4 + $0xc8] sm:$0xff] %vm825_vm1, %v1137_v51  ;;  %v1103_v46 = vadd.f32 %v1864_v4, %v1048_v32  ;;  %v1052_v47 = vmul.f32 %v1838_v54, %v997_v36  ;;  %v1152_v49 = vmax.f32 %v1100_v11, 0.0  ;;  %v1104_v50 = vadd.f32 %v1864_v4, %v1049_v35 }
 0x175   : > { %1190 = vst.msk [vmem:[%s2314_s4 + $0xd0] sm:$0xff] %vm825_vm1, %v1138_v56  ;;  %v1053_v51 = vmul.f32 %v1838_v54, %v998_v40  ;;  %v1153_v53 = vmax.f32 %v1101_v38, 0.0  ;;  %v1105_v55 = vadd.f32 %v1864_v4, %v1050_v39  ;;  %v1054_v56 = vmul.f32 %v1838_v54, %v999_v44 }
 0x176   : > { %1191 = vst.msk [vmem:[%s2314_s4 + $0xd8] sm:$0xff] %vm825_vm1, %v1139_v60  ;;  %v1154_v57 = vmax.f32 %v1102_v42, 0.0  ;;  %v1106_v58 = vadd.f32 %v1864_v4, %v1051_v43  ;;  %v1055_v59 = vmul.f32 %v1838_v54, %v1000_v48  ;;  %v1155_v60 = vmax.f32 %v1103_v46, 0.0 }
 0x177   : > { %1192 = vst.msk [vmem:[%s2314_s4 + $0xe0] sm:$0xff] %vm825_vm1, %v1140_v0  ;;  %v1107_v61 = vadd.f32 %v1864_v4, %v1052_v47  ;;  %v1056_v62 = vmul.f32 %v1838_v54, %v1001_v52  ;;  %v1156_v63 = vmax.f32 %v1104_v50, 0.0  ;;  %v1108_v0 = vadd.f32 %v1864_v4, %v1053_v51 }
 0x178   : > { %1193 = vst.msk [vmem:[%s2314_s4 + $0xe8] sm:$0xff] %vm825_vm1, %v1141_v5  ;;  %v1157_v1 = vmax.f32 %v1105_v55, 0.0  ;;  %v1109_v2 = vadd.f32 %v1864_v4, %v1054_v56  ;;  %v1158_v54 = vmax.f32 %v1106_v58, 0.0  ;;  %v1110_v3 = vadd.f32 %v1864_v4, %v1055_v59 }
 0x179   : > { %1194 = vst.msk [vmem:[%s2314_s4 + $0xf0] sm:$0xff] %vm825_vm1, %v1142_v10  ;;  %v1159_v5 = vmax.f32 %v1107_v61, 0.0  ;;  %v1111_v6 = vadd.f32 %v1864_v4, %v1056_v62  ;;  %v1160_v7 = vmax.f32 %v1108_v0, 0.0 }
 0x17a   : > { %1195 = vst.msk [vmem:[%s2314_s4 + $0xf8] sm:$0xff] %vm825_vm1, %v1143_v15  ;;  %v1161_v9 = vmax.f32 %v1109_v2, 0.0  ;;  %v1162_v10 = vmax.f32 %v1110_v3, 0.0 }
 0x17b   : > { %1196 = vst.msk [vmem:[%s2314_s4 + $0x100] sm:$0xff] %vm825_vm1, %v1144_v20  ;;  %v1163_v4 = vmax.f32 %v1111_v6, 0.0 }
 0x17c   : > { %1197 = vst.msk [vmem:[%s2314_s4 + $0x108] sm:$0xff] %vm825_vm1, %v1145_v23 }
 0x17d   : > { %1198 = vst.msk [vmem:[%s2314_s4 + $0x110] sm:$0xff] %vm825_vm1, %v1146_v27 }
 0x17e   : > { %1199 = vst.msk [vmem:[%s2314_s4 + $0x118] sm:$0xff] %vm825_vm1, %v1147_v30 }
 0x17f   : > { %1200 = vst.msk [vmem:[%s2314_s4 + $0x120] sm:$0xff] %vm825_vm1, %v1148_v34 }
 0x180   : > { %1201 = vst.msk [vmem:[%s2314_s4 + $0x128] sm:$0xff] %vm825_vm1, %v1149_v37 }
 0x181   : > { %1202 = vst.msk [vmem:[%s2314_s4 + $0x130] sm:$0xff] %vm825_vm1, %v1150_v41 }
 0x182   : > { %1203 = vst.msk [vmem:[%s2314_s4 + $0x138] sm:$0xff] %vm825_vm1, %v1151_v45 }
 0x183   : > { %1204 = vst.msk [vmem:[%s2314_s4 + $0x140] sm:$0xff] %vm825_vm1, %v1152_v49 }
 0x184   : > { %1205 = vst.msk [vmem:[%s2314_s4 + $0x148] sm:$0xff] %vm825_vm1, %v1153_v53 }
 0x185   : > { %1206 = vst.msk [vmem:[%s2314_s4 + $0x150] sm:$0xff] %vm825_vm1, %v1154_v57 }
 0x186   : > { %1207 = vst.msk [vmem:[%s2314_s4 + $0x158] sm:$0xff] %vm825_vm1, %v1155_v60 }
 0x187   : > { %1208 = vst.msk [vmem:[%s2314_s4 + $0x160] sm:$0xff] %vm825_vm1, %v1156_v63 }
 0x188   : > { %1209 = vst.msk [vmem:[%s2314_s4 + $0x168] sm:$0xff] %vm825_vm1, %v1157_v1 }
 0x189   : > { %1210 = vst.msk [vmem:[%s2314_s4 + $0x170] sm:$0xff] %vm825_vm1, %v1158_v54 }
 0x18a   : > { %1211 = vst.msk [vmem:[%s2314_s4 + $0x178] sm:$0xff] %vm825_vm1, %v1159_v5 }
 0x18b   : > { %1212 = vst.msk [vmem:[%s2314_s4 + $0x180] sm:$0xff] %vm825_vm1, %v1160_v7 }
 0x18c   : > { %1213 = vst.msk [vmem:[%s2314_s4 + $0x188] sm:$0xff] %vm825_vm1, %v1161_v9 }
 0x18d   : > { %1214 = vst.msk [vmem:[%s2314_s4 + $0x190] sm:$0xff] %vm825_vm1, %v1162_v10 }
 0x18e   : > { %1215 = vst.msk [vmem:[%s2314_s4 + $0x198] sm:$0xff] %vm825_vm1, %v1163_v4 }
 0x18f PF: > { %s14_s17 = sadd.s32 1, %s1612_s17   ;;  %s2315_s15 = smov %s1608_s16 }
 0x190   : > { %p11_p8 = scmp.ge.s32.totalorder %s14_s17, 6   ;;  %s2316_s16 = smov %s2318_s18 }
 0x192   :  { %13 = sbr.rel (!%p11_p8) target bundleno = 2 (0x2), region = 74 }

// kernel: generator_forward.7
= control target key start
LH: loop header
LB: loop body
LE: loop exit
PB: predicated region body
PF: predicated region fallthrough
CT: control target
= control target key end

     0   :  { %s1212_s9 = smov 0   ;;  %s1214_s10 = smov 0   ;;  %s1395_s0 = inlined_call_operand.vmem [shape: bf16[4,256,512], index: 0, kind: input, shape index: {}]   ;;  %s1396_s1 = inlined_call_operand.vmem [shape: bf16[4,1,256], index: 1, kind: input, shape index: {}]   ;;  %s1397_s2 = inlined_call_operand.vmem [shape: f32[4,1,512], index: 2, kind: output, shape index: {}]  }
   0x1   :  { %s1216_s11 = smov 0  }
   0x2 LB: > { %s24_s12 = sadd.s32 1, %s1191_s10  ;;  %p813_p0 = scmp.ge.s32.totalorder %s1195_s11, 1  ;;  %s1195_s11 = sphi %s1216_s11, %s12_s11   ;;  %s1191_s10 = sphi %s1214_s10, %s1399_s10   ;;  %s1187_s9 = sphi %s1212_s9, %s1398_s9  }
   0x3   : > { %p26_p1 = scmp.ge.s32.totalorder %s24_s12, 4  ;;  %p142_p2 = scmp.lt.s32.totalorder %s1195_s11, 5 }
   0x5   : > { %s1401_s12 = smov (%p26_p1, %s24_s12), 0  ;;  %p143_p3 = pnand %p813_p0, %p142_p2 }
   0x6   : > { %p176_p4 = scmp.lt.s32.totalorder (!%p143_p3), %s1187_s9, 3 }
   0x7   : > { %146 = sbr.rel (%p143_p3) target bundleno = 229 (0xe5), region = 28 }
   0xc   : > { %s1403_s9 = smov (!%p176_p4, %s1187_s9), 3  ;;  %vm704_vm0 = vcmask 1040384   ;;  %vm706_vm1 = vcmask 1042434   ;;  %vm708_vm2 = vcmask 1041408  }
   0xd   : > { %s1076_s13 = sshll.u32 %s1403_s9, 9  ;;  %s816_s17 = sshll.u32 %s1403_s9, 1 }
   0xe   : > { %s1236_s16 = scalar_lea.vmem %s1395_s0, %s1076_s13  ;;  %s188_s20 = scalar_lea.vmem %s1396_s1, %s816_s17 }
   0xf   : > { %v932_v0 = vld [vmem:[%s1236_s16 + $0xe0] sm:$0xf]  ;;  %v1107_v1 = vld [vmem:[%s1236_s16 + $0xec] sm:$0xf0]  ;;  %v1105_v5 = vld [vmem:[%s1236_s16 + $0xe4] sm:$0xf] }
  0x10   : > { %v1060_v2 = vld [vmem:[%s1236_s16 + $0x1e0] sm:$0xf]  ;;  %v933_v3 = vor.u32 %v1107_v1, %v932_v0  ;;  %v1139_v4 = vld [vmem:[%s1236_s16 + $0x1ec] sm:$0xf0]  ;;  %v934_v6 = vld [vmem:[%s1236_s16 + $0xf0] sm:$0xf0] }
  0x11   : > { %v1061_v7 = vor.u32 %v1139_v4, %v1060_v2  ;;  %v937_v8 = vor.u32 %v1105_v5, %v934_v6  ;;  %v1137_v9 = vld [vmem:[%s1236_s16 + $0x1e4] sm:$0xf]  ;;  %v1062_v10 = vld [vmem:[%s1236_s16 + $0x1f0] sm:$0xf0]  ;;  %v916_v11 = vld [vmem:[%s1236_s16 + $0xc0] sm:$0xf] }
  0x12   : > { %589 = vmatpush.bf16.msra.mxu0 %v933_v3  ;;  %v1065_v12 = vor.u32 %v1137_v9, %v1062_v10  ;;  %v1103_v13 = vld [vmem:[%s1236_s16 + $0xcc] sm:$0xf0]  ;;  %v1044_v14 = vld [vmem:[%s1236_s16 + $0x1c0] sm:$0xf]  ;;  %v1101_v18 = vld [vmem:[%s1236_s16 + $0xc4] sm:$0xf] }
  0x13   : > { %v1135_v15 = vld [vmem:[%s1236_s16 + $0x1cc] sm:$0xf0]  ;;  %602 = vmatpush.bf16.msra.mxu1 %v1061_v7  ;;  %615 = vmatpush.bf16.msra.mxu2 %v937_v8  ;;  %v917_v16 = vor.u32 %v1103_v13, %v916_v11  ;;  %v918_v19 = vld [vmem:[%s1236_s16 + $0xd0] sm:$0xf0]  ;;  %v1133_v20 = vld [vmem:[%s1236_s16 + $0x1c4] sm:$0xf] }
  0x14   : > { %v1045_v17 = vor.u32 %v1135_v15, %v1044_v14  ;;  %628 = vmatpush.bf16.msra.mxu3 %v1065_v12  ;;  %v921_v21 = vor.u32 %v1101_v18, %v918_v19  ;;  %v1046_v22 = vld [vmem:[%s1236_s16 + $0x1d0] sm:$0xf0]  ;;  %v900_v23 = vld [vmem:[%s1236_s16 + $0xa0] sm:$0xf]  ;;  %v1099_v24 = vld [vmem:[%s1236_s16 + $0xac] sm:$0xf0] }
  0x15   : > { %v1049_v25 = vor.u32 %v1133_v20, %v1046_v22  ;;  %v1028_v26 = vld [vmem:[%s1236_s16 + $0x1a0] sm:$0xf]  ;;  %v1131_v27 = vld [vmem:[%s1236_s16 + $0x1ac] sm:$0xf0]  ;;  %v1097_v28 = vld [vmem:[%s1236_s16 + $0xa4] sm:$0xf]  ;;  %v901_v29 = vor.u32 %v1099_v24, %v900_v23 }
  0x16   : > { %590 = vmatpush.bf16.msra.mxu0 %v917_v16  ;;  %v902_v30 = vld [vmem:[%s1236_s16 + $0xb0] sm:$0xf0]  ;;  %v1129_v31 = vld [vmem:[%s1236_s16 + $0x1a4] sm:$0xf]  ;;  %v1029_v33 = vor.u32 %v1131_v27, %v1028_v26  ;;  %v884_v35 = vld [vmem:[%s1236_s16 + $0x80] sm:$0xf] }
  0x17   : > { %v1030_v32 = vld [vmem:[%s1236_s16 + $0x1b0] sm:$0xf0]  ;;  %603 = vmatpush.bf16.msra.mxu1 %v1045_v17  ;;  %616 = vmatpush.bf16.msra.mxu2 %v921_v21  ;;  %v905_v34 = vor.u32 %v1097_v28, %v902_v30  ;;  %v1095_v36 = vld [vmem:[%s1236_s16 + $0x8c] sm:$0xf0]  ;;  %v1012_v37 = vld [vmem:[%s1236_s16 + $0x180] sm:$0xf] }
  0x18   : > { %629 = vmatpush.bf16.msra.mxu3 %v1049_v25  ;;  %v1033_v38 = vor.u32 %v1129_v31, %v1030_v32  ;;  %v1127_v39 = vld [vmem:[%s1236_s16 + $0x18c] sm:$0xf0]  ;;  %v1093_v40 = vld [vmem:[%s1236_s16 + $0x84] sm:$0xf]  ;;  %v886_v41 = vld [vmem:[%s1236_s16 + $0x90] sm:$0xf0]  ;;  %v885_v44 = vor.u32 %v1095_v36, %v884_v35 }
  0x19   : > { %v1125_v42 = vld [vmem:[%s1236_s16 + $0x184] sm:$0xf]  ;;  %v1014_v43 = vld [vmem:[%s1236_s16 + $0x190] sm:$0xf0]  ;;  %v1013_v45 = vor.u32 %v1127_v39, %v1012_v37  ;;  %v889_v46 = vor.u32 %v1093_v40, %v886_v41  ;;  %v868_v47 = vld [vmem:[%s1236_s16 + $0x60] sm:$0xf] }
  0x1a   : > { %591 = vmatpush.bf16.msra.mxu0 %v901_v29  ;;  %v1091_v48 = vld [vmem:[%s1236_s16 + $0x6c] sm:$0xf0]  ;;  %v996_v49 = vld [vmem:[%s1236_s16 + $0x160] sm:$0xf]  ;;  %v1017_v50 = vor.u32 %v1125_v42, %v1014_v43  ;;  %v1089_v52 = vld [vmem:[%s1236_s16 + $0x64] sm:$0xf] }
  0x1b   : > { %604 = vmatpush.bf16.msra.mxu1 %v1029_v33  ;;  %617 = vmatpush.bf16.msra.mxu2 %v905_v34  ;;  %v1123_v51 = vld [vmem:[%s1236_s16 + $0x16c] sm:$0xf0]  ;;  %v870_v53 = vld [vmem:[%s1236_s16 + $0x70] sm:$0xf0]  ;;  %v1121_v54 = vld [vmem:[%s1236_s16 + $0x164] sm:$0xf]  ;;  %v869_v56 = vor.u32 %v1091_v48, %v868_v47 }
  0x1c   : > { %630 = vmatpush.bf16.msra.mxu3 %v1033_v38  ;;  %v998_v55 = vld [vmem:[%s1236_s16 + $0x170] sm:$0xf0]  ;;  %v997_v57 = vor.u32 %v1123_v51, %v996_v49  ;;  %v873_v58 = vor.u32 %v1089_v52, %v870_v53  ;;  %v852_v59 = vld [vmem:[%s1236_s16 + $0x40] sm:$0xf]  ;;  %v1087_v60 = vld [vmem:[%s1236_s16 + $0x4c] sm:$0xf0] }
  0x1d   : > { %v980_v61 = vld [vmem:[%s1236_s16 + $0x140] sm:$0xf]  ;;  %v1001_v62 = vor.u32 %v1121_v54, %v998_v55  ;;  %v1119_v63 = vld [vmem:[%s1236_s16 + $0x14c] sm:$0xf0]  ;;  %v1085_v0 = vld [vmem:[%s1236_s16 + $0x44] sm:$0xf]  ;;  %v853_v4 = vor.u32 %v1087_v60, %v852_v59 }
  0x1e   : > { %592 = vmatpush.bf16.msra.mxu0 %v885_v44  ;;  %v854_v1 = vld [vmem:[%s1236_s16 + $0x50] sm:$0xf0]  ;;  %v1117_v2 = vld [vmem:[%s1236_s16 + $0x144] sm:$0xf]  ;;  %v981_v5 = vor.u32 %v1119_v63, %v980_v61  ;;  %v836_v7 = vld [vmem:[%s1236_s16 + $0x20] sm:$0xf] }
  0x1f   : > { %605 = vmatpush.bf16.msra.mxu1 %v1013_v45  ;;  %618 = vmatpush.bf16.msra.mxu2 %v889_v46  ;;  %v982_v3 = vld [vmem:[%s1236_s16 + $0x150] sm:$0xf0]  ;;  %v857_v6 = vor.u32 %v1085_v0, %v854_v1  ;;  %v1083_v8 = vld [vmem:[%s1236_s16 + $0x2c] sm:$0xf0]  ;;  %v964_v9 = vld [vmem:[%s1236_s16 + $0x120] sm:$0xf] }
  0x20   : > { %631 = vmatpush.bf16.msra.mxu3 %v1017_v50  ;;  %v985_v10 = vor.u32 %v1117_v2, %v982_v3  ;;  %v1115_v11 = vld [vmem:[%s1236_s16 + $0x12c] sm:$0xf0]  ;;  %v1081_v12 = vld [vmem:[%s1236_s16 + $0x24] sm:$0xf]  ;;  %v838_v13 = vld [vmem:[%s1236_s16 + $0x30] sm:$0xf0]  ;;  %v837_v17 = vor.u32 %v1083_v8, %v836_v7 }
  0x21   : > { %v1113_v14 = vld [vmem:[%s1236_s16 + $0x124] sm:$0xf]  ;;  %v966_v15 = vld [vmem:[%s1236_s16 + $0x130] sm:$0xf0]  ;;  %v820_v16 = vld [vmem:[%s1236_s16] sm:$0xf]  ;;  %v965_v21 = vor.u32 %v1115_v11, %v964_v9  ;;  %v841_v22 = vor.u32 %v1081_v12, %v838_v13 }
  0x22   : > { %593 = vmatpush.bf16.msra.mxu0 %v869_v56  ;;  %v1079_v18 = vld [vmem:[%s1236_s16 + $0xc] sm:$0xf0]  ;;  %v948_v19 = vld [vmem:[%s1236_s16 + $0x100] sm:$0xf]  ;;  %v1077_v23 = vld [vmem:[%s1236_s16 + $0x4] sm:$0xf]  ;;  %v969_v26 = vor.u32 %v1113_v14, %v966_v15 }
  0x23   : > { %606 = vmatpush.bf16.msra.mxu1 %v997_v57  ;;  %619 = vmatpush.bf16.msra.mxu2 %v873_v58  ;;  %v1111_v20 = vld [vmem:[%s1236_s16 + $0x10c] sm:$0xf0]  ;;  %v822_v24 = vld [vmem:[%s1236_s16 + $0x10] sm:$0xf0]  ;;  %v1109_v25 = vld [vmem:[%s1236_s16 + $0x104] sm:$0xf]  ;;  %v821_v33 = vor.u32 %v1079_v18, %v820_v16 }
  0x24   : > { %632 = vmatpush.bf16.msra.mxu3 %v1001_v62  ;;  %v950_v27 = vld [vmem:[%s1236_s16 + $0x110] sm:$0xf0]  ;;  %v940_v28 = vld [vmem:[%s1236_s16 + $0xe8] sm:$0xf]  ;;  %v1108_v29 = vld [vmem:[%s1236_s16 + $0xf4] sm:$0xf0]  ;;  %v949_v36 = vor.u32 %v1111_v20, %v948_v19  ;;  %v825_v37 = vor.u32 %v1077_v23, %v822_v24 }
  0x25   : > { %v1068_v30 = vld [vmem:[%s1236_s16 + $0x1e8] sm:$0xf]  ;;  %v1140_v31 = vld [vmem:[%s1236_s16 + $0x1f4] sm:$0xf0]  ;;  %v198_v32 = vld [vmem:[%s188_s20] sm:$0x3]  ;;  %v953_v40 = vor.u32 %v1109_v25, %v950_v27  ;;  %v941_v41 = vor.u32 %v1108_v29, %v940_v28 }
  0x26   : > { %594 = vmatpush.bf16.msra.mxu0 %v853_v4  ;;  %v1106_v34 = vld [vmem:[%s1236_s16 + $0xec] sm:$0xf]  ;;  %v942_v35 = vld [vmem:[%s1236_s16 + $0xf8] sm:$0xf0]  ;;  %264 = vst [vmem:[#allocation1] ss:$9 sm:$0xff] %v198_v32  ;;  %v1069_v42 = vor.u32 %v1140_v31, %v1068_v30 }
  0x27   : > { %607 = vmatpush.bf16.msra.mxu1 %v981_v5  ;;  %620 = vmatpush.bf16.msra.mxu2 %v857_v6  ;;  %v1138_v38 = vld [vmem:[%s1236_s16 + $0x1ec] sm:$0xf]  ;;  %v1070_v39 = vld [vmem:[%s1236_s16 + $0x1f8] sm:$0xf0]  ;;  %v945_v43 = vor.u32 %v1106_v34, %v942_v35  ;;  %v924_v44 = vld [vmem:[%s1236_s16 + $0xc8] sm:$0xf] }
  0x28   : > { %633 = vmatpush.bf16.msra.mxu3 %v985_v10  ;;  %v1104_v45 = vld [vmem:[%s1236_s16 + $0xd4] sm:$0xf0]  ;;  %v1052_v46 = vld [vmem:[%s1236_s16 + $0x1c8] sm:$0xf]  ;;  %v1073_v47 = vor.u32 %v1138_v38, %v1070_v39  ;;  %v1102_v49 = vld [vmem:[%s1236_s16 + $0xcc] sm:$0xf] }
  0x29   : > { %v1136_v48 = vld [vmem:[%s1236_s16 + $0x1d4] sm:$0xf0]  ;;  %v926_v50 = vld [vmem:[%s1236_s16 + $0xd8] sm:$0xf0]  ;;  %v1134_v51 = vld [vmem:[%s1236_s16 + $0x1cc] sm:$0xf]  ;;  %v925_v53 = vor.u32 %v1104_v45, %v924_v44 }
  0x2a   : > { %595 = vmatpush.bf16.msra.mxu0 %v837_v17  ;;  %v1054_v52 = vld [vmem:[%s1236_s16 + $0x1d8] sm:$0xf0]  ;;  %v908_v54 = vld [vmem:[%s1236_s16 + $0xa8] sm:$0xf]  ;;  %v1100_v55 = vld [vmem:[%s1236_s16 + $0xb4] sm:$0xf0]  ;;  %v1053_v56 = vor.u32 %v1136_v48, %v1052_v46  ;;  %v929_v57 = vor.u32 %v1102_v49, %v926_v50 }
  0x2b   : > { %608 = vmatpush.bf16.msra.mxu1 %v965_v21  ;;  %621 = vmatpush.bf16.msra.mxu2 %v841_v22  ;;  %v1036_v60 = vld [vmem:[%s1236_s16 + $0x1a8] sm:$0xf]  ;;  %v1057_v61 = vor.u32 %v1134_v51, %v1054_v52  ;;  %v1132_v62 = vld [vmem:[%s1236_s16 + $0x1b4] sm:$0xf0]  ;;  %v1098_v63 = vld [vmem:[%s1236_s16 + $0xac] sm:$0xf]  ;;  %v909_v3 = vor.u32 %v1100_v55, %v908_v54 }
  0x2c   : > { %634 = vmatpush.bf16.msra.mxu3 %v969_v26  ;;  %v910_v0 = vld [vmem:[%s1236_s16 + $0xb8] sm:$0xf0]  ;;  %v1130_v1 = vld [vmem:[%s1236_s16 + $0x1ac] sm:$0xf]  ;;  %v1037_v4 = vor.u32 %v1132_v62, %v1036_v60  ;;  %v892_v6 = vld [vmem:[%s1236_s16 + $0x88] sm:$0xf] }
  0x2d   : > { %v1324_v58 = vld [vmem:[#allocation1] sm:$0xff]  ;;  %v1326_v59 = vld [vmem:[#allocation1 + $0x9] sm:$0xff]  ;;  %v1038_v2 = vld [vmem:[%s1236_s16 + $0x1b8] sm:$0xf0]  ;;  %v913_v5 = vor.u32 %v1098_v63, %v910_v0  ;;  %s817_s21 = sshll.u32 %s1403_s9, 2 }
  0x2e   : > { %596 = vmatpush.bf16.msra.mxu0 %v821_v33  ;;  %v1096_v7 = vld [vmem:[%s1236_s16 + $0x94] sm:$0xf0]  ;;  %v1020_v8 = vld [vmem:[%s1236_s16 + $0x188] sm:$0xf]  ;;  %v1041_v9 = vor.u32 %v1130_v1, %v1038_v2  ;;  %v1094_v11 = vld [vmem:[%s1236_s16 + $0x8c] sm:$0xf]  ;;  %s196_s24 = scalar_lea.vmem %s1397_s2, %s817_s21 }
  0x2f   : > { %609 = vmatpush.bf16.msra.mxu1 %v949_v36  ;;  %622 = vmatpush.bf16.msra.mxu2 %v825_v37  ;;  %v1128_v10 = vld [vmem:[%s1236_s16 + $0x194] sm:$0xf0]  ;;  %v894_v12 = vld [vmem:[%s1236_s16 + $0x98] sm:$0xf0]  ;;  %v1126_v13 = vld [vmem:[%s1236_s16 + $0x18c] sm:$0xf]  ;;  %v893_v15 = vor.u32 %v1096_v7, %v892_v6 }
  0x30   : > { %635 = vmatpush.bf16.msra.mxu3 %v953_v40  ;;  %v1022_v14 = vld [vmem:[%s1236_s16 + $0x198] sm:$0xf0]  ;;  %v1021_v16 = vor.u32 %v1128_v10, %v1020_v8  ;;  %v897_v17 = vor.u32 %v1094_v11, %v894_v12  ;;  %v876_v18 = vld [vmem:[%s1236_s16 + $0x68] sm:$0xf]  ;;  %v1092_v19 = vld [vmem:[%s1236_s16 + $0x74] sm:$0xf0] }
  0x31   : > { %597 = vmatmul.bf16.vlgmr.msra.gmra.mxu0 %v1324_v58  ;;  %v1004_v20 = vld [vmem:[%s1236_s16 + $0x168] sm:$0xf]  ;;  %v1025_v21 = vor.u32 %v1126_v13, %v1022_v14  ;;  %v1124_v22 = vld [vmem:[%s1236_s16 + $0x174] sm:$0xf0]  ;;  %v1090_v23 = vld [vmem:[%s1236_s16 + $0x6c] sm:$0xf]  ;;  %v877_v27 = vor.u32 %v1092_v19, %v876_v18 }
  0x32   : > { %641 = vmatpush.bf16.msrb.mxu0 %v941_v41  ;;  %623 = vmatmul.bf16.vlgmr.msra.gmra.mxu2 %v1324_v58  ;;  %v878_v24 = vld [vmem:[%s1236_s16 + $0x78] sm:$0xf0]  ;;  %v1122_v25 = vld [vmem:[%s1236_s16 + $0x16c] sm:$0xf]  ;;  %v1005_v28 = vor.u32 %v1124_v22, %v1004_v20  ;;  %v860_v30 = vld [vmem:[%s1236_s16 + $0x48] sm:$0xf] }
  0x33   : > { %654 = vmatpush.bf16.msrb.mxu1 %v1069_v42  ;;  %667 = vmatpush.bf16.msrb.mxu2 %v945_v43  ;;  %v1006_v26 = vld [vmem:[%s1236_s16 + $0x178] sm:$0xf0]  ;;  %v881_v29 = vor.u32 %v1090_v23, %v878_v24  ;;  %v1088_v31 = vld [vmem:[%s1236_s16 + $0x54] sm:$0xf0]  ;;  %v988_v32 = vld [vmem:[%s1236_s16 + $0x148] sm:$0xf]  ;;  %v711_v23 = vlaneseq }
  0x34   : > { %680 = vmatpush.bf16.msrb.mxu3 %v1073_v47  ;;  %610 = vmatmul.bf16.vlgmr.msra.gmra.mxu1 %v1326_v59  ;;  %v1009_v33 = vor.u32 %v1122_v25, %v1006_v26  ;;  %v1120_v34 = vld [vmem:[%s1236_s16 + $0x154] sm:$0xf0]  ;;  %v1086_v35 = vld [vmem:[%s1236_s16 + $0x4c] sm:$0xf]  ;;  %v862_v36 = vld [vmem:[%s1236_s16 + $0x58] sm:$0xf0]  ;;  %v861_v39 = vor.u32 %v1088_v31, %v860_v30 }
  0x35   : > { %636 = vmatmul.bf16.vlgmr.msra.gmra.mxu3 %v1326_v59  ;;  %v1118_v37 = vld [vmem:[%s1236_s16 + $0x14c] sm:$0xf]  ;;  %v990_v38 = vld [vmem:[%s1236_s16 + $0x158] sm:$0xf0]  ;;  %v989_v40 = vor.u32 %v1120_v34, %v988_v32  ;;  %v865_v41 = vor.u32 %v1086_v35, %v862_v36  ;;  %v844_v42 = vld [vmem:[%s1236_s16 + $0x28] sm:$0xf] }
  0x36   : > { %642 = vmatpush.bf16.msrb.mxu0 %v925_v53  ;;  %v1084_v43 = vld [vmem:[%s1236_s16 + $0x34] sm:$0xf0]  ;;  %v972_v44 = vld [vmem:[%s1236_s16 + $0x128] sm:$0xf]  ;;  %v993_v45 = vor.u32 %v1118_v37, %v990_v38  ;;  %v1082_v47 = vld [vmem:[%s1236_s16 + $0x2c] sm:$0xf] }
  0x37   : > { %655 = vmatpush.bf16.msrb.mxu1 %v1053_v56  ;;  %668 = vmatpush.bf16.msrb.mxu2 %v929_v57  ;;  %v1116_v46 = vld [vmem:[%s1236_s16 + $0x134] sm:$0xf0]  ;;  %v846_v48 = vld [vmem:[%s1236_s16 + $0x38] sm:$0xf0]  ;;  %v1114_v49 = vld [vmem:[%s1236_s16 + $0x12c] sm:$0xf]  ;;  %v845_v51 = vor.u32 %v1084_v43, %v844_v42 }
  0x38   : > { %681 = vmatpush.bf16.msrb.mxu3 %v1057_v61  ;;  %v974_v50 = vld [vmem:[%s1236_s16 + $0x138] sm:$0xf0]  ;;  %v973_v52 = vor.u32 %v1116_v46, %v972_v44  ;;  %v849_v53 = vor.u32 %v1082_v47, %v846_v48  ;;  %v828_v54 = vld [vmem:[%s1236_s16 + $0x8] sm:$0xf]  ;;  %v1080_v55 = vld [vmem:[%s1236_s16 + $0x14] sm:$0xf0] }
  0x39   : > { %v956_v56 = vld [vmem:[%s1236_s16 + $0x108] sm:$0xf]  ;;  %v977_v57 = vor.u32 %v1114_v49, %v974_v50  ;;  %v1112_v60 = vld [vmem:[%s1236_s16 + $0x114] sm:$0xf0]  ;;  %v1078_v61 = vld [vmem:[%s1236_s16 + $0xc] sm:$0xf]  ;;  %v829_v1 = vor.u32 %v1080_v55, %v828_v54 }
  0x3a   : > { %643 = vmatpush.bf16.msrb.mxu0 %v909_v3  ;;  %v830_v62 = vld [vmem:[%s1236_s16 + $0x18] sm:$0xf0]  ;;  %v1110_v63 = vld [vmem:[%s1236_s16 + $0x10c] sm:$0xf]  ;;  %v957_v2 = vor.u32 %v1112_v60, %v956_v56  ;;  %vm713_vm3 = vcmp.lt.s32.totalorder %v711_v23, 512 }
  0x3b   : > { %656 = vmatpush.bf16.msrb.mxu1 %v1037_v4  ;;  %669 = vmatpush.bf16.msrb.mxu2 %v913_v5  ;;  %v958_v0 = vld [vmem:[%s1236_s16 + $0x118] sm:$0xf0]  ;;  %v833_v3 = vor.u32 %v1078_v61, %v830_v62 }
  0x3c   : > { %682 = vmatpush.bf16.msrb.mxu3 %v1041_v9  ;;  %v961_v4 = vor.u32 %v1110_v63, %v958_v0 }
  0x3e   : > { %644 = vmatpush.bf16.msrb.mxu0 %v893_v15 }
  0x3f   : > { %657 = vmatpush.bf16.msrb.mxu1 %v1021_v16  ;;  %670 = vmatpush.bf16.msrb.mxu2 %v897_v17 }
  0x40   : > { %683 = vmatpush.bf16.msrb.mxu3 %v1025_v21 }
  0x42   : > { %645 = vmatpush.bf16.msrb.mxu0 %v877_v27 }
  0x43   : > { %658 = vmatpush.bf16.msrb.mxu1 %v1005_v28  ;;  %671 = vmatpush.bf16.msrb.mxu2 %v881_v29 }
  0x44   : > { %684 = vmatpush.bf16.msrb.mxu3 %v1009_v33 }
  0x46   : > { %646 = vmatpush.bf16.msrb.mxu0 %v861_v39 }
  0x47   : > { %659 = vmatpush.bf16.msrb.mxu1 %v989_v40  ;;  %672 = vmatpush.bf16.msrb.mxu2 %v865_v41 }
  0x48   : > { %685 = vmatpush.bf16.msrb.mxu3 %v993_v45 }
  0x4a   : > { %647 = vmatpush.bf16.msrb.mxu0 %v845_v51 }
  0x4b   : > { %660 = vmatpush.bf16.msrb.mxu1 %v973_v52  ;;  %673 = vmatpush.bf16.msrb.mxu2 %v849_v53 }
  0x4c   : > { %686 = vmatpush.bf16.msrb.mxu3 %v977_v57 }
  0x4e   : > { %648 = vmatpush.bf16.msrb.mxu0 %v829_v1 }
  0x4f   : > { %661 = vmatpush.bf16.msrb.mxu1 %v957_v2  ;;  %674 = vmatpush.bf16.msrb.mxu2 %v833_v3 }
  0x50   : > { %687 = vmatpush.bf16.msrb.mxu3 %v961_v4 }
  0x51   : > { %649 = vmatmul.bf16.vlgmr.msrb.gmra.mxu0 %v1324_v58 }
  0x52   : > { %662 = vmatmul.bf16.vlgmr.msrb.gmra.mxu1 %v1326_v59  ;;  %675 = vmatmul.bf16.vlgmr.msrb.gmra.mxu2 %v1324_v58 }
  0x53   : > { %688 = vmatmul.bf16.vlgmr.msrb.gmra.mxu3 %v1326_v59 }
  0xae   : > { %v598_v5 = vpop.f32.mrf.mxu0 }
  0xb1   : > { %v611_v6 = vpop.f32.mrf.mxu1 }
  0xb2   : > { %v612_v17 = vadd.f32 %v611_v6, %v598_v5 }
  0xb5   : > { %v624_v7 = vpop.f32.mrf.mxu2 }
  0xb6   : > { %v600_v9 = vpop.f32.mrf.mxu0 }
  0xb8   : > { %v637_v8 = vpop.f32.mrf.mxu3 }
  0xb9   : > { %v613_v10 = vpop.f32.mrf.mxu1  ;;  %v638_v15 = vadd.f32 %v637_v8, %v624_v7 }
  0xbb   : > { %1165 = vtanh.f32 %v638_v15 }
  0xbd   : > { %v626_v11 = vpop.f32.mrf.mxu2 }
  0xc0   : > { %v639_v12 = vpop.f32.mrf.mxu3 }
  0xc1   : > { %v1166_v21 = vpop.eup %1165 }
  0xc2   : > { %v701_v26 = vrot.slane %v1166_v21, 7 }
  0xce   : > { %v650_v13 = vpop.f32.mrf.mxu0 }
  0xcf   : > { %v663_v14 = vpop.f32.mrf.mxu1 }
  0xd0   : > { %v664_v16 = vadd.f32 %v663_v14, %v650_v13 }
  0xd2   : > { %1167 = vtanh.f32 %v664_v16 }
  0xd3   : > { %1169 = vtanh.f32 %v612_v17 }
  0xd5   : > { %v676_v18 = vpop.f32.mrf.mxu2 }
  0xd6   : > { %v689_v58 = vpop.f32.mrf.mxu3  ;;  %v652_v19 = vpop.f32.mrf.mxu0 }
  0xd7   : > { %v690_v59 = vadd.f32 %v689_v58, %v676_v18  ;;  %v665_v20 = vpop.f32.mrf.mxu1 }
  0xd8   : > { %v1168_v22 = vpop.eup %1167 }
  0xd9   : > { %1171 = vtanh.f32 %v690_v59  ;;  %v1170_v25 = vpop.eup %1169  ;;  %v702_v27 = vrot.slane %v1168_v22, 6 }
  0xda   : > { %v705_v31 = vsel %vm704_vm0, %v1170_v25, %v701_v26 }
  0xdd   : > { %v678_v24 = vpop.f32.mrf.mxu2 }
  0xde   : > { %v691_v28 = vpop.f32.mrf.mxu3 }
  0xdf   : > { %v1172_v29 = vpop.eup %1171 }
  0xe0   : > { %v703_v30 = vrot.slane %v1172_v29, 5 }
  0xe2   : > { %v707_v32 = vsel %vm706_vm1, %v702_v27, %v703_v30 }
  0xe3   : > { %v709_v33 = vsel %vm708_vm2, %v705_v31, %v707_v32 }
  0xe4   : > { %715 = vst.msk [vmem:[%s196_s24] sm:$0xf] %vm713_vm3, %v709_v33 }
  0xe5 PF: > { %s12_s11 = sadd.s32 1, %s1195_s11   ;;  %s1398_s9 = smov %s1191_s10 }
  0xe6   : > { %p9_p5 = scmp.ge.s32.totalorder %s12_s11, 6   ;;  %s1399_s10 = smov %s1401_s12 }
  0xe8   :  { %11 = sbr.rel (!%p9_p5) target bundleno = 2 (0x2), region = 61 }

// kernel: squeeze.6
= control target key start
LH: loop header
LB: loop body
LE: loop exit
PB: predicated region body
PF: predicated region fallthrough
CT: control target
= control target key end

     0   :  { %s268_s8 = smov 118   ;;  %s269_s9 = smov 102   ;;  %vm173_vm0 = vcmask 998400   ;;  %vm200_vm1 = vcmask 1031168   ;;  %vm187_vm2 = vcmask 1014784   ;;  %vm7_vm3 = vcmask 113664   ;;  %s425_s0 = inlined_call_operand.vmem [shape: f32[392], index: 0, kind: input, shape index: {}]   ;;  %s426_s1 = inlined_call_operand.vmem [shape: f32[2,14,14], index: 1, kind: output, shape index: {}]  }
   0x1   :  { %v4_v0 = vld [vmem:[%s425_s0] sm:$0xf]  ;;  %s267_s0 = smov 114   ;;  %s270_s10 = smov 104   ;;  %vm177_vm4 = vcmask 48128   ;;  %vm180_vm5 = vcmask 113712  }
   0x2   :  { %5 = vst [vmem:[#allocation0] sm:$0xf] %v4_v0  ;;  %s271_s11 = smov 116   ;;  %s272_s12 = smov 100   ;;  %vm204_vm6 = vcmask 15360   ;;  %vm207_vm7 = vcmask 113680  }
   0x3   :  { %s273_s13 = smov 88   ;;  %s274_s14 = smov 90   ;;  %vm191_vm8 = vcmask 31744   ;;  %vm194_vm9 = vcmask 113696  }
   0x4   :  { %s275_s15 = smov 86   ;;  %s276_s16 = smov 74  }
   0x5   :  { %s277_s17 = smov 76   ;;  %s278_s18 = smov 72  }
   0x6   :  { %s279_s19 = smov 60   ;;  %s280_s20 = smov 62  }
   0x7   :  { %s281_s21 = smov 6   ;;  %s282_s22 = smov 2  }
   0x8   :  { %s283_s23 = smov 4   ;;  %s284_s24 = smov 58  }
   0x9   :  { %v23_v1 = vld [vmem:[#allocation0] sm:$0x1]   ;;  %v10_v2 = vld [vmem:[#allocation0 + $0x2] sm:$0x1]   ;;  %v37_v3 = vld [vmem:[#allocation0 + $0x1] sm:$0x1]  }
   0xa   :  { %24 = vrot.lane.b32.xlu1 %v23_v1, %s267_s0  ;;  %11 = vrot.lane.b32.xlu0 %v10_v2, %s268_s8  ;;  %v30_v4 = vld [vmem:[#allocation0 + $0x2] sm:$0x1]   ;;  %v17_v5 = vld [vmem:[#allocation0 + $0x1] sm:$0x1]   ;;  %v43_v6 = vld [vmem:[#allocation0] sm:$0x1]  }
   0xb   :  { %38 = vrot.lane.b32.xlu2 %v37_v3, %s269_s9  ;;  %v57_v7 = vld [vmem:[#allocation0 + $0x1] sm:$0x1]   ;;  %v50_v8 = vld [vmem:[#allocation0 + $0x2] sm:$0x1]   ;;  %v63_v9 = vld [vmem:[#allocation0] sm:$0x1]  }
   0xc   :  { %v77_v10 = vld [vmem:[#allocation0 + $0x1] sm:$0x1]   ;;  %v70_v11 = vld [vmem:[#allocation0 + $0x2] sm:$0x1]   ;;  %v83_v12 = vld [vmem:[#allocation0] sm:$0x1]  }
   0xd   :  { %v170_v13 = vld [vmem:[#allocation0 + $0x2] sm:$0x1]   ;;  %v172_v14 = vld [vmem:[#allocation0 + $0x3] sm:$0x1]   ;;  %v97_v15 = vld [vmem:[#allocation0 + $0x1] sm:$0x1]  }
   0xe   :  { %v90_v16 = vld [vmem:[#allocation0 + $0x2] sm:$0x1]   ;;  %v174_v17 = vsel %vm173_vm0, %v172_v14, %v170_v13  ;;  %v197_v18 = vld [vmem:[#allocation0] sm:$0x1]   ;;  %v199_v19 = vld [vmem:[#allocation0 + $0x1] sm:$0x1]  }
   0xf   :  { %v184_v20 = vld [vmem:[#allocation0 + $0x1] sm:$0x1]   ;;  %v186_v21 = vld [vmem:[#allocation0 + $0x2] sm:$0x1]   ;;  %v201_v22 = vsel %vm200_vm1, %v199_v19, %v197_v18  ;;  %v103_v24 = vld [vmem:[#allocation0] sm:$0x1]  }
  0x10   :  { %v188_v23 = vsel %vm187_vm2, %v186_v21, %v184_v20  ;;  %v117_v25 = vld [vmem:[#allocation0 + $0x1] sm:$0x1]   ;;  %v110_v26 = vld [vmem:[#allocation0 + $0x2] sm:$0x1]   ;;  %v123_v27 = vld [vmem:[#allocation0] sm:$0x1]  }
  0x11   :  { %s285_s25 = smov 46   ;;  %s286_s26 = smov 48   ;;  %v137_v28 = vld [vmem:[#allocation0 + $0x1] sm:$0x1]   ;;  %v130_v29 = vld [vmem:[#allocation0 + $0x2] sm:$0x1]  }
  0x12   :  { %31 = vrot.lane.b32.xlu1 %v30_v4, %s270_s10  ;;  %18 = vrot.lane.b32.xlu0 %v17_v5, %s271_s11  ;;  %s287_s27 = smov 44   ;;  %v143_v30 = vld [vmem:[#allocation0] sm:$0x1]   ;;  %s288_s28 = smov 32   ;;  %v157_v31 = vld [vmem:[#allocation0 + $0x1] sm:$0x1]  }
  0x13   :  { %44 = vrot.lane.b32.xlu2 %v43_v6, %s272_s12  ;;  %s289_s29 = smov 34   ;;  %s290_s30 = smov 30   ;;  %v150_v32 = vld [vmem:[#allocation0 + $0x2] sm:$0x1]   ;;  %v163_v33 = vld [vmem:[#allocation0] sm:$0x1]  }
  0x14   :  { %s291_s2 = smov 18   ;;  %s292_s3 = smov 20   ;;  %v6_v52 = vld [vmem:[#allocation0] sm:$0x1]  }
  0x15   :  { %s293_s4 = smov 16   ;;  %8 = vst.msk [vmem:[%s426_s1] sm:$0x1] %vm7_vm3, %v6_v52  }
  0x1a   :  { %58 = vrot.lane.b32.xlu1 %v57_v7, %s273_s13  ;;  %51 = vrot.lane.b32.xlu0 %v50_v8, %s274_s14 }
  0x1b   :  { %64 = vrot.lane.b32.xlu2 %v63_v9, %s275_s15 }
  0x22   :  { %78 = vrot.lane.b32.xlu1 %v77_v10, %s276_s16  ;;  %71 = vrot.lane.b32.xlu0 %v70_v11, %s277_s17 }
  0x23   :  { %84 = vrot.lane.b32.xlu2 %v83_v12, %s278_s18 }
  0x2a   :  { %98 = vrot.lane.b32.xlu1 %v97_v15, %s279_s19  ;;  %91 = vrot.lane.b32.xlu0 %v90_v16, %s280_s20 }
  0x2b   :  { %175 = vrot.lane.b32.xlu2 %v174_v17, %s281_s21 }
  0x32   :  { %202 = vrot.lane.b32.xlu1 %v201_v22, %s282_s22  ;;  %189 = vrot.lane.b32.xlu0 %v188_v23, %s283_s23 }
  0x33   :  { %104 = vrot.lane.b32.xlu2 %v103_v24, %s284_s24 }
  0x3a   :  { %118 = vrot.lane.b32.xlu1 %v117_v25, %s285_s25  ;;  %111 = vrot.lane.b32.xlu0 %v110_v26, %s286_s26 }
  0x3b   :  { %124 = vrot.lane.b32.xlu2 %v123_v27, %s287_s27 }
  0x42   :  { %138 = vrot.lane.b32.xlu1 %v137_v28, %s288_s28  ;;  %131 = vrot.lane.b32.xlu0 %v130_v29, %s289_s29 }
  0x43   :  { %144 = vrot.lane.b32.xlu2 %v143_v30, %s290_s30 }
  0x4a   :  { %158 = vrot.lane.b32.xlu1 %v157_v31, %s291_s2  ;;  %151 = vrot.lane.b32.xlu0 %v150_v32, %s292_s3 }
  0x4b   :  { %164 = vrot.lane.b32.xlu2 %v163_v33, %s293_s4 }
  0x65   :  { %v39_v34 = vpop.permute.xlu2 %38  }
  0x66   :  { %214 = vst.msk [vmem:[%s426_s1 + $0xb] sm:$0x1] %vm7_vm3, %v39_v34  }
  0x6d   :  { %v45_v35 = vpop.permute.xlu2 %44  }
  0x6e   :  { %215 = vst.msk [vmem:[%s426_s1 + $0x2] sm:$0x1] %vm7_vm3, %v45_v35  }
  0x75   :  { %v65_v36 = vpop.permute.xlu2 %64  }
  0x76   :  { %218 = vst.msk [vmem:[%s426_s1 + $0x3] sm:$0x1] %vm7_vm3, %v65_v36  }
  0x7c   :  { %v25_v37 = vpop.permute.xlu1 %24   ;;  %v12_v38 = vpop.permute.xlu0 %11  }
  0x7d   :  { %212 = vst.msk [vmem:[%s426_s1 + $0x1] sm:$0x1] %vm7_vm3, %v25_v37   ;;  %v85_v39 = vpop.permute.xlu2 %84  }
  0x7e   :  { %210 = vst.msk [vmem:[%s426_s1 + $0x15] sm:$0x1] %vm7_vm3, %v12_v38  }
  0x7f   :  { %221 = vst.msk [vmem:[%s426_s1 + $0x4] sm:$0x1] %vm7_vm3, %v85_v39  }
  0x84   :  { %v32_v40 = vpop.permute.xlu1 %31   ;;  %v19_v41 = vpop.permute.xlu0 %18  }
  0x85   :  { %213 = vst.msk [vmem:[%s426_s1 + $0x16] sm:$0x1] %vm7_vm3, %v32_v40   ;;  %v176_v42 = vpop.permute.xlu2 %175  }
  0x86   :  { %211 = vst.msk [vmem:[%s426_s1 + $0xa] sm:$0x1] %vm7_vm3, %v19_v41  }
  0x87   :  { %234 = vst.msk [vmem:[%s426_s1 + $0x1d] sm:$0x1] %vm177_vm4, %v176_v42  }
  0x88   :  { %235 = vst.msk [vmem:[%s426_s1 + $0x1d] sm:$0x1] %vm180_vm5, %v176_v42  }
  0x8c   :  { %v59_v43 = vpop.permute.xlu1 %58   ;;  %v52_v44 = vpop.permute.xlu0 %51  }
  0x8d   :  { %217 = vst.msk [vmem:[%s426_s1 + $0xc] sm:$0x1] %vm7_vm3, %v59_v43   ;;  %v105_v45 = vpop.permute.xlu2 %104  }
  0x8e   :  { %216 = vst.msk [vmem:[%s426_s1 + $0x17] sm:$0x1] %vm7_vm3, %v52_v44  }
  0x8f   :  { %224 = vst.msk [vmem:[%s426_s1 + $0x5] sm:$0x1] %vm7_vm3, %v105_v45  }
  0x94   :  { %v79_v46 = vpop.permute.xlu1 %78   ;;  %v72_v47 = vpop.permute.xlu0 %71  }
  0x95   :  { %220 = vst.msk [vmem:[%s426_s1 + $0xd] sm:$0x1] %vm7_vm3, %v79_v46   ;;  %v125_v48 = vpop.permute.xlu2 %124  }
  0x96   :  { %219 = vst.msk [vmem:[%s426_s1 + $0x18] sm:$0x1] %vm7_vm3, %v72_v47  }
  0x97   :  { %227 = vst.msk [vmem:[%s426_s1 + $0x6] sm:$0x1] %vm7_vm3, %v125_v48  }
  0x9c   :  { %v99_v49 = vpop.permute.xlu1 %98   ;;  %v92_v50 = vpop.permute.xlu0 %91  }
  0x9d   :  { %223 = vst.msk [vmem:[%s426_s1 + $0x10] sm:$0x1] %vm7_vm3, %v99_v49   ;;  %v145_v51 = vpop.permute.xlu2 %144  }
  0x9e   :  { %222 = vst.msk [vmem:[%s426_s1 + $0x19] sm:$0x1] %vm7_vm3, %v92_v50  }
  0x9f   :  { %230 = vst.msk [vmem:[%s426_s1 + $0x7] sm:$0x1] %vm7_vm3, %v145_v51  }
  0xa4   :  { %v203_v53 = vpop.permute.xlu1 %202   ;;  %v190_v54 = vpop.permute.xlu0 %189  }
  0xa5   :  { %238 = vst.msk [vmem:[%s426_s1 + $0x9] sm:$0x1] %vm204_vm6, %v203_v53   ;;  %v165_v55 = vpop.permute.xlu2 %164  }
  0xa6   :  { %239 = vst.msk [vmem:[%s426_s1 + $0x9] sm:$0x1] %vm207_vm7, %v203_v53  }
  0xa7   :  { %236 = vst.msk [vmem:[%s426_s1 + $0x14] sm:$0x1] %vm191_vm8, %v190_v54  }
  0xa8   :  { %237 = vst.msk [vmem:[%s426_s1 + $0x14] sm:$0x1] %vm194_vm9, %v190_v54  }
  0xa9   :  { %233 = vst.msk [vmem:[%s426_s1 + $0x8] sm:$0x1] %vm7_vm3, %v165_v55  }
  0xac   :  { %v119_v56 = vpop.permute.xlu1 %118   ;;  %v112_v57 = vpop.permute.xlu0 %111  }
  0xad   :  { %226 = vst.msk [vmem:[%s426_s1 + $0x11] sm:$0x1] %vm7_vm3, %v119_v56  }
  0xae   :  { %225 = vst.msk [vmem:[%s426_s1 + $0x1a] sm:$0x1] %vm7_vm3, %v112_v57  }
  0xb4   :  { %v139_v58 = vpop.permute.xlu1 %138   ;;  %v132_v59 = vpop.permute.xlu0 %131  }
  0xb5   :  { %229 = vst.msk [vmem:[%s426_s1 + $0x12] sm:$0x1] %vm7_vm3, %v139_v58  }
  0xb6   :  { %228 = vst.msk [vmem:[%s426_s1 + $0x1b] sm:$0x1] %vm7_vm3, %v132_v59  }
  0xbc   :  { %v159_v60 = vpop.permute.xlu1 %158   ;;  %v152_v61 = vpop.permute.xlu0 %151  }
  0xbd   :  { %232 = vst.msk [vmem:[%s426_s1 + $0x13] sm:$0x1] %vm7_vm3, %v159_v60  }
  0xbe   :  { %231 = vst.msk [vmem:[%s426_s1 + $0x1c] sm:$0x1] %vm7_vm3, %v152_v61  }

</bundles_post_ra>
